<compile_context>
chip_gen: v7x
topology: tpu7x:2x2x1
jax: 0.10.0
libtpu: 0.0.40
codegen_flags: <defaults>
</compile_context>

<pallas_src>
import math

import jax
import jax.numpy as jnp
from jax.experimental import pallas as pl
from jax.experimental.pallas import tpu as pltpu

MXU_DTYPE = jnp.bfloat16   # MXU operand dtype; accumulation stays f32


# ----------------------------------------------------------------------------
# Fused kernel: length-masked 2-layer GRU (time-major) + batched attention +
# output projection + log_softmax, one batch block per grid step.
# ----------------------------------------------------------------------------
def _decoder_kernel(lens_ref, x_ref, h0_ref, ctx_ref,
                    wih0_ref, whh0_ref, bih0_ref, bhh0_ref,
                    w1x_ref, w1h_ref, b1i_ref, b1h_ref,
                    wk_ref, wq_ref, wv_ref, woc_ref, woo_ref, bo_ref,
                    wvoc_ref, bvoc_ref,
                    logp_ref, hfin_ref, attn_ref,
                    h0_s, h1_s, out_s, gi0_s):
    T, Bb, E = x_ref.shape
    H = h0_ref.shape[-1]
    S = ctx_ref.shape[1]
    C = ctx_ref.shape[2]
    V = logp_ref.shape[-1]
    f32 = jnp.float32

    lens = lens_ref[...]                                   # (Bb, 1) int32

    # ---- hoisted layer-0 input projection: ONE (T*Bb, E) x (E, 3H) matmul ----
    # (in-kernel reshape kept: proven lowering; at production sizes keep Bb a
    #  multiple of 8 so the (T,Bb)->(T*Bb) collapse is layout-preserving)
    x2d = x_ref[...].reshape(T * Bb, E)                    # bf16
    gi0_all = jnp.dot(x2d, wih0_ref[...],
                      preferred_element_type=f32) + bih0_ref[...]
    gi0_s[...] = gi0_all.reshape(T, Bb, 3 * H)

    # hoist weight / bias reads out of the recurrence
    whh0 = whh0_ref[...]
    bhh0 = bhh0_ref[...]
    w1x = w1x_ref[...]
    w1h = w1h_ref[...]
    b1i = b1i_ref[...]
    b1h = b1h_ref[...]

    h0_s[...] = h0_ref[0]
    h1_s[...] = h0_ref[1]

    def step(t, carry):
        m = t < lens                                       # (Bb, 1) length mask
        h0_prev = h0_s[...]
        h1_prev = h1_s[...]

        # layer 0: only the h-dependent matmul stays inside the recurrence
        g0 = gi0_s[t]                                      # (Bb, 3H), has b_ih
        gh0 = jnp.dot(h0_prev.astype(MXU_DTYPE), whh0,
                      preferred_element_type=f32) + bhh0
        r0 = jax.nn.sigmoid(g0[:, 0:H] + gh0[:, 0:H])
        z0 = jax.nn.sigmoid(g0[:, H:2 * H] + gh0[:, H:2 * H])
        n0 = jnp.tanh(g0[:, 2 * H:] + r0 * gh0[:, 2 * H:])
        h0_new = (1.0 - z0) * n0 + z0 * h0_prev
        h0_upd = jnp.where(m, h0_new, h0_prev)             # frozen past length

        # layer 1: two (Bb,H)x(H,3H) dots (no concat, no zero-padded weights)
        g1x = jnp.dot(h0_upd.astype(MXU_DTYPE), w1x,
                      preferred_element_type=f32) + b1i
        g1h = jnp.dot(h1_prev.astype(MXU_DTYPE), w1h,
                      preferred_element_type=f32) + b1h
        r1 = jax.nn.sigmoid(g1x[:, 0:H] + g1h[:, 0:H])
        z1 = jax.nn.sigmoid(g1x[:, H:2 * H] + g1h[:, H:2 * H])
        n1 = jnp.tanh(g1x[:, 2 * H:] + r1 * g1h[:, 2 * H:])
        h1_new = (1.0 - z1) * n1 + z1 * h1_prev
        h1_upd = jnp.where(m, h1_new, h1_prev)

        h0_s[...] = h0_upd
        h1_s[...] = h1_upd
        out_s[t] = jnp.where(m, h1_upd, 0.0)               # pad_packed zeros
        return carry

    jax.lax.fori_loop(0, T, step, 0, unroll=min(int(T), 8))

    hfin_ref[0] = h0_s[...]
    hfin_ref[1] = h1_s[...]

    # ---- attention + output projection on the in-VMEM GRU outputs (batched) ----
    out_bt = pltpu.einshape("tbh->bth", out_s[...])        # (Bb, T, H) in VMEM
    out2d = out_bt.reshape(Bb * T, H).astype(MXU_DTYPE)
    ctx2d = ctx_ref[...].reshape(Bb * S, C)                # bf16

    key3 = jnp.dot(ctx2d, wk_ref[...],
                   preferred_element_type=f32).reshape(Bb, S, H)
    qry3 = jnp.dot(out2d, wq_ref[...],
                   preferred_element_type=f32).reshape(Bb, T, H)
    val3 = jnp.dot(ctx2d, wv_ref[...],
                   preferred_element_type=f32).reshape(Bb, S, C)

    scale = 1.0 / math.sqrt(float(H))
    scores = jnp.einsum('bth,bsh->bts',
                        qry3.astype(MXU_DTYPE), key3.astype(MXU_DTYPE),
                        preferred_element_type=f32) * scale
    # (mask intentionally NOT applied: reference masked_fill result is discarded)
    smax = jnp.max(scores, axis=-1, keepdims=True)
    e = jnp.exp(scores - smax)
    attn = e / jnp.sum(e, axis=-1, keepdims=True)
    attn_ref[...] = attn

    ctx_att = jnp.einsum('bts,bsc->btc',
                         attn.astype(MXU_DTYPE), val3.astype(MXU_DTYPE),
                         preferred_element_type=f32)       # (Bb, T, C)
    ctx2 = ctx_att.reshape(Bb * T, C).astype(MXU_DTYPE)

    # linear_out(cat([ctx, out])) split into two matmuls (no in-kernel concat)
    h2 = jnp.tanh(
        jnp.dot(ctx2, woc_ref[...], preferred_element_type=f32)
        + jnp.dot(out2d, woo_ref[...], preferred_element_type=f32)
        + bo_ref[...])

    logits = jnp.dot(h2.astype(MXU_DTYPE), wvoc_ref[...],
                     preferred_element_type=f32) + bvoc_ref[...]
    lmax = jnp.max(logits, axis=-1, keepdims=True)
    lse = jnp.log(jnp.sum(jnp.exp(logits - lmax), axis=-1, keepdims=True)) + lmax
    logp_ref[...] = (logits - lse).reshape(Bb, T, V)


# ----------------------------------------------------------------------------
# Parameter init (deterministic, shapes follow the PyTorch module __init__)
# ----------------------------------------------------------------------------
def init_params(key, vocab_size, embed_size, enc_hidden_size, dec_hidden_size):
    H, E, V, C = dec_hidden_size, embed_size, vocab_size, 2 * enc_hidden_size
    ks = jax.random.split(key, 16)
    n = lambda k, shape: (jax.random.normal(k, shape, jnp.float32) * 0.1)
    return {
        'embed':   n(ks[0], (V, E)),
        # GRU layer 0 (input = embed), layer 1 (input = H); gate order r,z,n
        'w_ih_l0': n(ks[1], (3 * H, E)), 'w_hh_l0': n(ks[2], (3 * H, H)),
        'b_ih_l0': n(ks[3], (3 * H,)),   'b_hh_l0': n(ks[4], (3 * H,)),
        'w_ih_l1': n(ks[5], (3 * H, H)), 'w_hh_l1': n(ks[6], (3 * H, H)),
        'b_ih_l1': n(ks[7], (3 * H,)),   'b_hh_l1': n(ks[8], (3 * H,)),
        # Attention
        'Wk':   n(ks[9],  (H, C)),
        'Wq':   n(ks[10], (H, H)),
        'Wv':   n(ks[11], (C, C)),
        'Wout': n(ks[12], (H, C + H)),
        'bout': n(ks[13], (H,)),
        # output projection
        'Wvoc': n(ks[14], (V, H)),
        'bvoc': n(ks[15], (V,)),
    }


# ----------------------------------------------------------------------------
# Decoder forward: thin glue + one fused pallas_call.  Fully jittable (no host
# sync): runs to static T = y.shape[1]; masking handles shorter sequences.
# ----------------------------------------------------------------------------
def decoder_forward(params, encoder_context, x_lengths, y, y_lengths, hid,
                    *, batch_block=None):
    del x_lengths  # only feeds create_mask, whose masked_fill result is discarded
    B, T = y.shape
    H = hid.shape[-1]
    E = params['embed'].shape[1]
    S = encoder_context.shape[1]
    C = encoder_context.shape[2]
    V = params['embed'].shape[0]
    mxu, f32 = MXU_DTYPE, jnp.float32

    # embedding gathered directly time-major (no (B,T,E)->(T,B,E) HBM transpose)
    # + dropout (eval -> identity)
    emb_tm = params['embed'][y.T].astype(mxu)                    # (T, B, E)
    lens2d = y_lengths.astype(jnp.int32).reshape(B, 1)           # (B, 1)

    # pre-transposed weights; matmul operands shipped bf16, biases f32
    wih0 = jnp.transpose(params['w_ih_l0']).astype(mxu)          # (E, 3H)
    whh0 = jnp.transpose(params['w_hh_l0']).astype(mxu)          # (H, 3H)
    bih0 = params['b_ih_l0'].reshape(1, -1).astype(f32)
    bhh0 = params['b_hh_l0'].reshape(1, -1).astype(f32)
    w1x = jnp.transpose(params['w_ih_l1']).astype(mxu)           # (H, 3H)
    w1h = jnp.transpose(params['w_hh_l1']).astype(mxu)           # (H, 3H)
    b1i = params['b_ih_l1'].reshape(1, -1).astype(f32)
    b1h = params['b_hh_l1'].reshape(1, -1).astype(f32)
    wk = jnp.transpose(params['Wk']).astype(mxu)                 # (C, H)
    wq = jnp.transpose(params['Wq']).astype(mxu)                 # (H, H)
    wv = jnp.transpose(params['Wv']).astype(mxu)                 # (C, C)
    woc = jnp.transpose(params['Wout'][:, :C]).astype(mxu)       # (C, H)
    woo = jnp.transpose(params['Wout'][:, C:]).astype(mxu)       # (H, H)
    bo = params['bout'].reshape(1, -1).astype(f32)
    wvoc = jnp.transpose(params['Wvoc']).astype(mxu)             # (H, V)
    bvoc = params['bvoc'].reshape(1, -1).astype(f32)

    # One batch block per grid step.  v7x note: pick batch_block <= ceil(B/2)
    # (ideally a multiple of 8) so the "parallel" axis uses both TensorCores;
    # on single-TC v5e/v6e one big block (the default) is best.
    Bb = B if batch_block is None else int(batch_block)
    nb = pl.cdiv(B, Bb)

    grid_spec = pltpu.PrefetchScalarGridSpec(
        num_scalar_prefetch=0,
        grid=(nb,),
        in_specs=[
            pl.BlockSpec((Bb, 1), lambda b: (b, 0)),             # y_lengths
            pl.BlockSpec((T, Bb, E), lambda b: (0, b, 0)),       # embeddings
            pl.BlockSpec((2, Bb, H), lambda b: (0, b, 0)),       # init hidden
            pl.BlockSpec((Bb, S, C), lambda b: (b, 0, 0)),       # encoder ctx
            # grid-invariant weights / biases
            pl.BlockSpec((E, 3 * H), lambda b: (0, 0)),
            pl.BlockSpec((H, 3 * H), lambda b: (0, 0)),
            pl.BlockSpec((1, 3 * H), lambda b: (0, 0)),
            pl.BlockSpec((1, 3 * H), lambda b: (0, 0)),
            pl.BlockSpec((H, 3 * H), lambda b: (0, 0)),
            pl.BlockSpec((H, 3 * H), lambda b: (0, 0)),
            pl.BlockSpec((1, 3 * H), lambda b: (0, 0)),
            pl.BlockSpec((1, 3 * H), lambda b: (0, 0)),
            pl.BlockSpec((C, H), lambda b: (0, 0)),
            pl.BlockSpec((H, H), lambda b: (0, 0)),
            pl.BlockSpec((C, C), lambda b: (0, 0)),
            pl.BlockSpec((C, H), lambda b: (0, 0)),
            pl.BlockSpec((H, H), lambda b: (0, 0)),
            pl.BlockSpec((1, H), lambda b: (0, 0)),
            pl.BlockSpec((H, V), lambda b: (0, 0)),
            pl.BlockSpec((1, V), lambda b: (0, 0)),
        ],
        out_specs=(
            pl.BlockSpec((Bb, T, V), lambda b: (b, 0, 0)),       # log-probs
            pl.BlockSpec((2, Bb, H), lambda b: (0, b, 0)),       # final hidden
            pl.BlockSpec((Bb, T, S), lambda b: (b, 0, 0)),       # attention
        ),
        scratch_shapes=[
            pltpu.VMEM((Bb, H), f32),           # h0 state
            pltpu.VMEM((Bb, H), f32),           # h1 state
            pltpu.VMEM((T, Bb, H), f32),        # GRU outputs (never hit HBM)
            pltpu.VMEM((T, Bb, 3 * H), f32),    # hoisted layer-0 projection
        ],
    )

    logp, hid_new, attn = pl.pallas_call(
        _decoder_kernel,
        out_shape=(jax.ShapeDtypeStruct((B, T, V), f32),
                   jax.ShapeDtypeStruct((2, B, H), f32),
                   jax.ShapeDtypeStruct((B, T, S), f32)),
        grid_spec=grid_spec,
        compiler_params=pltpu.CompilerParams(
            dimension_semantics=("parallel",),
            vmem_limit_bytes=64 * 1024 * 1024),
    )(lens2d, emb_tm, hid.astype(f32), encoder_context.astype(mxu),
      wih0, whh0, bih0, bhh0, w1x, w1h, b1i, b1h,
      wk, wq, wv, woc, woo, bo, wvoc, bvoc)

    return logp, hid_new, attn


# ----------------------------------------------------------------------------
# Pure-JAX f32 reference (for correctness check)
# ----------------------------------------------------------------------------
def decoder_reference(params, encoder_context, x_lengths, y, y_lengths, hid):
    del x_lengths
    H = hid.shape[-1]
    T = y.shape[1]
    emb = params['embed'][y]
    mask = (jnp.arange(T)[None, :] < y_lengths[:, None]).astype(jnp.float32)

    def cell(x, h, wih, whh, bih, bhh):
        gi = x @ wih.T + bih
        gh = h @ whh.T + bhh
        r = jax.nn.sigmoid(gi[:, :H] + gh[:, :H])
        z = jax.nn.sigmoid(gi[:, H:2 * H] + gh[:, H:2 * H])
        n = jnp.tanh(gi[:, 2 * H:] + r * gh[:, 2 * H:])
        return (1 - z) * n + z * h

    def step(carry, inp):
        h0, h1 = carry
        x_t, m_t = inp
        m = m_t[:, None]
        h0n = cell(x_t, h0, params['w_ih_l0'], params['w_hh_l0'],
                   params['b_ih_l0'], params['b_hh_l0'])
        h0u = m * h0n + (1 - m) * h0
        h1n = cell(h0u, h1, params['w_ih_l1'], params['w_hh_l1'],
                   params['b_ih_l1'], params['b_hh_l1'])
        h1u = m * h1n + (1 - m) * h1
        return (h0u, h1u), m * h1u

    (h0f, h1f), outs = jax.lax.scan(
        step, (hid[0], hid[1]),
        (jnp.transpose(emb, (1, 0, 2)), mask.T))
    out_seq = jnp.transpose(outs, (1, 0, 2))
    hid_f = jnp.stack([h0f, h1f])

    key = encoder_context @ params['Wk'].T
    qry = out_seq @ params['Wq'].T
    val = encoder_context @ params['Wv'].T
    scores = jnp.einsum('bth,bsh->bts', qry, key) / jnp.sqrt(jnp.float32(H))
    attn = jax.nn.softmax(scores, axis=-1)
    ctx2 = jnp.einsum('bts,bsd->btd', attn, val)
    cat = jnp.concatenate([ctx2, out_seq], axis=-1)
    o = jnp.tanh(cat @ params['Wout'].T + params['bout'])
    logits = o @ params['Wvoc'].T + params['bvoc']
    logp = jax.nn.log_softmax(logits, axis=-1)
    return logp, hid_f, attn


# ----------------------------------------------------------------------------
if __name__ == "__main__":
    vocab_size, embed_size = 32, 16
    enc_hidden_size, dec_hidden_size = 8, 16     # context dim = 2 * enc_hidden = 16
    num_layers = 2
    B, Ty, S = 2, 8, 12

    key = jax.random.PRNGKey(0)
    k_ctx, k_y, k_hid, k_par = jax.random.split(key, 4)

    params = init_params(k_par, vocab_size, embed_size,
                         enc_hidden_size, dec_hidden_size)

    encoder_context = jax.random.normal(
        k_ctx, (B, S, 2 * enc_hidden_size), jnp.float32)
    y = jax.random.randint(k_y, (B, Ty), 0, vocab_size, jnp.int32)
    hid = jax.random.normal(k_hid, (num_layers, B, dec_hidden_size), jnp.float32)
    x_lengths = jnp.array([12, 9], dtype=jnp.int32)
    y_lengths = jnp.array([8, 5], dtype=jnp.int32)

    fwd = jax.jit(decoder_forward)
    logp, hid_new, attn = fwd(
        params, encoder_context, x_lengths, y, y_lengths, hid)
    jax.block_until_ready((logp, hid_new, attn))

    ref_logp, ref_hid, ref_attn = decoder_reference(
        params, encoder_context, x_lengths, y, y_lengths, hid)

    assert logp.shape == (B, Ty, vocab_size)
    assert hid_new.shape == (num_layers, B, dec_hidden_size)
    assert attn.shape == (B, Ty, S)
    # tolerances relaxed vs. the pure-f32 path because MXU operands are bf16
    # (f32 accumulation), per the performance review.
    assert jnp.allclose(logp, ref_logp, atol=3e-2), "logp mismatch"
    assert jnp.allclose(hid_new, ref_hid, atol=3e-2), "hid mismatch"
    assert jnp.allclose(attn, ref_attn, atol=1e-2), "attn mismatch"

    print("KERNEL_OK")
</pallas_src>

<mosaic_0001>
module attributes {stable_mosaic.version = 11 : i64} {
  func.func @_decoder_kernel(%arg0: i32, %arg1: memref<2x1xi32, #tpu.memory_space<vmem>>, %arg2: memref<8x2x16xbf16, #tpu.memory_space<vmem>>, %arg3: memref<2x2x16xf32, #tpu.memory_space<vmem>>, %arg4: memref<2x12x16xbf16, #tpu.memory_space<vmem>>, %arg5: memref<16x48xbf16, #tpu.memory_space<vmem>>, %arg6: memref<16x48xbf16, #tpu.memory_space<vmem>>, %arg7: memref<1x48xf32, #tpu.memory_space<vmem>>, %arg8: memref<1x48xf32, #tpu.memory_space<vmem>>, %arg9: memref<16x48xbf16, #tpu.memory_space<vmem>>, %arg10: memref<16x48xbf16, #tpu.memory_space<vmem>>, %arg11: memref<1x48xf32, #tpu.memory_space<vmem>>, %arg12: memref<1x48xf32, #tpu.memory_space<vmem>>, %arg13: memref<16x16xbf16, #tpu.memory_space<vmem>>, %arg14: memref<16x16xbf16, #tpu.memory_space<vmem>>, %arg15: memref<16x16xbf16, #tpu.memory_space<vmem>>, %arg16: memref<16x16xbf16, #tpu.memory_space<vmem>>, %arg17: memref<16x16xbf16, #tpu.memory_space<vmem>>, %arg18: memref<1x16xf32, #tpu.memory_space<vmem>>, %arg19: memref<16x32xbf16, #tpu.memory_space<vmem>>, %arg20: memref<1x32xf32, #tpu.memory_space<vmem>>, %arg21: memref<2x8x32xf32, #tpu.memory_space<vmem>>, %arg22: memref<2x2x16xf32, #tpu.memory_space<vmem>>, %arg23: memref<2x8x12xf32, #tpu.memory_space<vmem>>, %arg24: memref<2x16xf32, #tpu.memory_space<vmem>>, %arg25: memref<2x16xf32, #tpu.memory_space<vmem>>, %arg26: memref<8x2x16xf32, #tpu.memory_space<vmem>>, %arg27: memref<8x2x48xf32, #tpu.memory_space<vmem>>) attributes {dimension_semantics = [#tpu.dimension_semantics<parallel>], iteration_bounds = array<i64: 1>, scalar_prefetch = 0 : i64, scratch_operands = 4 : i64, tpu.core_type = #tpu.core_type<tc>, window_params = [{transform_indices = @transform_0, window_bounds = array<i64: 2, 1>}, {transform_indices = @transform_1, window_bounds = array<i64: 8, 2, 16>}, {transform_indices = @transform_2, window_bounds = array<i64: 2, 2, 16>}, {transform_indices = @transform_3, window_bounds = array<i64: 2, 12, 16>}, {pipeline_mode = #tpu.pipeline_mode<synchronous>, transform_indices = @transform_4, window_bounds = array<i64: 16, 48>}, {pipeline_mode = #tpu.pipeline_mode<synchronous>, transform_indices = @transform_5, window_bounds = array<i64: 16, 48>}, {pipeline_mode = #tpu.pipeline_mode<synchronous>, transform_indices = @transform_6, window_bounds = array<i64: 1, 48>}, {pipeline_mode = #tpu.pipeline_mode<synchronous>, transform_indices = @transform_7, window_bounds = array<i64: 1, 48>}, {pipeline_mode = #tpu.pipeline_mode<synchronous>, transform_indices = @transform_8, window_bounds = array<i64: 16, 48>}, {pipeline_mode = #tpu.pipeline_mode<synchronous>, transform_indices = @transform_9, window_bounds = array<i64: 16, 48>}, {pipeline_mode = #tpu.pipeline_mode<synchronous>, transform_indices = @transform_10, window_bounds = array<i64: 1, 48>}, {pipeline_mode = #tpu.pipeline_mode<synchronous>, transform_indices = @transform_11, window_bounds = array<i64: 1, 48>}, {pipeline_mode = #tpu.pipeline_mode<synchronous>, transform_indices = @transform_12, window_bounds = array<i64: 16, 16>}, {pipeline_mode = #tpu.pipeline_mode<synchronous>, transform_indices = @transform_13, window_bounds = array<i64: 16, 16>}, {pipeline_mode = #tpu.pipeline_mode<synchronous>, transform_indices = @transform_14, window_bounds = array<i64: 16, 16>}, {pipeline_mode = #tpu.pipeline_mode<synchronous>, transform_indices = @transform_15, window_bounds = array<i64: 16, 16>}, {pipeline_mode = #tpu.pipeline_mode<synchronous>, transform_indices = @transform_16, window_bounds = array<i64: 16, 16>}, {pipeline_mode = #tpu.pipeline_mode<synchronous>, transform_indices = @transform_17, window_bounds = array<i64: 1, 16>}, {pipeline_mode = #tpu.pipeline_mode<synchronous>, transform_indices = @transform_18, window_bounds = array<i64: 16, 32>}, {pipeline_mode = #tpu.pipeline_mode<synchronous>, transform_indices = @transform_19, window_bounds = array<i64: 1, 32>}, {transform_indices = @transform_20, window_bounds = array<i64: 2, 8, 32>}, {transform_indices = @transform_21, window_bounds = array<i64: 2, 2, 16>}, {transform_indices = @transform_22, window_bounds = array<i64: 2, 8, 12>}]} {
    %c0 = arith.constant 0 : index
    %c0_0 = arith.constant 0 : index
    %0 = vector.load %arg1[%c0, %c0_0] : memref<2x1xi32, #tpu.memory_space<vmem>>, vector<2x1xi32>
    %c0_1 = arith.constant 0 : index
    %c0_2 = arith.constant 0 : index
    %c0_3 = arith.constant 0 : index
    %1 = vector.load %arg2[%c0_1, %c0_2, %c0_3] : memref<8x2x16xbf16, #tpu.memory_space<vmem>>, vector<8x2x16xbf16>
    %2 = vector.shape_cast %1 : vector<8x2x16xbf16> to vector<16x16xbf16>
    %c0_4 = arith.constant 0 : index
    %c0_5 = arith.constant 0 : index
    %3 = vector.load %arg5[%c0_4, %c0_5] : memref<16x48xbf16, #tpu.memory_space<vmem>>, vector<16x48xbf16>
    %cst = arith.constant dense<0.000000e+00> : vector<16x48xf32>
    %4 = tpu.matmul %2, %3, %cst {dimension_numbers = #tpu.dot_dimension_numbers<[1], [0], [0], [1], [0, 0, 1, 1], [], []>} : vector<16x16xbf16>, vector<16x48xbf16>, vector<16x48xf32> -> vector<16x48xf32>
    %c0_6 = arith.constant 0 : index
    %c0_7 = arith.constant 0 : index
    %5 = vector.load %arg7[%c0_6, %c0_7] : memref<1x48xf32, #tpu.memory_space<vmem>>, vector<1x48xf32>
    %6 = vector.broadcast %5 : vector<1x48xf32> to vector<16x48xf32>
    %7 = arith.addf %4, %6 : vector<16x48xf32>
    %8 = vector.shape_cast %7 : vector<16x48xf32> to vector<8x2x48xf32>
    %c0_8 = arith.constant 0 : index
    %c0_9 = arith.constant 0 : index
    %c0_10 = arith.constant 0 : index
    %9 = vector.load %arg27[%c0_8, %c0_9, %c0_10] : memref<8x2x48xf32, #tpu.memory_space<vmem>>, vector<8x2x48xf32>
    tpu.vector_store %arg27[%c0_8, %c0_9, %c0_10], %8 {strides = array<i32>} : memref<8x2x48xf32, #tpu.memory_space<vmem>>, vector<8x2x48xf32>,
    %c0_11 = arith.constant 0 : index
    %c0_12 = arith.constant 0 : index
    %10 = vector.load %arg6[%c0_11, %c0_12] : memref<16x48xbf16, #tpu.memory_space<vmem>>, vector<16x48xbf16>
    %c0_13 = arith.constant 0 : index
    %c0_14 = arith.constant 0 : index
    %11 = vector.load %arg8[%c0_13, %c0_14] : memref<1x48xf32, #tpu.memory_space<vmem>>, vector<1x48xf32>
    %c0_15 = arith.constant 0 : index
    %c0_16 = arith.constant 0 : index
    %12 = vector.load %arg9[%c0_15, %c0_16] : memref<16x48xbf16, #tpu.memory_space<vmem>>, vector<16x48xbf16>
    %c0_17 = arith.constant 0 : index
    %c0_18 = arith.constant 0 : index
    %13 = vector.load %arg10[%c0_17, %c0_18] : memref<16x48xbf16, #tpu.memory_space<vmem>>, vector<16x48xbf16>
    %c0_19 = arith.constant 0 : index
    %c0_20 = arith.constant 0 : index
    %14 = vector.load %arg11[%c0_19, %c0_20] : memref<1x48xf32, #tpu.memory_space<vmem>>, vector<1x48xf32>
    %c0_21 = arith.constant 0 : index
    %c0_22 = arith.constant 0 : index
    %15 = vector.load %arg12[%c0_21, %c0_22] : memref<1x48xf32, #tpu.memory_space<vmem>>, vector<1x48xf32>
    %c0_23 = arith.constant 0 : index
    %c0_24 = arith.constant 0 : index
    %c0_25 = arith.constant 0 : index
    %16 = vector.load %arg3[%c0_23, %c0_24, %c0_25] : memref<2x2x16xf32, #tpu.memory_space<vmem>>, vector<1x2x16xf32>
    %17 = vector.shape_cast %16 : vector<1x2x16xf32> to vector<2x16xf32>
    %c0_26 = arith.constant 0 : index
    %c0_27 = arith.constant 0 : index
    %18 = vector.load %arg24[%c0_26, %c0_27] : memref<2x16xf32, #tpu.memory_space<vmem>>, vector<2x16xf32>
    tpu.vector_store %arg24[%c0_26, %c0_27], %17 {strides = array<i32>} : memref<2x16xf32, #tpu.memory_space<vmem>>, vector<2x16xf32>,
    %c1 = arith.constant 1 : index
    %c0_28 = arith.constant 0 : index
    %c0_29 = arith.constant 0 : index
    %19 = vector.load %arg3[%c1, %c0_28, %c0_29] : memref<2x2x16xf32, #tpu.memory_space<vmem>>, vector<1x2x16xf32>
    %20 = vector.shape_cast %19 : vector<1x2x16xf32> to vector<2x16xf32>
    %c0_30 = arith.constant 0 : index
    %c0_31 = arith.constant 0 : index
    %21 = vector.load %arg25[%c0_30, %c0_31] : memref<2x16xf32, #tpu.memory_space<vmem>>, vector<2x16xf32>
    tpu.vector_store %arg25[%c0_30, %c0_31], %20 {strides = array<i32>} : memref<2x16xf32, #tpu.memory_space<vmem>>, vector<2x16xf32>,
    %c0_i32 = arith.constant 0 : i32
    %22 = vector.broadcast %c0_i32 : i32 to vector<2x1xi32>
    %23 = arith.cmpi slt, %22, %0 : vector<2x1xi32>
    %c0_32 = arith.constant 0 : index
    %c0_33 = arith.constant 0 : index
    %24 = vector.load %arg24[%c0_32, %c0_33] : memref<2x16xf32, #tpu.memory_space<vmem>>, vector<2x16xf32>
    %c0_34 = arith.constant 0 : index
    %c0_35 = arith.constant 0 : index
    %25 = vector.load %arg25[%c0_34, %c0_35] : memref<2x16xf32, #tpu.memory_space<vmem>>, vector<2x16xf32>
    %26 = arith.index_cast %c0_i32 : i32 to index
    %c0_36 = arith.constant 0 : index
    %c0_37 = arith.constant 0 : index
    %27 = vector.load %arg27[%26, %c0_36, %c0_37] : memref<8x2x48xf32, #tpu.memory_space<vmem>>, vector<1x2x48xf32>
    %28 = vector.shape_cast %27 : vector<1x2x48xf32> to vector<2x48xf32>
    %29 = arith.truncf %24 : vector<2x16xf32> to vector<2x16xbf16>
    %cst_38 = arith.constant dense<0.000000e+00> : vector<2x48xf32>
    %30 = tpu.matmul %29, %10, %cst_38 {dimension_numbers = #tpu.dot_dimension_numbers<[1], [0], [0], [1], [0, 0, 1, 1], [], []>} : vector<2x16xbf16>, vector<16x48xbf16>, vector<2x48xf32> -> vector<2x48xf32>
    %31 = vector.broadcast %11 : vector<1x48xf32> to vector<2x48xf32>
    %32 = arith.addf %30, %31 : vector<2x48xf32>
    %33 = vector.extract_strided_slice %28 {offsets = [0, 0], sizes = [2, 16], strides = [1, 1]} : vector<2x48xf32> to vector<2x16xf32>
    %34 = vector.extract_strided_slice %32 {offsets = [0, 0], sizes = [2, 16], strides = [1, 1]} : vector<2x48xf32> to vector<2x16xf32>
    %35 = arith.addf %33, %34 : vector<2x16xf32>
    %36 = arith.negf %35 : vector<2x16xf32>
    %37 = math.exp %36 : vector<2x16xf32>
    %cst_39 = arith.constant 1.000000e+00 : f32
    %38 = vector.broadcast %cst_39 : f32 to vector<2x16xf32>
    %39 = arith.addf %38, %37 : vector<2x16xf32>
    %40 = arith.divf %38, %39 : vector<2x16xf32>
    %41 = vector.extract_strided_slice %28 {offsets = [0, 16], sizes = [2, 16], strides = [1, 1]} : vector<2x48xf32> to vector<2x16xf32>
    %42 = vector.extract_strided_slice %32 {offsets = [0, 16], sizes = [2, 16], strides = [1, 1]} : vector<2x48xf32> to vector<2x16xf32>
    %43 = arith.addf %41, %42 : vector<2x16xf32>
    %44 = arith.negf %43 : vector<2x16xf32>
    %45 = math.exp %44 : vector<2x16xf32>
    %cst_40 = arith.constant 1.000000e+00 : f32
    %46 = vector.broadcast %cst_40 : f32 to vector<2x16xf32>
    %47 = arith.addf %46, %45 : vector<2x16xf32>
    %48 = arith.divf %46, %47 : vector<2x16xf32>
    %49 = vector.extract_strided_slice %28 {offsets = [0, 32], sizes = [2, 16], strides = [1, 1]} : vector<2x48xf32> to vector<2x16xf32>
    %50 = vector.extract_strided_slice %32 {offsets = [0, 32], sizes = [2, 16], strides = [1, 1]} : vector<2x48xf32> to vector<2x16xf32>
    %51 = arith.mulf %40, %50 : vector<2x16xf32>
    %52 = arith.addf %49, %51 : vector<2x16xf32>
    %53 = math.tanh %52 : vector<2x16xf32>
    %cst_41 = arith.constant 1.000000e+00 : f32
    %54 = vector.broadcast %cst_41 : f32 to vector<2x16xf32>
    %55 = arith.subf %54, %48 : vector<2x16xf32>
    %56 = arith.mulf %55, %53 : vector<2x16xf32>
    %57 = arith.mulf %48, %24 : vector<2x16xf32>
    %58 = arith.addf %56, %57 : vector<2x16xf32>
    %59 = vector.shape_cast %23 : vector<2x1xi1> to vector<2x1xi1>
    %60 = vector.broadcast %59 : vector<2x1xi1> to vector<2x16xi1>
    %61 = arith.select %60, %58, %24 : vector<2x16xi1>, vector<2x16xf32>
    %62 = arith.truncf %61 : vector<2x16xf32> to vector<2x16xbf16>
    %cst_42 = arith.constant dense<0.000000e+00> : vector<2x48xf32>
    %63 = tpu.matmul %62, %12, %cst_42 {dimension_numbers = #tpu.dot_dimension_numbers<[1], [0], [0], [1], [0, 0, 1, 1], [], []>} : vector<2x16xbf16>, vector<16x48xbf16>, vector<2x48xf32> -> vector<2x48xf32>
    %64 = vector.broadcast %14 : vector<1x48xf32> to vector<2x48xf32>
    %65 = arith.addf %63, %64 : vector<2x48xf32>
    %66 = arith.truncf %25 : vector<2x16xf32> to vector<2x16xbf16>
    %cst_43 = arith.constant dense<0.000000e+00> : vector<2x48xf32>
    %67 = tpu.matmul %66, %13, %cst_43 {dimension_numbers = #tpu.dot_dimension_numbers<[1], [0], [0], [1], [0, 0, 1, 1], [], []>} : vector<2x16xbf16>, vector<16x48xbf16>, vector<2x48xf32> -> vector<2x48xf32>
    %68 = vector.broadcast %15 : vector<1x48xf32> to vector<2x48xf32>
    %69 = arith.addf %67, %68 : vector<2x48xf32>
    %70 = vector.extract_strided_slice %65 {offsets = [0, 0], sizes = [2, 16], strides = [1, 1]} : vector<2x48xf32> to vector<2x16xf32>
    %71 = vector.extract_strided_slice %69 {offsets = [0, 0], sizes = [2, 16], strides = [1, 1]} : vector<2x48xf32> to vector<2x16xf32>
    %72 = arith.addf %70, %71 : vector<2x16xf32>
    %73 = arith.negf %72 : vector<2x16xf32>
    %74 = math.exp %73 : vector<2x16xf32>
    %cst_44 = arith.constant 1.000000e+00 : f32
    %75 = vector.broadcast %cst_44 : f32 to vector<2x16xf32>
    %76 = arith.addf %75, %74 : vector<2x16xf32>
    %77 = arith.divf %75, %76 : vector<2x16xf32>
    %78 = vector.extract_strided_slice %65 {offsets = [0, 16], sizes = [2, 16], strides = [1, 1]} : vector<2x48xf32> to vector<2x16xf32>
    %79 = vector.extract_strided_slice %69 {offsets = [0, 16], sizes = [2, 16], strides = [1, 1]} : vector<2x48xf32> to vector<2x16xf32>
    %80 = arith.addf %78, %79 : vector<2x16xf32>
    %81 = arith.negf %80 : vector<2x16xf32>
    %82 = math.exp %81 : vector<2x16xf32>
    %cst_45 = arith.constant 1.000000e+00 : f32
    %83 = vector.broadcast %cst_45 : f32 to vector<2x16xf32>
    %84 = arith.addf %83, %82 : vector<2x16xf32>
    %85 = arith.divf %83, %84 : vector<2x16xf32>
    %86 = vector.extract_strided_slice %65 {offsets = [0, 32], sizes = [2, 16], strides = [1, 1]} : vector<2x48xf32> to vector<2x16xf32>
    %87 = vector.extract_strided_slice %69 {offsets = [0, 32], sizes = [2, 16], strides = [1, 1]} : vector<2x48xf32> to vector<2x16xf32>
    %88 = arith.mulf %77, %87 : vector<2x16xf32>
    %89 = arith.addf %86, %88 : vector<2x16xf32>
    %90 = math.tanh %89 : vector<2x16xf32>
    %cst_46 = arith.constant 1.000000e+00 : f32
    %91 = vector.broadcast %cst_46 : f32 to vector<2x16xf32>
    %92 = arith.subf %91, %85 : vector<2x16xf32>
    %93 = arith.mulf %92, %90 : vector<2x16xf32>
    %94 = arith.mulf %85, %25 : vector<2x16xf32>
    %95 = arith.addf %93, %94 : vector<2x16xf32>
    %96 = vector.shape_cast %23 : vector<2x1xi1> to vector<2x1xi1>
    %97 = vector.broadcast %96 : vector<2x1xi1> to vector<2x16xi1>
    %98 = arith.select %97, %95, %25 : vector<2x16xi1>, vector<2x16xf32>
    %c0_47 = arith.constant 0 : index
    %c0_48 = arith.constant 0 : index
    %99 = vector.load %arg24[%c0_47, %c0_48] : memref<2x16xf32, #tpu.memory_space<vmem>>, vector<2x16xf32>
    tpu.vector_store %arg24[%c0_47, %c0_48], %61 {strides = array<i32>} : memref<2x16xf32, #tpu.memory_space<vmem>>, vector<2x16xf32>,
    %c0_49 = arith.constant 0 : index
    %c0_50 = arith.constant 0 : index
    %100 = vector.load %arg25[%c0_49, %c0_50] : memref<2x16xf32, #tpu.memory_space<vmem>>, vector<2x16xf32>
    tpu.vector_store %arg25[%c0_49, %c0_50], %98 {strides = array<i32>} : memref<2x16xf32, #tpu.memory_space<vmem>>, vector<2x16xf32>,
    %cst_51 = arith.constant 0.000000e+00 : f32
    %101 = vector.shape_cast %23 : vector<2x1xi1> to vector<2x1xi1>
    %102 = vector.broadcast %101 : vector<2x1xi1> to vector<2x16xi1>
    %103 = vector.broadcast %cst_51 : f32 to vector<2x16xf32>
    %104 = arith.select %102, %98, %103 : vector<2x16xi1>, vector<2x16xf32>
    %105 = arith.index_cast %c0_i32 : i32 to index
    %c0_52 = arith.constant 0 : index
    %c0_53 = arith.constant 0 : index
    %106 = vector.load %arg26[%105, %c0_52, %c0_53] : memref<8x2x16xf32, #tpu.memory_space<vmem>>, vector<1x2x16xf32>
    %107 = vector.shape_cast %106 : vector<1x2x16xf32> to vector<2x16xf32>
    %108 = vector.shape_cast %104 : vector<2x16xf32> to vector<1x2x16xf32>
    tpu.vector_store %arg26[%105, %c0_52, %c0_53], %108 {strides = array<i32>} : memref<8x2x16xf32, #tpu.memory_space<vmem>>, vector<1x2x16xf32>,
    %c1_i32 = arith.constant 1 : i32
    %109 = vector.broadcast %c1_i32 : i32 to vector<2x1xi32>
    %110 = arith.cmpi slt, %109, %0 : vector<2x1xi32>
    %c0_54 = arith.constant 0 : index
    %c0_55 = arith.constant 0 : index
    %111 = vector.load %arg24[%c0_54, %c0_55] : memref<2x16xf32, #tpu.memory_space<vmem>>, vector<2x16xf32>
    %c0_56 = arith.constant 0 : index
    %c0_57 = arith.constant 0 : index
    %112 = vector.load %arg25[%c0_56, %c0_57] : memref<2x16xf32, #tpu.memory_space<vmem>>, vector<2x16xf32>
    %113 = arith.index_cast %c1_i32 : i32 to index
    %c0_58 = arith.constant 0 : index
    %c0_59 = arith.constant 0 : index
    %114 = vector.load %arg27[%113, %c0_58, %c0_59] : memref<8x2x48xf32, #tpu.memory_space<vmem>>, vector<1x2x48xf32>
    %115 = vector.shape_cast %114 : vector<1x2x48xf32> to vector<2x48xf32>
    %116 = arith.truncf %111 : vector<2x16xf32> to vector<2x16xbf16>
    %cst_60 = arith.constant dense<0.000000e+00> : vector<2x48xf32>
    %117 = tpu.matmul %116, %10, %cst_60 {dimension_numbers = #tpu.dot_dimension_numbers<[1], [0], [0], [1], [0, 0, 1, 1], [], []>} : vector<2x16xbf16>, vector<16x48xbf16>, vector<2x48xf32> -> vector<2x48xf32>
    %118 = vector.broadcast %11 : vector<1x48xf32> to vector<2x48xf32>
    %119 = arith.addf %117, %118 : vector<2x48xf32>
    %120 = vector.extract_strided_slice %115 {offsets = [0, 0], sizes = [2, 16], strides = [1, 1]} : vector<2x48xf32> to vector<2x16xf32>
    %121 = vector.extract_strided_slice %119 {offsets = [0, 0], sizes = [2, 16], strides = [1, 1]} : vector<2x48xf32> to vector<2x16xf32>
    %122 = arith.addf %120, %121 : vector<2x16xf32>
    %123 = arith.negf %122 : vector<2x16xf32>
    %124 = math.exp %123 : vector<2x16xf32>
    %cst_61 = arith.constant 1.000000e+00 : f32
    %125 = vector.broadcast %cst_61 : f32 to vector<2x16xf32>
    %126 = arith.addf %125, %124 : vector<2x16xf32>
    %127 = arith.divf %125, %126 : vector<2x16xf32>
    %128 = vector.extract_strided_slice %115 {offsets = [0, 16], sizes = [2, 16], strides = [1, 1]} : vector<2x48xf32> to vector<2x16xf32>
    %129 = vector.extract_strided_slice %119 {offsets = [0, 16], sizes = [2, 16], strides = [1, 1]} : vector<2x48xf32> to vector<2x16xf32>
    %130 = arith.addf %128, %129 : vector<2x16xf32>
    %131 = arith.negf %130 : vector<2x16xf32>
    %132 = math.exp %131 : vector<2x16xf32>
    %cst_62 = arith.constant 1.000000e+00 : f32
    %133 = vector.broadcast %cst_62 : f32 to vector<2x16xf32>
    %134 = arith.addf %133, %132 : vector<2x16xf32>
    %135 = arith.divf %133, %134 : vector<2x16xf32>
    %136 = vector.extract_strided_slice %115 {offsets = [0, 32], sizes = [2, 16], strides = [1, 1]} : vector<2x48xf32> to vector<2x16xf32>
    %137 = vector.extract_strided_slice %119 {offsets = [0, 32], sizes = [2, 16], strides = [1, 1]} : vector<2x48xf32> to vector<2x16xf32>
    %138 = arith.mulf %127, %137 : vector<2x16xf32>
    %139 = arith.addf %136, %138 : vector<2x16xf32>
    %140 = math.tanh %139 : vector<2x16xf32>
    %cst_63 = arith.constant 1.000000e+00 : f32
    %141 = vector.broadcast %cst_63 : f32 to vector<2x16xf32>
    %142 = arith.subf %141, %135 : vector<2x16xf32>
    %143 = arith.mulf %142, %140 : vector<2x16xf32>
    %144 = arith.mulf %135, %111 : vector<2x16xf32>
    %145 = arith.addf %143, %144 : vector<2x16xf32>
    %146 = vector.shape_cast %110 : vector<2x1xi1> to vector<2x1xi1>
    %147 = vector.broadcast %146 : vector<2x1xi1> to vector<2x16xi1>
    %148 = arith.select %147, %145, %111 : vector<2x16xi1>, vector<2x16xf32>
    %149 = arith.truncf %148 : vector<2x16xf32> to vector<2x16xbf16>
    %cst_64 = arith.constant dense<0.000000e+00> : vector<2x48xf32>
    %150 = tpu.matmul %149, %12, %cst_64 {dimension_numbers = #tpu.dot_dimension_numbers<[1], [0], [0], [1], [0, 0, 1, 1], [], []>} : vector<2x16xbf16>, vector<16x48xbf16>, vector<2x48xf32> -> vector<2x48xf32>
    %151 = vector.broadcast %14 : vector<1x48xf32> to vector<2x48xf32>
    %152 = arith.addf %150, %151 : vector<2x48xf32>
    %153 = arith.truncf %112 : vector<2x16xf32> to vector<2x16xbf16>
    %cst_65 = arith.constant dense<0.000000e+00> : vector<2x48xf32>
    %154 = tpu.matmul %153, %13, %cst_65 {dimension_numbers = #tpu.dot_dimension_numbers<[1], [0], [0], [1], [0, 0, 1, 1], [], []>} : vector<2x16xbf16>, vector<16x48xbf16>, vector<2x48xf32> -> vector<2x48xf32>
    %155 = vector.broadcast %15 : vector<1x48xf32> to vector<2x48xf32>
    %156 = arith.addf %154, %155 : vector<2x48xf32>
    %157 = vector.extract_strided_slice %152 {offsets = [0, 0], sizes = [2, 16], strides = [1, 1]} : vector<2x48xf32> to vector<2x16xf32>
    %158 = vector.extract_strided_slice %156 {offsets = [0, 0], sizes = [2, 16], strides = [1, 1]} : vector<2x48xf32> to vector<2x16xf32>
    %159 = arith.addf %157, %158 : vector<2x16xf32>
    %160 = arith.negf %159 : vector<2x16xf32>
    %161 = math.exp %160 : vector<2x16xf32>
    %cst_66 = arith.constant 1.000000e+00 : f32
    %162 = vector.broadcast %cst_66 : f32 to vector<2x16xf32>
    %163 = arith.addf %162, %161 : vector<2x16xf32>
    %164 = arith.divf %162, %163 : vector<2x16xf32>
    %165 = vector.extract_strided_slice %152 {offsets = [0, 16], sizes = [2, 16], strides = [1, 1]} : vector<2x48xf32> to vector<2x16xf32>
    %166 = vector.extract_strided_slice %156 {offsets = [0, 16], sizes = [2, 16], strides = [1, 1]} : vector<2x48xf32> to vector<2x16xf32>
    %167 = arith.addf %165, %166 : vector<2x16xf32>
    %168 = arith.negf %167 : vector<2x16xf32>
    %169 = math.exp %168 : vector<2x16xf32>
    %cst_67 = arith.constant 1.000000e+00 : f32
    %170 = vector.broadcast %cst_67 : f32 to vector<2x16xf32>
    %171 = arith.addf %170, %169 : vector<2x16xf32>
    %172 = arith.divf %170, %171 : vector<2x16xf32>
    %173 = vector.extract_strided_slice %152 {offsets = [0, 32], sizes = [2, 16], strides = [1, 1]} : vector<2x48xf32> to vector<2x16xf32>
    %174 = vector.extract_strided_slice %156 {offsets = [0, 32], sizes = [2, 16], strides = [1, 1]} : vector<2x48xf32> to vector<2x16xf32>
    %175 = arith.mulf %164, %174 : vector<2x16xf32>
    %176 = arith.addf %173, %175 : vector<2x16xf32>
    %177 = math.tanh %176 : vector<2x16xf32>
    %cst_68 = arith.constant 1.000000e+00 : f32
    %178 = vector.broadcast %cst_68 : f32 to vector<2x16xf32>
    %179 = arith.subf %178, %172 : vector<2x16xf32>
    %180 = arith.mulf %179, %177 : vector<2x16xf32>
    %181 = arith.mulf %172, %112 : vector<2x16xf32>
    %182 = arith.addf %180, %181 : vector<2x16xf32>
    %183 = vector.shape_cast %110 : vector<2x1xi1> to vector<2x1xi1>
    %184 = vector.broadcast %183 : vector<2x1xi1> to vector<2x16xi1>
    %185 = arith.select %184, %182, %112 : vector<2x16xi1>, vector<2x16xf32>
    %c0_69 = arith.constant 0 : index
    %c0_70 = arith.constant 0 : index
    %186 = vector.load %arg24[%c0_69, %c0_70] : memref<2x16xf32, #tpu.memory_space<vmem>>, vector<2x16xf32>
    tpu.vector_store %arg24[%c0_69, %c0_70], %148 {strides = array<i32>} : memref<2x16xf32, #tpu.memory_space<vmem>>, vector<2x16xf32>,
    %c0_71 = arith.constant 0 : index
    %c0_72 = arith.constant 0 : index
    %187 = vector.load %arg25[%c0_71, %c0_72] : memref<2x16xf32, #tpu.memory_space<vmem>>, vector<2x16xf32>
    tpu.vector_store %arg25[%c0_71, %c0_72], %185 {strides = array<i32>} : memref<2x16xf32, #tpu.memory_space<vmem>>, vector<2x16xf32>,
    %cst_73 = arith.constant 0.000000e+00 : f32
    %188 = vector.shape_cast %110 : vector<2x1xi1> to vector<2x1xi1>
    %189 = vector.broadcast %188 : vector<2x1xi1> to vector<2x16xi1>
    %190 = vector.broadcast %cst_73 : f32 to vector<2x16xf32>
    %191 = arith.select %189, %185, %190 : vector<2x16xi1>, vector<2x16xf32>
    %192 = arith.index_cast %c1_i32 : i32 to index
    %c0_74 = arith.constant 0 : index
    %c0_75 = arith.constant 0 : index
    %193 = vector.load %arg26[%192, %c0_74, %c0_75] : memref<8x2x16xf32, #tpu.memory_space<vmem>>, vector<1x2x16xf32>
    %194 = vector.shape_cast %193 : vector<1x2x16xf32> to vector<2x16xf32>
    %195 = vector.shape_cast %191 : vector<2x16xf32> to vector<1x2x16xf32>
    tpu.vector_store %arg26[%192, %c0_74, %c0_75], %195 {strides = array<i32>} : memref<8x2x16xf32, #tpu.memory_space<vmem>>, vector<1x2x16xf32>,
    %c2_i32 = arith.constant 2 : i32
    %196 = vector.broadcast %c2_i32 : i32 to vector<2x1xi32>
    %197 = arith.cmpi slt, %196, %0 : vector<2x1xi32>
    %c0_76 = arith.constant 0 : index
    %c0_77 = arith.constant 0 : index
    %198 = vector.load %arg24[%c0_76, %c0_77] : memref<2x16xf32, #tpu.memory_space<vmem>>, vector<2x16xf32>
    %c0_78 = arith.constant 0 : index
    %c0_79 = arith.constant 0 : index
    %199 = vector.load %arg25[%c0_78, %c0_79] : memref<2x16xf32, #tpu.memory_space<vmem>>, vector<2x16xf32>
    %200 = arith.index_cast %c2_i32 : i32 to index
    %c0_80 = arith.constant 0 : index
    %c0_81 = arith.constant 0 : index
    %201 = vector.load %arg27[%200, %c0_80, %c0_81] : memref<8x2x48xf32, #tpu.memory_space<vmem>>, vector<1x2x48xf32>
    %202 = vector.shape_cast %201 : vector<1x2x48xf32> to vector<2x48xf32>
    %203 = arith.truncf %198 : vector<2x16xf32> to vector<2x16xbf16>
    %cst_82 = arith.constant dense<0.000000e+00> : vector<2x48xf32>
    %204 = tpu.matmul %203, %10, %cst_82 {dimension_numbers = #tpu.dot_dimension_numbers<[1], [0], [0], [1], [0, 0, 1, 1], [], []>} : vector<2x16xbf16>, vector<16x48xbf16>, vector<2x48xf32> -> vector<2x48xf32>
    %205 = vector.broadcast %11 : vector<1x48xf32> to vector<2x48xf32>
    %206 = arith.addf %204, %205 : vector<2x48xf32>
    %207 = vector.extract_strided_slice %202 {offsets = [0, 0], sizes = [2, 16], strides = [1, 1]} : vector<2x48xf32> to vector<2x16xf32>
    %208 = vector.extract_strided_slice %206 {offsets = [0, 0], sizes = [2, 16], strides = [1, 1]} : vector<2x48xf32> to vector<2x16xf32>
    %209 = arith.addf %207, %208 : vector<2x16xf32>
    %210 = arith.negf %209 : vector<2x16xf32>
    %211 = math.exp %210 : vector<2x16xf32>
    %cst_83 = arith.constant 1.000000e+00 : f32
    %212 = vector.broadcast %cst_83 : f32 to vector<2x16xf32>
    %213 = arith.addf %212, %211 : vector<2x16xf32>
    %214 = arith.divf %212, %213 : vector<2x16xf32>
    %215 = vector.extract_strided_slice %202 {offsets = [0, 16], sizes = [2, 16], strides = [1, 1]} : vector<2x48xf32> to vector<2x16xf32>
    %216 = vector.extract_strided_slice %206 {offsets = [0, 16], sizes = [2, 16], strides = [1, 1]} : vector<2x48xf32> to vector<2x16xf32>
    %217 = arith.addf %215, %216 : vector<2x16xf32>
    %218 = arith.negf %217 : vector<2x16xf32>
    %219 = math.exp %218 : vector<2x16xf32>
    %cst_84 = arith.constant 1.000000e+00 : f32
    %220 = vector.broadcast %cst_84 : f32 to vector<2x16xf32>
    %221 = arith.addf %220, %219 : vector<2x16xf32>
    %222 = arith.divf %220, %221 : vector<2x16xf32>
    %223 = vector.extract_strided_slice %202 {offsets = [0, 32], sizes = [2, 16], strides = [1, 1]} : vector<2x48xf32> to vector<2x16xf32>
    %224 = vector.extract_strided_slice %206 {offsets = [0, 32], sizes = [2, 16], strides = [1, 1]} : vector<2x48xf32> to vector<2x16xf32>
    %225 = arith.mulf %214, %224 : vector<2x16xf32>
    %226 = arith.addf %223, %225 : vector<2x16xf32>
    %227 = math.tanh %226 : vector<2x16xf32>
    %cst_85 = arith.constant 1.000000e+00 : f32
    %228 = vector.broadcast %cst_85 : f32 to vector<2x16xf32>
    %229 = arith.subf %228, %222 : vector<2x16xf32>
    %230 = arith.mulf %229, %227 : vector<2x16xf32>
    %231 = arith.mulf %222, %198 : vector<2x16xf32>
    %232 = arith.addf %230, %231 : vector<2x16xf32>
    %233 = vector.shape_cast %197 : vector<2x1xi1> to vector<2x1xi1>
    %234 = vector.broadcast %233 : vector<2x1xi1> to vector<2x16xi1>
    %235 = arith.select %234, %232, %198 : vector<2x16xi1>, vector<2x16xf32>
    %236 = arith.truncf %235 : vector<2x16xf32> to vector<2x16xbf16>
    %cst_86 = arith.constant dense<0.000000e+00> : vector<2x48xf32>
    %237 = tpu.matmul %236, %12, %cst_86 {dimension_numbers = #tpu.dot_dimension_numbers<[1], [0], [0], [1], [0, 0, 1, 1], [], []>} : vector<2x16xbf16>, vector<16x48xbf16>, vector<2x48xf32> -> vector<2x48xf32>
    %238 = vector.broadcast %14 : vector<1x48xf32> to vector<2x48xf32>
    %239 = arith.addf %237, %238 : vector<2x48xf32>
    %240 = arith.truncf %199 : vector<2x16xf32> to vector<2x16xbf16>
    %cst_87 = arith.constant dense<0.000000e+00> : vector<2x48xf32>
    %241 = tpu.matmul %240, %13, %cst_87 {dimension_numbers = #tpu.dot_dimension_numbers<[1], [0], [0], [1], [0, 0, 1, 1], [], []>} : vector<2x16xbf16>, vector<16x48xbf16>, vector<2x48xf32> -> vector<2x48xf32>
    %242 = vector.broadcast %15 : vector<1x48xf32> to vector<2x48xf32>
    %243 = arith.addf %241, %242 : vector<2x48xf32>
    %244 = vector.extract_strided_slice %239 {offsets = [0, 0], sizes = [2, 16], strides = [1, 1]} : vector<2x48xf32> to vector<2x16xf32>
    %245 = vector.extract_strided_slice %243 {offsets = [0, 0], sizes = [2, 16], strides = [1, 1]} : vector<2x48xf32> to vector<2x16xf32>
    %246 = arith.addf %244, %245 : vector<2x16xf32>
    %247 = arith.negf %246 : vector<2x16xf32>
    %248 = math.exp %247 : vector<2x16xf32>
    %cst_88 = arith.constant 1.000000e+00 : f32
    %249 = vector.broadcast %cst_88 : f32 to vector<2x16xf32>
    %250 = arith.addf %249, %248 : vector<2x16xf32>
    %251 = arith.divf %249, %250 : vector<2x16xf32>
    %252 = vector.extract_strided_slice %239 {offsets = [0, 16], sizes = [2, 16], strides = [1, 1]} : vector<2x48xf32> to vector<2x16xf32>
    %253 = vector.extract_strided_slice %243 {offsets = [0, 16], sizes = [2, 16], strides = [1, 1]} : vector<2x48xf32> to vector<2x16xf32>
    %254 = arith.addf %252, %253 : vector<2x16xf32>
    %255 = arith.negf %254 : vector<2x16xf32>
    %256 = math.exp %255 : vector<2x16xf32>
    %cst_89 = arith.constant 1.000000e+00 : f32
    %257 = vector.broadcast %cst_89 : f32 to vector<2x16xf32>
    %258 = arith.addf %257, %256 : vector<2x16xf32>
    %259 = arith.divf %257, %258 : vector<2x16xf32>
    %260 = vector.extract_strided_slice %239 {offsets = [0, 32], sizes = [2, 16], strides = [1, 1]} : vector<2x48xf32> to vector<2x16xf32>
    %261 = vector.extract_strided_slice %243 {offsets = [0, 32], sizes = [2, 16], strides = [1, 1]} : vector<2x48xf32> to vector<2x16xf32>
    %262 = arith.mulf %251, %261 : vector<2x16xf32>
    %263 = arith.addf %260, %262 : vector<2x16xf32>
    %264 = math.tanh %263 : vector<2x16xf32>
    %cst_90 = arith.constant 1.000000e+00 : f32
    %265 = vector.broadcast %cst_90 : f32 to vector<2x16xf32>
    %266 = arith.subf %265, %259 : vector<2x16xf32>
    %267 = arith.mulf %266, %264 : vector<2x16xf32>
    %268 = arith.mulf %259, %199 : vector<2x16xf32>
    %269 = arith.addf %267, %268 : vector<2x16xf32>
    %270 = vector.shape_cast %197 : vector<2x1xi1> to vector<2x1xi1>
    %271 = vector.broadcast %270 : vector<2x1xi1> to vector<2x16xi1>
    %272 = arith.select %271, %269, %199 : vector<2x16xi1>, vector<2x16xf32>
    %c0_91 = arith.constant 0 : index
    %c0_92 = arith.constant 0 : index
    %273 = vector.load %arg24[%c0_91, %c0_92] : memref<2x16xf32, #tpu.memory_space<vmem>>, vector<2x16xf32>
    tpu.vector_store %arg24[%c0_91, %c0_92], %235 {strides = array<i32>} : memref<2x16xf32, #tpu.memory_space<vmem>>, vector<2x16xf32>,
    %c0_93 = arith.constant 0 : index
    %c0_94 = arith.constant 0 : index
    %274 = vector.load %arg25[%c0_93, %c0_94] : memref<2x16xf32, #tpu.memory_space<vmem>>, vector<2x16xf32>
    tpu.vector_store %arg25[%c0_93, %c0_94], %272 {strides = array<i32>} : memref<2x16xf32, #tpu.memory_space<vmem>>, vector<2x16xf32>,
    %cst_95 = arith.constant 0.000000e+00 : f32
    %275 = vector.shape_cast %197 : vector<2x1xi1> to vector<2x1xi1>
    %276 = vector.broadcast %275 : vector<2x1xi1> to vector<2x16xi1>
    %277 = vector.broadcast %cst_95 : f32 to vector<2x16xf32>
    %278 = arith.select %276, %272, %277 : vector<2x16xi1>, vector<2x16xf32>
    %279 = arith.index_cast %c2_i32 : i32 to index
    %c0_96 = arith.constant 0 : index
    %c0_97 = arith.constant 0 : index
    %280 = vector.load %arg26[%279, %c0_96, %c0_97] : memref<8x2x16xf32, #tpu.memory_space<vmem>>, vector<1x2x16xf32>
    %281 = vector.shape_cast %280 : vector<1x2x16xf32> to vector<2x16xf32>
    %282 = vector.shape_cast %278 : vector<2x16xf32> to vector<1x2x16xf32>
    tpu.vector_store %arg26[%279, %c0_96, %c0_97], %282 {strides = array<i32>} : memref<8x2x16xf32, #tpu.memory_space<vmem>>, vector<1x2x16xf32>,
    %c3_i32 = arith.constant 3 : i32
    %283 = vector.broadcast %c3_i32 : i32 to vector<2x1xi32>
    %284 = arith.cmpi slt, %283, %0 : vector<2x1xi32>
    %c0_98 = arith.constant 0 : index
    %c0_99 = arith.constant 0 : index
    %285 = vector.load %arg24[%c0_98, %c0_99] : memref<2x16xf32, #tpu.memory_space<vmem>>, vector<2x16xf32>
    %c0_100 = arith.constant 0 : index
    %c0_101 = arith.constant 0 : index
    %286 = vector.load %arg25[%c0_100, %c0_101] : memref<2x16xf32, #tpu.memory_space<vmem>>, vector<2x16xf32>
    %287 = arith.index_cast %c3_i32 : i32 to index
    %c0_102 = arith.constant 0 : index
    %c0_103 = arith.constant 0 : index
    %288 = vector.load %arg27[%287, %c0_102, %c0_103] : memref<8x2x48xf32, #tpu.memory_space<vmem>>, vector<1x2x48xf32>
    %289 = vector.shape_cast %288 : vector<1x2x48xf32> to vector<2x48xf32>
    %290 = arith.truncf %285 : vector<2x16xf32> to vector<2x16xbf16>
    %cst_104 = arith.constant dense<0.000000e+00> : vector<2x48xf32>
    %291 = tpu.matmul %290, %10, %cst_104 {dimension_numbers = #tpu.dot_dimension_numbers<[1], [0], [0], [1], [0, 0, 1, 1], [], []>} : vector<2x16xbf16>, vector<16x48xbf16>, vector<2x48xf32> -> vector<2x48xf32>
    %292 = vector.broadcast %11 : vector<1x48xf32> to vector<2x48xf32>
    %293 = arith.addf %291, %292 : vector<2x48xf32>
    %294 = vector.extract_strided_slice %289 {offsets = [0, 0], sizes = [2, 16], strides = [1, 1]} : vector<2x48xf32> to vector<2x16xf32>
    %295 = vector.extract_strided_slice %293 {offsets = [0, 0], sizes = [2, 16], strides = [1, 1]} : vector<2x48xf32> to vector<2x16xf32>
    %296 = arith.addf %294, %295 : vector<2x16xf32>
    %297 = arith.negf %296 : vector<2x16xf32>
    %298 = math.exp %297 : vector<2x16xf32>
    %cst_105 = arith.constant 1.000000e+00 : f32
    %299 = vector.broadcast %cst_105 : f32 to vector<2x16xf32>
    %300 = arith.addf %299, %298 : vector<2x16xf32>
    %301 = arith.divf %299, %300 : vector<2x16xf32>
    %302 = vector.extract_strided_slice %289 {offsets = [0, 16], sizes = [2, 16], strides = [1, 1]} : vector<2x48xf32> to vector<2x16xf32>
    %303 = vector.extract_strided_slice %293 {offsets = [0, 16], sizes = [2, 16], strides = [1, 1]} : vector<2x48xf32> to vector<2x16xf32>
    %304 = arith.addf %302, %303 : vector<2x16xf32>
    %305 = arith.negf %304 : vector<2x16xf32>
    %306 = math.exp %305 : vector<2x16xf32>
    %cst_106 = arith.constant 1.000000e+00 : f32
    %307 = vector.broadcast %cst_106 : f32 to vector<2x16xf32>
    %308 = arith.addf %307, %306 : vector<2x16xf32>
    %309 = arith.divf %307, %308 : vector<2x16xf32>
    %310 = vector.extract_strided_slice %289 {offsets = [0, 32], sizes = [2, 16], strides = [1, 1]} : vector<2x48xf32> to vector<2x16xf32>
    %311 = vector.extract_strided_slice %293 {offsets = [0, 32], sizes = [2, 16], strides = [1, 1]} : vector<2x48xf32> to vector<2x16xf32>
    %312 = arith.mulf %301, %311 : vector<2x16xf32>
    %313 = arith.addf %310, %312 : vector<2x16xf32>
    %314 = math.tanh %313 : vector<2x16xf32>
    %cst_107 = arith.constant 1.000000e+00 : f32
    %315 = vector.broadcast %cst_107 : f32 to vector<2x16xf32>
    %316 = arith.subf %315, %309 : vector<2x16xf32>
    %317 = arith.mulf %316, %314 : vector<2x16xf32>
    %318 = arith.mulf %309, %285 : vector<2x16xf32>
    %319 = arith.addf %317, %318 : vector<2x16xf32>
    %320 = vector.shape_cast %284 : vector<2x1xi1> to vector<2x1xi1>
    %321 = vector.broadcast %320 : vector<2x1xi1> to vector<2x16xi1>
    %322 = arith.select %321, %319, %285 : vector<2x16xi1>, vector<2x16xf32>
    %323 = arith.truncf %322 : vector<2x16xf32> to vector<2x16xbf16>
    %cst_108 = arith.constant dense<0.000000e+00> : vector<2x48xf32>
    %324 = tpu.matmul %323, %12, %cst_108 {dimension_numbers = #tpu.dot_dimension_numbers<[1], [0], [0], [1], [0, 0, 1, 1], [], []>} : vector<2x16xbf16>, vector<16x48xbf16>, vector<2x48xf32> -> vector<2x48xf32>
    %325 = vector.broadcast %14 : vector<1x48xf32> to vector<2x48xf32>
    %326 = arith.addf %324, %325 : vector<2x48xf32>
    %327 = arith.truncf %286 : vector<2x16xf32> to vector<2x16xbf16>
    %cst_109 = arith.constant dense<0.000000e+00> : vector<2x48xf32>
    %328 = tpu.matmul %327, %13, %cst_109 {dimension_numbers = #tpu.dot_dimension_numbers<[1], [0], [0], [1], [0, 0, 1, 1], [], []>} : vector<2x16xbf16>, vector<16x48xbf16>, vector<2x48xf32> -> vector<2x48xf32>
    %329 = vector.broadcast %15 : vector<1x48xf32> to vector<2x48xf32>
    %330 = arith.addf %328, %329 : vector<2x48xf32>
    %331 = vector.extract_strided_slice %326 {offsets = [0, 0], sizes = [2, 16], strides = [1, 1]} : vector<2x48xf32> to vector<2x16xf32>
    %332 = vector.extract_strided_slice %330 {offsets = [0, 0], sizes = [2, 16], strides = [1, 1]} : vector<2x48xf32> to vector<2x16xf32>
    %333 = arith.addf %331, %332 : vector<2x16xf32>
    %334 = arith.negf %333 : vector<2x16xf32>
    %335 = math.exp %334 : vector<2x16xf32>
    %cst_110 = arith.constant 1.000000e+00 : f32
    %336 = vector.broadcast %cst_110 : f32 to vector<2x16xf32>
    %337 = arith.addf %336, %335 : vector<2x16xf32>
    %338 = arith.divf %336, %337 : vector<2x16xf32>
    %339 = vector.extract_strided_slice %326 {offsets = [0, 16], sizes = [2, 16], strides = [1, 1]} : vector<2x48xf32> to vector<2x16xf32>
    %340 = vector.extract_strided_slice %330 {offsets = [0, 16], sizes = [2, 16], strides = [1, 1]} : vector<2x48xf32> to vector<2x16xf32>
    %341 = arith.addf %339, %340 : vector<2x16xf32>
    %342 = arith.negf %341 : vector<2x16xf32>
    %343 = math.exp %342 : vector<2x16xf32>
    %cst_111 = arith.constant 1.000000e+00 : f32
    %344 = vector.broadcast %cst_111 : f32 to vector<2x16xf32>
    %345 = arith.addf %344, %343 : vector<2x16xf32>
    %346 = arith.divf %344, %345 : vector<2x16xf32>
    %347 = vector.extract_strided_slice %326 {offsets = [0, 32], sizes = [2, 16], strides = [1, 1]} : vector<2x48xf32> to vector<2x16xf32>
    %348 = vector.extract_strided_slice %330 {offsets = [0, 32], sizes = [2, 16], strides = [1, 1]} : vector<2x48xf32> to vector<2x16xf32>
    %349 = arith.mulf %338, %348 : vector<2x16xf32>
    %350 = arith.addf %347, %349 : vector<2x16xf32>
    %351 = math.tanh %350 : vector<2x16xf32>
    %cst_112 = arith.constant 1.000000e+00 : f32
    %352 = vector.broadcast %cst_112 : f32 to vector<2x16xf32>
    %353 = arith.subf %352, %346 : vector<2x16xf32>
    %354 = arith.mulf %353, %351 : vector<2x16xf32>
    %355 = arith.mulf %346, %286 : vector<2x16xf32>
    %356 = arith.addf %354, %355 : vector<2x16xf32>
    %357 = vector.shape_cast %284 : vector<2x1xi1> to vector<2x1xi1>
    %358 = vector.broadcast %357 : vector<2x1xi1> to vector<2x16xi1>
    %359 = arith.select %358, %356, %286 : vector<2x16xi1>, vector<2x16xf32>
    %c0_113 = arith.constant 0 : index
    %c0_114 = arith.constant 0 : index
    %360 = vector.load %arg24[%c0_113, %c0_114] : memref<2x16xf32, #tpu.memory_space<vmem>>, vector<2x16xf32>
    tpu.vector_store %arg24[%c0_113, %c0_114], %322 {strides = array<i32>} : memref<2x16xf32, #tpu.memory_space<vmem>>, vector<2x16xf32>,
    %c0_115 = arith.constant 0 : index
    %c0_116 = arith.constant 0 : index
    %361 = vector.load %arg25[%c0_115, %c0_116] : memref<2x16xf32, #tpu.memory_space<vmem>>, vector<2x16xf32>
    tpu.vector_store %arg25[%c0_115, %c0_116], %359 {strides = array<i32>} : memref<2x16xf32, #tpu.memory_space<vmem>>, vector<2x16xf32>,
    %cst_117 = arith.constant 0.000000e+00 : f32
    %362 = vector.shape_cast %284 : vector<2x1xi1> to vector<2x1xi1>
    %363 = vector.broadcast %362 : vector<2x1xi1> to vector<2x16xi1>
    %364 = vector.broadcast %cst_117 : f32 to vector<2x16xf32>
    %365 = arith.select %363, %359, %364 : vector<2x16xi1>, vector<2x16xf32>
    %366 = arith.index_cast %c3_i32 : i32 to index
    %c0_118 = arith.constant 0 : index
    %c0_119 = arith.constant 0 : index
    %367 = vector.load %arg26[%366, %c0_118, %c0_119] : memref<8x2x16xf32, #tpu.memory_space<vmem>>, vector<1x2x16xf32>
    %368 = vector.shape_cast %367 : vector<1x2x16xf32> to vector<2x16xf32>
    %369 = vector.shape_cast %365 : vector<2x16xf32> to vector<1x2x16xf32>
    tpu.vector_store %arg26[%366, %c0_118, %c0_119], %369 {strides = array<i32>} : memref<8x2x16xf32, #tpu.memory_space<vmem>>, vector<1x2x16xf32>,
    %c4_i32 = arith.constant 4 : i32
    %370 = vector.broadcast %c4_i32 : i32 to vector<2x1xi32>
    %371 = arith.cmpi slt, %370, %0 : vector<2x1xi32>
    %c0_120 = arith.constant 0 : index
    %c0_121 = arith.constant 0 : index
    %372 = vector.load %arg24[%c0_120, %c0_121] : memref<2x16xf32, #tpu.memory_space<vmem>>, vector<2x16xf32>
    %c0_122 = arith.constant 0 : index
    %c0_123 = arith.constant 0 : index
    %373 = vector.load %arg25[%c0_122, %c0_123] : memref<2x16xf32, #tpu.memory_space<vmem>>, vector<2x16xf32>
    %374 = arith.index_cast %c4_i32 : i32 to index
    %c0_124 = arith.constant 0 : index
    %c0_125 = arith.constant 0 : index
    %375 = vector.load %arg27[%374, %c0_124, %c0_125] : memref<8x2x48xf32, #tpu.memory_space<vmem>>, vector<1x2x48xf32>
    %376 = vector.shape_cast %375 : vector<1x2x48xf32> to vector<2x48xf32>
    %377 = arith.truncf %372 : vector<2x16xf32> to vector<2x16xbf16>
    %cst_126 = arith.constant dense<0.000000e+00> : vector<2x48xf32>
    %378 = tpu.matmul %377, %10, %cst_126 {dimension_numbers = #tpu.dot_dimension_numbers<[1], [0], [0], [1], [0, 0, 1, 1], [], []>} : vector<2x16xbf16>, vector<16x48xbf16>, vector<2x48xf32> -> vector<2x48xf32>
    %379 = vector.broadcast %11 : vector<1x48xf32> to vector<2x48xf32>
    %380 = arith.addf %378, %379 : vector<2x48xf32>
    %381 = vector.extract_strided_slice %376 {offsets = [0, 0], sizes = [2, 16], strides = [1, 1]} : vector<2x48xf32> to vector<2x16xf32>
    %382 = vector.extract_strided_slice %380 {offsets = [0, 0], sizes = [2, 16], strides = [1, 1]} : vector<2x48xf32> to vector<2x16xf32>
    %383 = arith.addf %381, %382 : vector<2x16xf32>
    %384 = arith.negf %383 : vector<2x16xf32>
    %385 = math.exp %384 : vector<2x16xf32>
    %cst_127 = arith.constant 1.000000e+00 : f32
    %386 = vector.broadcast %cst_127 : f32 to vector<2x16xf32>
    %387 = arith.addf %386, %385 : vector<2x16xf32>
    %388 = arith.divf %386, %387 : vector<2x16xf32>
    %389 = vector.extract_strided_slice %376 {offsets = [0, 16], sizes = [2, 16], strides = [1, 1]} : vector<2x48xf32> to vector<2x16xf32>
    %390 = vector.extract_strided_slice %380 {offsets = [0, 16], sizes = [2, 16], strides = [1, 1]} : vector<2x48xf32> to vector<2x16xf32>
    %391 = arith.addf %389, %390 : vector<2x16xf32>
    %392 = arith.negf %391 : vector<2x16xf32>
    %393 = math.exp %392 : vector<2x16xf32>
    %cst_128 = arith.constant 1.000000e+00 : f32
    %394 = vector.broadcast %cst_128 : f32 to vector<2x16xf32>
    %395 = arith.addf %394, %393 : vector<2x16xf32>
    %396 = arith.divf %394, %395 : vector<2x16xf32>
    %397 = vector.extract_strided_slice %376 {offsets = [0, 32], sizes = [2, 16], strides = [1, 1]} : vector<2x48xf32> to vector<2x16xf32>
    %398 = vector.extract_strided_slice %380 {offsets = [0, 32], sizes = [2, 16], strides = [1, 1]} : vector<2x48xf32> to vector<2x16xf32>
    %399 = arith.mulf %388, %398 : vector<2x16xf32>
    %400 = arith.addf %397, %399 : vector<2x16xf32>
    %401 = math.tanh %400 : vector<2x16xf32>
    %cst_129 = arith.constant 1.000000e+00 : f32
    %402 = vector.broadcast %cst_129 : f32 to vector<2x16xf32>
    %403 = arith.subf %402, %396 : vector<2x16xf32>
    %404 = arith.mulf %403, %401 : vector<2x16xf32>
    %405 = arith.mulf %396, %372 : vector<2x16xf32>
    %406 = arith.addf %404, %405 : vector<2x16xf32>
    %407 = vector.shape_cast %371 : vector<2x1xi1> to vector<2x1xi1>
    %408 = vector.broadcast %407 : vector<2x1xi1> to vector<2x16xi1>
    %409 = arith.select %408, %406, %372 : vector<2x16xi1>, vector<2x16xf32>
    %410 = arith.truncf %409 : vector<2x16xf32> to vector<2x16xbf16>
    %cst_130 = arith.constant dense<0.000000e+00> : vector<2x48xf32>
    %411 = tpu.matmul %410, %12, %cst_130 {dimension_numbers = #tpu.dot_dimension_numbers<[1], [0], [0], [1], [0, 0, 1, 1], [], []>} : vector<2x16xbf16>, vector<16x48xbf16>, vector<2x48xf32> -> vector<2x48xf32>
    %412 = vector.broadcast %14 : vector<1x48xf32> to vector<2x48xf32>
    %413 = arith.addf %411, %412 : vector<2x48xf32>
    %414 = arith.truncf %373 : vector<2x16xf32> to vector<2x16xbf16>
    %cst_131 = arith.constant dense<0.000000e+00> : vector<2x48xf32>
    %415 = tpu.matmul %414, %13, %cst_131 {dimension_numbers = #tpu.dot_dimension_numbers<[1], [0], [0], [1], [0, 0, 1, 1], [], []>} : vector<2x16xbf16>, vector<16x48xbf16>, vector<2x48xf32> -> vector<2x48xf32>
    %416 = vector.broadcast %15 : vector<1x48xf32> to vector<2x48xf32>
    %417 = arith.addf %415, %416 : vector<2x48xf32>
    %418 = vector.extract_strided_slice %413 {offsets = [0, 0], sizes = [2, 16], strides = [1, 1]} : vector<2x48xf32> to vector<2x16xf32>
    %419 = vector.extract_strided_slice %417 {offsets = [0, 0], sizes = [2, 16], strides = [1, 1]} : vector<2x48xf32> to vector<2x16xf32>
    %420 = arith.addf %418, %419 : vector<2x16xf32>
    %421 = arith.negf %420 : vector<2x16xf32>
    %422 = math.exp %421 : vector<2x16xf32>
    %cst_132 = arith.constant 1.000000e+00 : f32
    %423 = vector.broadcast %cst_132 : f32 to vector<2x16xf32>
    %424 = arith.addf %423, %422 : vector<2x16xf32>
    %425 = arith.divf %423, %424 : vector<2x16xf32>
    %426 = vector.extract_strided_slice %413 {offsets = [0, 16], sizes = [2, 16], strides = [1, 1]} : vector<2x48xf32> to vector<2x16xf32>
    %427 = vector.extract_strided_slice %417 {offsets = [0, 16], sizes = [2, 16], strides = [1, 1]} : vector<2x48xf32> to vector<2x16xf32>
    %428 = arith.addf %426, %427 : vector<2x16xf32>
    %429 = arith.negf %428 : vector<2x16xf32>
    %430 = math.exp %429 : vector<2x16xf32>
    %cst_133 = arith.constant 1.000000e+00 : f32
    %431 = vector.broadcast %cst_133 : f32 to vector<2x16xf32>
    %432 = arith.addf %431, %430 : vector<2x16xf32>
    %433 = arith.divf %431, %432 : vector<2x16xf32>
    %434 = vector.extract_strided_slice %413 {offsets = [0, 32], sizes = [2, 16], strides = [1, 1]} : vector<2x48xf32> to vector<2x16xf32>
    %435 = vector.extract_strided_slice %417 {offsets = [0, 32], sizes = [2, 16], strides = [1, 1]} : vector<2x48xf32> to vector<2x16xf32>
    %436 = arith.mulf %425, %435 : vector<2x16xf32>
    %437 = arith.addf %434, %436 : vector<2x16xf32>
    %438 = math.tanh %437 : vector<2x16xf32>
    %cst_134 = arith.constant 1.000000e+00 : f32
    %439 = vector.broadcast %cst_134 : f32 to vector<2x16xf32>
    %440 = arith.subf %439, %433 : vector<2x16xf32>
    %441 = arith.mulf %440, %438 : vector<2x16xf32>
    %442 = arith.mulf %433, %373 : vector<2x16xf32>
    %443 = arith.addf %441, %442 : vector<2x16xf32>
    %444 = vector.shape_cast %371 : vector<2x1xi1> to vector<2x1xi1>
    %445 = vector.broadcast %444 : vector<2x1xi1> to vector<2x16xi1>
    %446 = arith.select %445, %443, %373 : vector<2x16xi1>, vector<2x16xf32>
    %c0_135 = arith.constant 0 : index
    %c0_136 = arith.constant 0 : index
    %447 = vector.load %arg24[%c0_135, %c0_136] : memref<2x16xf32, #tpu.memory_space<vmem>>, vector<2x16xf32>
    tpu.vector_store %arg24[%c0_135, %c0_136], %409 {strides = array<i32>} : memref<2x16xf32, #tpu.memory_space<vmem>>, vector<2x16xf32>,
    %c0_137 = arith.constant 0 : index
    %c0_138 = arith.constant 0 : index
    %448 = vector.load %arg25[%c0_137, %c0_138] : memref<2x16xf32, #tpu.memory_space<vmem>>, vector<2x16xf32>
    tpu.vector_store %arg25[%c0_137, %c0_138], %446 {strides = array<i32>} : memref<2x16xf32, #tpu.memory_space<vmem>>, vector<2x16xf32>,
    %cst_139 = arith.constant 0.000000e+00 : f32
    %449 = vector.shape_cast %371 : vector<2x1xi1> to vector<2x1xi1>
    %450 = vector.broadcast %449 : vector<2x1xi1> to vector<2x16xi1>
    %451 = vector.broadcast %cst_139 : f32 to vector<2x16xf32>
    %452 = arith.select %450, %446, %451 : vector<2x16xi1>, vector<2x16xf32>
    %453 = arith.index_cast %c4_i32 : i32 to index
    %c0_140 = arith.constant 0 : index
    %c0_141 = arith.constant 0 : index
    %454 = vector.load %arg26[%453, %c0_140, %c0_141] : memref<8x2x16xf32, #tpu.memory_space<vmem>>, vector<1x2x16xf32>
    %455 = vector.shape_cast %454 : vector<1x2x16xf32> to vector<2x16xf32>
    %456 = vector.shape_cast %452 : vector<2x16xf32> to vector<1x2x16xf32>
    tpu.vector_store %arg26[%453, %c0_140, %c0_141], %456 {strides = array<i32>} : memref<8x2x16xf32, #tpu.memory_space<vmem>>, vector<1x2x16xf32>,
    %c5_i32 = arith.constant 5 : i32
    %457 = vector.broadcast %c5_i32 : i32 to vector<2x1xi32>
    %458 = arith.cmpi slt, %457, %0 : vector<2x1xi32>
    %c0_142 = arith.constant 0 : index
    %c0_143 = arith.constant 0 : index
    %459 = vector.load %arg24[%c0_142, %c0_143] : memref<2x16xf32, #tpu.memory_space<vmem>>, vector<2x16xf32>
    %c0_144 = arith.constant 0 : index
    %c0_145 = arith.constant 0 : index
    %460 = vector.load %arg25[%c0_144, %c0_145] : memref<2x16xf32, #tpu.memory_space<vmem>>, vector<2x16xf32>
    %461 = arith.index_cast %c5_i32 : i32 to index
    %c0_146 = arith.constant 0 : index
    %c0_147 = arith.constant 0 : index
    %462 = vector.load %arg27[%461, %c0_146, %c0_147] : memref<8x2x48xf32, #tpu.memory_space<vmem>>, vector<1x2x48xf32>
    %463 = vector.shape_cast %462 : vector<1x2x48xf32> to vector<2x48xf32>
    %464 = arith.truncf %459 : vector<2x16xf32> to vector<2x16xbf16>
    %cst_148 = arith.constant dense<0.000000e+00> : vector<2x48xf32>
    %465 = tpu.matmul %464, %10, %cst_148 {dimension_numbers = #tpu.dot_dimension_numbers<[1], [0], [0], [1], [0, 0, 1, 1], [], []>} : vector<2x16xbf16>, vector<16x48xbf16>, vector<2x48xf32> -> vector<2x48xf32>
    %466 = vector.broadcast %11 : vector<1x48xf32> to vector<2x48xf32>
    %467 = arith.addf %465, %466 : vector<2x48xf32>
    %468 = vector.extract_strided_slice %463 {offsets = [0, 0], sizes = [2, 16], strides = [1, 1]} : vector<2x48xf32> to vector<2x16xf32>
    %469 = vector.extract_strided_slice %467 {offsets = [0, 0], sizes = [2, 16], strides = [1, 1]} : vector<2x48xf32> to vector<2x16xf32>
    %470 = arith.addf %468, %469 : vector<2x16xf32>
    %471 = arith.negf %470 : vector<2x16xf32>
    %472 = math.exp %471 : vector<2x16xf32>
    %cst_149 = arith.constant 1.000000e+00 : f32
    %473 = vector.broadcast %cst_149 : f32 to vector<2x16xf32>
    %474 = arith.addf %473, %472 : vector<2x16xf32>
    %475 = arith.divf %473, %474 : vector<2x16xf32>
    %476 = vector.extract_strided_slice %463 {offsets = [0, 16], sizes = [2, 16], strides = [1, 1]} : vector<2x48xf32> to vector<2x16xf32>
    %477 = vector.extract_strided_slice %467 {offsets = [0, 16], sizes = [2, 16], strides = [1, 1]} : vector<2x48xf32> to vector<2x16xf32>
    %478 = arith.addf %476, %477 : vector<2x16xf32>
    %479 = arith.negf %478 : vector<2x16xf32>
    %480 = math.exp %479 : vector<2x16xf32>
    %cst_150 = arith.constant 1.000000e+00 : f32
    %481 = vector.broadcast %cst_150 : f32 to vector<2x16xf32>
    %482 = arith.addf %481, %480 : vector<2x16xf32>
    %483 = arith.divf %481, %482 : vector<2x16xf32>
    %484 = vector.extract_strided_slice %463 {offsets = [0, 32], sizes = [2, 16], strides = [1, 1]} : vector<2x48xf32> to vector<2x16xf32>
    %485 = vector.extract_strided_slice %467 {offsets = [0, 32], sizes = [2, 16], strides = [1, 1]} : vector<2x48xf32> to vector<2x16xf32>
    %486 = arith.mulf %475, %485 : vector<2x16xf32>
    %487 = arith.addf %484, %486 : vector<2x16xf32>
    %488 = math.tanh %487 : vector<2x16xf32>
    %cst_151 = arith.constant 1.000000e+00 : f32
    %489 = vector.broadcast %cst_151 : f32 to vector<2x16xf32>
    %490 = arith.subf %489, %483 : vector<2x16xf32>
    %491 = arith.mulf %490, %488 : vector<2x16xf32>
    %492 = arith.mulf %483, %459 : vector<2x16xf32>
    %493 = arith.addf %491, %492 : vector<2x16xf32>
    %494 = vector.shape_cast %458 : vector<2x1xi1> to vector<2x1xi1>
    %495 = vector.broadcast %494 : vector<2x1xi1> to vector<2x16xi1>
    %496 = arith.select %495, %493, %459 : vector<2x16xi1>, vector<2x16xf32>
    %497 = arith.truncf %496 : vector<2x16xf32> to vector<2x16xbf16>
    %cst_152 = arith.constant dense<0.000000e+00> : vector<2x48xf32>
    %498 = tpu.matmul %497, %12, %cst_152 {dimension_numbers = #tpu.dot_dimension_numbers<[1], [0], [0], [1], [0, 0, 1, 1], [], []>} : vector<2x16xbf16>, vector<16x48xbf16>, vector<2x48xf32> -> vector<2x48xf32>
    %499 = vector.broadcast %14 : vector<1x48xf32> to vector<2x48xf32>
    %500 = arith.addf %498, %499 : vector<2x48xf32>
    %501 = arith.truncf %460 : vector<2x16xf32> to vector<2x16xbf16>
    %cst_153 = arith.constant dense<0.000000e+00> : vector<2x48xf32>
    %502 = tpu.matmul %501, %13, %cst_153 {dimension_numbers = #tpu.dot_dimension_numbers<[1], [0], [0], [1], [0, 0, 1, 1], [], []>} : vector<2x16xbf16>, vector<16x48xbf16>, vector<2x48xf32> -> vector<2x48xf32>
    %503 = vector.broadcast %15 : vector<1x48xf32> to vector<2x48xf32>
    %504 = arith.addf %502, %503 : vector<2x48xf32>
    %505 = vector.extract_strided_slice %500 {offsets = [0, 0], sizes = [2, 16], strides = [1, 1]} : vector<2x48xf32> to vector<2x16xf32>
    %506 = vector.extract_strided_slice %504 {offsets = [0, 0], sizes = [2, 16], strides = [1, 1]} : vector<2x48xf32> to vector<2x16xf32>
    %507 = arith.addf %505, %506 : vector<2x16xf32>
    %508 = arith.negf %507 : vector<2x16xf32>
    %509 = math.exp %508 : vector<2x16xf32>
    %cst_154 = arith.constant 1.000000e+00 : f32
    %510 = vector.broadcast %cst_154 : f32 to vector<2x16xf32>
    %511 = arith.addf %510, %509 : vector<2x16xf32>
    %512 = arith.divf %510, %511 : vector<2x16xf32>
    %513 = vector.extract_strided_slice %500 {offsets = [0, 16], sizes = [2, 16], strides = [1, 1]} : vector<2x48xf32> to vector<2x16xf32>
    %514 = vector.extract_strided_slice %504 {offsets = [0, 16], sizes = [2, 16], strides = [1, 1]} : vector<2x48xf32> to vector<2x16xf32>
    %515 = arith.addf %513, %514 : vector<2x16xf32>
    %516 = arith.negf %515 : vector<2x16xf32>
    %517 = math.exp %516 : vector<2x16xf32>
    %cst_155 = arith.constant 1.000000e+00 : f32
    %518 = vector.broadcast %cst_155 : f32 to vector<2x16xf32>
    %519 = arith.addf %518, %517 : vector<2x16xf32>
    %520 = arith.divf %518, %519 : vector<2x16xf32>
    %521 = vector.extract_strided_slice %500 {offsets = [0, 32], sizes = [2, 16], strides = [1, 1]} : vector<2x48xf32> to vector<2x16xf32>
    %522 = vector.extract_strided_slice %504 {offsets = [0, 32], sizes = [2, 16], strides = [1, 1]} : vector<2x48xf32> to vector<2x16xf32>
    %523 = arith.mulf %512, %522 : vector<2x16xf32>
    %524 = arith.addf %521, %523 : vector<2x16xf32>
    %525 = math.tanh %524 : vector<2x16xf32>
    %cst_156 = arith.constant 1.000000e+00 : f32
    %526 = vector.broadcast %cst_156 : f32 to vector<2x16xf32>
    %527 = arith.subf %526, %520 : vector<2x16xf32>
    %528 = arith.mulf %527, %525 : vector<2x16xf32>
    %529 = arith.mulf %520, %460 : vector<2x16xf32>
    %530 = arith.addf %528, %529 : vector<2x16xf32>
    %531 = vector.shape_cast %458 : vector<2x1xi1> to vector<2x1xi1>
    %532 = vector.broadcast %531 : vector<2x1xi1> to vector<2x16xi1>
    %533 = arith.select %532, %530, %460 : vector<2x16xi1>, vector<2x16xf32>
    %c0_157 = arith.constant 0 : index
    %c0_158 = arith.constant 0 : index
    %534 = vector.load %arg24[%c0_157, %c0_158] : memref<2x16xf32, #tpu.memory_space<vmem>>, vector<2x16xf32>
    tpu.vector_store %arg24[%c0_157, %c0_158], %496 {strides = array<i32>} : memref<2x16xf32, #tpu.memory_space<vmem>>, vector<2x16xf32>,
    %c0_159 = arith.constant 0 : index
    %c0_160 = arith.constant 0 : index
    %535 = vector.load %arg25[%c0_159, %c0_160] : memref<2x16xf32, #tpu.memory_space<vmem>>, vector<2x16xf32>
    tpu.vector_store %arg25[%c0_159, %c0_160], %533 {strides = array<i32>} : memref<2x16xf32, #tpu.memory_space<vmem>>, vector<2x16xf32>,
    %cst_161 = arith.constant 0.000000e+00 : f32
    %536 = vector.shape_cast %458 : vector<2x1xi1> to vector<2x1xi1>
    %537 = vector.broadcast %536 : vector<2x1xi1> to vector<2x16xi1>
    %538 = vector.broadcast %cst_161 : f32 to vector<2x16xf32>
    %539 = arith.select %537, %533, %538 : vector<2x16xi1>, vector<2x16xf32>
    %540 = arith.index_cast %c5_i32 : i32 to index
    %c0_162 = arith.constant 0 : index
    %c0_163 = arith.constant 0 : index
    %541 = vector.load %arg26[%540, %c0_162, %c0_163] : memref<8x2x16xf32, #tpu.memory_space<vmem>>, vector<1x2x16xf32>
    %542 = vector.shape_cast %541 : vector<1x2x16xf32> to vector<2x16xf32>
    %543 = vector.shape_cast %539 : vector<2x16xf32> to vector<1x2x16xf32>
    tpu.vector_store %arg26[%540, %c0_162, %c0_163], %543 {strides = array<i32>} : memref<8x2x16xf32, #tpu.memory_space<vmem>>, vector<1x2x16xf32>,
    %c6_i32 = arith.constant 6 : i32
    %544 = vector.broadcast %c6_i32 : i32 to vector<2x1xi32>
    %545 = arith.cmpi slt, %544, %0 : vector<2x1xi32>
    %c0_164 = arith.constant 0 : index
    %c0_165 = arith.constant 0 : index
    %546 = vector.load %arg24[%c0_164, %c0_165] : memref<2x16xf32, #tpu.memory_space<vmem>>, vector<2x16xf32>
    %c0_166 = arith.constant 0 : index
    %c0_167 = arith.constant 0 : index
    %547 = vector.load %arg25[%c0_166, %c0_167] : memref<2x16xf32, #tpu.memory_space<vmem>>, vector<2x16xf32>
    %548 = arith.index_cast %c6_i32 : i32 to index
    %c0_168 = arith.constant 0 : index
    %c0_169 = arith.constant 0 : index
    %549 = vector.load %arg27[%548, %c0_168, %c0_169] : memref<8x2x48xf32, #tpu.memory_space<vmem>>, vector<1x2x48xf32>
    %550 = vector.shape_cast %549 : vector<1x2x48xf32> to vector<2x48xf32>
    %551 = arith.truncf %546 : vector<2x16xf32> to vector<2x16xbf16>
    %cst_170 = arith.constant dense<0.000000e+00> : vector<2x48xf32>
    %552 = tpu.matmul %551, %10, %cst_170 {dimension_numbers = #tpu.dot_dimension_numbers<[1], [0], [0], [1], [0, 0, 1, 1], [], []>} : vector<2x16xbf16>, vector<16x48xbf16>, vector<2x48xf32> -> vector<2x48xf32>
    %553 = vector.broadcast %11 : vector<1x48xf32> to vector<2x48xf32>
    %554 = arith.addf %552, %553 : vector<2x48xf32>
    %555 = vector.extract_strided_slice %550 {offsets = [0, 0], sizes = [2, 16], strides = [1, 1]} : vector<2x48xf32> to vector<2x16xf32>
    %556 = vector.extract_strided_slice %554 {offsets = [0, 0], sizes = [2, 16], strides = [1, 1]} : vector<2x48xf32> to vector<2x16xf32>
    %557 = arith.addf %555, %556 : vector<2x16xf32>
    %558 = arith.negf %557 : vector<2x16xf32>
    %559 = math.exp %558 : vector<2x16xf32>
    %cst_171 = arith.constant 1.000000e+00 : f32
    %560 = vector.broadcast %cst_171 : f32 to vector<2x16xf32>
    %561 = arith.addf %560, %559 : vector<2x16xf32>
    %562 = arith.divf %560, %561 : vector<2x16xf32>
    %563 = vector.extract_strided_slice %550 {offsets = [0, 16], sizes = [2, 16], strides = [1, 1]} : vector<2x48xf32> to vector<2x16xf32>
    %564 = vector.extract_strided_slice %554 {offsets = [0, 16], sizes = [2, 16], strides = [1, 1]} : vector<2x48xf32> to vector<2x16xf32>
    %565 = arith.addf %563, %564 : vector<2x16xf32>
    %566 = arith.negf %565 : vector<2x16xf32>
    %567 = math.exp %566 : vector<2x16xf32>
    %cst_172 = arith.constant 1.000000e+00 : f32
    %568 = vector.broadcast %cst_172 : f32 to vector<2x16xf32>
    %569 = arith.addf %568, %567 : vector<2x16xf32>
    %570 = arith.divf %568, %569 : vector<2x16xf32>
    %571 = vector.extract_strided_slice %550 {offsets = [0, 32], sizes = [2, 16], strides = [1, 1]} : vector<2x48xf32> to vector<2x16xf32>
    %572 = vector.extract_strided_slice %554 {offsets = [0, 32], sizes = [2, 16], strides = [1, 1]} : vector<2x48xf32> to vector<2x16xf32>
    %573 = arith.mulf %562, %572 : vector<2x16xf32>
    %574 = arith.addf %571, %573 : vector<2x16xf32>
    %575 = math.tanh %574 : vector<2x16xf32>
    %cst_173 = arith.constant 1.000000e+00 : f32
    %576 = vector.broadcast %cst_173 : f32 to vector<2x16xf32>
    %577 = arith.subf %576, %570 : vector<2x16xf32>
    %578 = arith.mulf %577, %575 : vector<2x16xf32>
    %579 = arith.mulf %570, %546 : vector<2x16xf32>
    %580 = arith.addf %578, %579 : vector<2x16xf32>
    %581 = vector.shape_cast %545 : vector<2x1xi1> to vector<2x1xi1>
    %582 = vector.broadcast %581 : vector<2x1xi1> to vector<2x16xi1>
    %583 = arith.select %582, %580, %546 : vector<2x16xi1>, vector<2x16xf32>
    %584 = arith.truncf %583 : vector<2x16xf32> to vector<2x16xbf16>
    %cst_174 = arith.constant dense<0.000000e+00> : vector<2x48xf32>
    %585 = tpu.matmul %584, %12, %cst_174 {dimension_numbers = #tpu.dot_dimension_numbers<[1], [0], [0], [1], [0, 0, 1, 1], [], []>} : vector<2x16xbf16>, vector<16x48xbf16>, vector<2x48xf32> -> vector<2x48xf32>
    %586 = vector.broadcast %14 : vector<1x48xf32> to vector<2x48xf32>
    %587 = arith.addf %585, %586 : vector<2x48xf32>
    %588 = arith.truncf %547 : vector<2x16xf32> to vector<2x16xbf16>
    %cst_175 = arith.constant dense<0.000000e+00> : vector<2x48xf32>
    %589 = tpu.matmul %588, %13, %cst_175 {dimension_numbers = #tpu.dot_dimension_numbers<[1], [0], [0], [1], [0, 0, 1, 1], [], []>} : vector<2x16xbf16>, vector<16x48xbf16>, vector<2x48xf32> -> vector<2x48xf32>
    %590 = vector.broadcast %15 : vector<1x48xf32> to vector<2x48xf32>
    %591 = arith.addf %589, %590 : vector<2x48xf32>
    %592 = vector.extract_strided_slice %587 {offsets = [0, 0], sizes = [2, 16], strides = [1, 1]} : vector<2x48xf32> to vector<2x16xf32>
    %593 = vector.extract_strided_slice %591 {offsets = [0, 0], sizes = [2, 16], strides = [1, 1]} : vector<2x48xf32> to vector<2x16xf32>
    %594 = arith.addf %592, %593 : vector<2x16xf32>
    %595 = arith.negf %594 : vector<2x16xf32>
    %596 = math.exp %595 : vector<2x16xf32>
    %cst_176 = arith.constant 1.000000e+00 : f32
    %597 = vector.broadcast %cst_176 : f32 to vector<2x16xf32>
    %598 = arith.addf %597, %596 : vector<2x16xf32>
    %599 = arith.divf %597, %598 : vector<2x16xf32>
    %600 = vector.extract_strided_slice %587 {offsets = [0, 16], sizes = [2, 16], strides = [1, 1]} : vector<2x48xf32> to vector<2x16xf32>
    %601 = vector.extract_strided_slice %591 {offsets = [0, 16], sizes = [2, 16], strides = [1, 1]} : vector<2x48xf32> to vector<2x16xf32>
    %602 = arith.addf %600, %601 : vector<2x16xf32>
    %603 = arith.negf %602 : vector<2x16xf32>
    %604 = math.exp %603 : vector<2x16xf32>
    %cst_177 = arith.constant 1.000000e+00 : f32
    %605 = vector.broadcast %cst_177 : f32 to vector<2x16xf32>
    %606 = arith.addf %605, %604 : vector<2x16xf32>
    %607 = arith.divf %605, %606 : vector<2x16xf32>
    %608 = vector.extract_strided_slice %587 {offsets = [0, 32], sizes = [2, 16], strides = [1, 1]} : vector<2x48xf32> to vector<2x16xf32>
    %609 = vector.extract_strided_slice %591 {offsets = [0, 32], sizes = [2, 16], strides = [1, 1]} : vector<2x48xf32> to vector<2x16xf32>
    %610 = arith.mulf %599, %609 : vector<2x16xf32>
    %611 = arith.addf %608, %610 : vector<2x16xf32>
    %612 = math.tanh %611 : vector<2x16xf32>
    %cst_178 = arith.constant 1.000000e+00 : f32
    %613 = vector.broadcast %cst_178 : f32 to vector<2x16xf32>
    %614 = arith.subf %613, %607 : vector<2x16xf32>
    %615 = arith.mulf %614, %612 : vector<2x16xf32>
    %616 = arith.mulf %607, %547 : vector<2x16xf32>
    %617 = arith.addf %615, %616 : vector<2x16xf32>
    %618 = vector.shape_cast %545 : vector<2x1xi1> to vector<2x1xi1>
    %619 = vector.broadcast %618 : vector<2x1xi1> to vector<2x16xi1>
    %620 = arith.select %619, %617, %547 : vector<2x16xi1>, vector<2x16xf32>
    %c0_179 = arith.constant 0 : index
    %c0_180 = arith.constant 0 : index
    %621 = vector.load %arg24[%c0_179, %c0_180] : memref<2x16xf32, #tpu.memory_space<vmem>>, vector<2x16xf32>
    tpu.vector_store %arg24[%c0_179, %c0_180], %583 {strides = array<i32>} : memref<2x16xf32, #tpu.memory_space<vmem>>, vector<2x16xf32>,
    %c0_181 = arith.constant 0 : index
    %c0_182 = arith.constant 0 : index
    %622 = vector.load %arg25[%c0_181, %c0_182] : memref<2x16xf32, #tpu.memory_space<vmem>>, vector<2x16xf32>
    tpu.vector_store %arg25[%c0_181, %c0_182], %620 {strides = array<i32>} : memref<2x16xf32, #tpu.memory_space<vmem>>, vector<2x16xf32>,
    %cst_183 = arith.constant 0.000000e+00 : f32
    %623 = vector.shape_cast %545 : vector<2x1xi1> to vector<2x1xi1>
    %624 = vector.broadcast %623 : vector<2x1xi1> to vector<2x16xi1>
    %625 = vector.broadcast %cst_183 : f32 to vector<2x16xf32>
    %626 = arith.select %624, %620, %625 : vector<2x16xi1>, vector<2x16xf32>
    %627 = arith.index_cast %c6_i32 : i32 to index
    %c0_184 = arith.constant 0 : index
    %c0_185 = arith.constant 0 : index
    %628 = vector.load %arg26[%627, %c0_184, %c0_185] : memref<8x2x16xf32, #tpu.memory_space<vmem>>, vector<1x2x16xf32>
    %629 = vector.shape_cast %628 : vector<1x2x16xf32> to vector<2x16xf32>
    %630 = vector.shape_cast %626 : vector<2x16xf32> to vector<1x2x16xf32>
    tpu.vector_store %arg26[%627, %c0_184, %c0_185], %630 {strides = array<i32>} : memref<8x2x16xf32, #tpu.memory_space<vmem>>, vector<1x2x16xf32>,
    %c7_i32 = arith.constant 7 : i32
    %631 = vector.broadcast %c7_i32 : i32 to vector<2x1xi32>
    %632 = arith.cmpi slt, %631, %0 : vector<2x1xi32>
    %c0_186 = arith.constant 0 : index
    %c0_187 = arith.constant 0 : index
    %633 = vector.load %arg24[%c0_186, %c0_187] : memref<2x16xf32, #tpu.memory_space<vmem>>, vector<2x16xf32>
    %c0_188 = arith.constant 0 : index
    %c0_189 = arith.constant 0 : index
    %634 = vector.load %arg25[%c0_188, %c0_189] : memref<2x16xf32, #tpu.memory_space<vmem>>, vector<2x16xf32>
    %635 = arith.index_cast %c7_i32 : i32 to index
    %c0_190 = arith.constant 0 : index
    %c0_191 = arith.constant 0 : index
    %636 = vector.load %arg27[%635, %c0_190, %c0_191] : memref<8x2x48xf32, #tpu.memory_space<vmem>>, vector<1x2x48xf32>
    %637 = vector.shape_cast %636 : vector<1x2x48xf32> to vector<2x48xf32>
    %638 = arith.truncf %633 : vector<2x16xf32> to vector<2x16xbf16>
    %cst_192 = arith.constant dense<0.000000e+00> : vector<2x48xf32>
    %639 = tpu.matmul %638, %10, %cst_192 {dimension_numbers = #tpu.dot_dimension_numbers<[1], [0], [0], [1], [0, 0, 1, 1], [], []>} : vector<2x16xbf16>, vector<16x48xbf16>, vector<2x48xf32> -> vector<2x48xf32>
    %640 = vector.broadcast %11 : vector<1x48xf32> to vector<2x48xf32>
    %641 = arith.addf %639, %640 : vector<2x48xf32>
    %642 = vector.extract_strided_slice %637 {offsets = [0, 0], sizes = [2, 16], strides = [1, 1]} : vector<2x48xf32> to vector<2x16xf32>
    %643 = vector.extract_strided_slice %641 {offsets = [0, 0], sizes = [2, 16], strides = [1, 1]} : vector<2x48xf32> to vector<2x16xf32>
    %644 = arith.addf %642, %643 : vector<2x16xf32>
    %645 = arith.negf %644 : vector<2x16xf32>
    %646 = math.exp %645 : vector<2x16xf32>
    %cst_193 = arith.constant 1.000000e+00 : f32
    %647 = vector.broadcast %cst_193 : f32 to vector<2x16xf32>
    %648 = arith.addf %647, %646 : vector<2x16xf32>
    %649 = arith.divf %647, %648 : vector<2x16xf32>
    %650 = vector.extract_strided_slice %637 {offsets = [0, 16], sizes = [2, 16], strides = [1, 1]} : vector<2x48xf32> to vector<2x16xf32>
    %651 = vector.extract_strided_slice %641 {offsets = [0, 16], sizes = [2, 16], strides = [1, 1]} : vector<2x48xf32> to vector<2x16xf32>
    %652 = arith.addf %650, %651 : vector<2x16xf32>
    %653 = arith.negf %652 : vector<2x16xf32>
    %654 = math.exp %653 : vector<2x16xf32>
    %cst_194 = arith.constant 1.000000e+00 : f32
    %655 = vector.broadcast %cst_194 : f32 to vector<2x16xf32>
    %656 = arith.addf %655, %654 : vector<2x16xf32>
    %657 = arith.divf %655, %656 : vector<2x16xf32>
    %658 = vector.extract_strided_slice %637 {offsets = [0, 32], sizes = [2, 16], strides = [1, 1]} : vector<2x48xf32> to vector<2x16xf32>
    %659 = vector.extract_strided_slice %641 {offsets = [0, 32], sizes = [2, 16], strides = [1, 1]} : vector<2x48xf32> to vector<2x16xf32>
    %660 = arith.mulf %649, %659 : vector<2x16xf32>
    %661 = arith.addf %658, %660 : vector<2x16xf32>
    %662 = math.tanh %661 : vector<2x16xf32>
    %cst_195 = arith.constant 1.000000e+00 : f32
    %663 = vector.broadcast %cst_195 : f32 to vector<2x16xf32>
    %664 = arith.subf %663, %657 : vector<2x16xf32>
    %665 = arith.mulf %664, %662 : vector<2x16xf32>
    %666 = arith.mulf %657, %633 : vector<2x16xf32>
    %667 = arith.addf %665, %666 : vector<2x16xf32>
    %668 = vector.shape_cast %632 : vector<2x1xi1> to vector<2x1xi1>
    %669 = vector.broadcast %668 : vector<2x1xi1> to vector<2x16xi1>
    %670 = arith.select %669, %667, %633 : vector<2x16xi1>, vector<2x16xf32>
    %671 = arith.truncf %670 : vector<2x16xf32> to vector<2x16xbf16>
    %cst_196 = arith.constant dense<0.000000e+00> : vector<2x48xf32>
    %672 = tpu.matmul %671, %12, %cst_196 {dimension_numbers = #tpu.dot_dimension_numbers<[1], [0], [0], [1], [0, 0, 1, 1], [], []>} : vector<2x16xbf16>, vector<16x48xbf16>, vector<2x48xf32> -> vector<2x48xf32>
    %673 = vector.broadcast %14 : vector<1x48xf32> to vector<2x48xf32>
    %674 = arith.addf %672, %673 : vector<2x48xf32>
    %675 = arith.truncf %634 : vector<2x16xf32> to vector<2x16xbf16>
    %cst_197 = arith.constant dense<0.000000e+00> : vector<2x48xf32>
    %676 = tpu.matmul %675, %13, %cst_197 {dimension_numbers = #tpu.dot_dimension_numbers<[1], [0], [0], [1], [0, 0, 1, 1], [], []>} : vector<2x16xbf16>, vector<16x48xbf16>, vector<2x48xf32> -> vector<2x48xf32>
    %677 = vector.broadcast %15 : vector<1x48xf32> to vector<2x48xf32>
    %678 = arith.addf %676, %677 : vector<2x48xf32>
    %679 = vector.extract_strided_slice %674 {offsets = [0, 0], sizes = [2, 16], strides = [1, 1]} : vector<2x48xf32> to vector<2x16xf32>
    %680 = vector.extract_strided_slice %678 {offsets = [0, 0], sizes = [2, 16], strides = [1, 1]} : vector<2x48xf32> to vector<2x16xf32>
    %681 = arith.addf %679, %680 : vector<2x16xf32>
    %682 = arith.negf %681 : vector<2x16xf32>
    %683 = math.exp %682 : vector<2x16xf32>
    %cst_198 = arith.constant 1.000000e+00 : f32
    %684 = vector.broadcast %cst_198 : f32 to vector<2x16xf32>
    %685 = arith.addf %684, %683 : vector<2x16xf32>
    %686 = arith.divf %684, %685 : vector<2x16xf32>
    %687 = vector.extract_strided_slice %674 {offsets = [0, 16], sizes = [2, 16], strides = [1, 1]} : vector<2x48xf32> to vector<2x16xf32>
    %688 = vector.extract_strided_slice %678 {offsets = [0, 16], sizes = [2, 16], strides = [1, 1]} : vector<2x48xf32> to vector<2x16xf32>
    %689 = arith.addf %687, %688 : vector<2x16xf32>
    %690 = arith.negf %689 : vector<2x16xf32>
    %691 = math.exp %690 : vector<2x16xf32>
    %cst_199 = arith.constant 1.000000e+00 : f32
    %692 = vector.broadcast %cst_199 : f32 to vector<2x16xf32>
    %693 = arith.addf %692, %691 : vector<2x16xf32>
    %694 = arith.divf %692, %693 : vector<2x16xf32>
    %695 = vector.extract_strided_slice %674 {offsets = [0, 32], sizes = [2, 16], strides = [1, 1]} : vector<2x48xf32> to vector<2x16xf32>
    %696 = vector.extract_strided_slice %678 {offsets = [0, 32], sizes = [2, 16], strides = [1, 1]} : vector<2x48xf32> to vector<2x16xf32>
    %697 = arith.mulf %686, %696 : vector<2x16xf32>
    %698 = arith.addf %695, %697 : vector<2x16xf32>
    %699 = math.tanh %698 : vector<2x16xf32>
    %cst_200 = arith.constant 1.000000e+00 : f32
    %700 = vector.broadcast %cst_200 : f32 to vector<2x16xf32>
    %701 = arith.subf %700, %694 : vector<2x16xf32>
    %702 = arith.mulf %701, %699 : vector<2x16xf32>
    %703 = arith.mulf %694, %634 : vector<2x16xf32>
    %704 = arith.addf %702, %703 : vector<2x16xf32>
    %705 = vector.shape_cast %632 : vector<2x1xi1> to vector<2x1xi1>
    %706 = vector.broadcast %705 : vector<2x1xi1> to vector<2x16xi1>
    %707 = arith.select %706, %704, %634 : vector<2x16xi1>, vector<2x16xf32>
    %c0_201 = arith.constant 0 : index
    %c0_202 = arith.constant 0 : index
    %708 = vector.load %arg24[%c0_201, %c0_202] : memref<2x16xf32, #tpu.memory_space<vmem>>, vector<2x16xf32>
    tpu.vector_store %arg24[%c0_201, %c0_202], %670 {strides = array<i32>} : memref<2x16xf32, #tpu.memory_space<vmem>>, vector<2x16xf32>,
    %c0_203 = arith.constant 0 : index
    %c0_204 = arith.constant 0 : index
    %709 = vector.load %arg25[%c0_203, %c0_204] : memref<2x16xf32, #tpu.memory_space<vmem>>, vector<2x16xf32>
    tpu.vector_store %arg25[%c0_203, %c0_204], %707 {strides = array<i32>} : memref<2x16xf32, #tpu.memory_space<vmem>>, vector<2x16xf32>,
    %cst_205 = arith.constant 0.000000e+00 : f32
    %710 = vector.shape_cast %632 : vector<2x1xi1> to vector<2x1xi1>
    %711 = vector.broadcast %710 : vector<2x1xi1> to vector<2x16xi1>
    %712 = vector.broadcast %cst_205 : f32 to vector<2x16xf32>
    %713 = arith.select %711, %707, %712 : vector<2x16xi1>, vector<2x16xf32>
    %714 = arith.index_cast %c7_i32 : i32 to index
    %c0_206 = arith.constant 0 : index
    %c0_207 = arith.constant 0 : index
    %715 = vector.load %arg26[%714, %c0_206, %c0_207] : memref<8x2x16xf32, #tpu.memory_space<vmem>>, vector<1x2x16xf32>
    %716 = vector.shape_cast %715 : vector<1x2x16xf32> to vector<2x16xf32>
    %717 = vector.shape_cast %713 : vector<2x16xf32> to vector<1x2x16xf32>
    tpu.vector_store %arg26[%714, %c0_206, %c0_207], %717 {strides = array<i32>} : memref<8x2x16xf32, #tpu.memory_space<vmem>>, vector<1x2x16xf32>,
    %c8_i32 = arith.constant 8 : i32
    %c0_208 = arith.constant 0 : index
    %c0_209 = arith.constant 0 : index
    %718 = vector.load %arg24[%c0_208, %c0_209] : memref<2x16xf32, #tpu.memory_space<vmem>>, vector<2x16xf32>
    %c0_210 = arith.constant 0 : index
    %c0_211 = arith.constant 0 : index
    %c0_212 = arith.constant 0 : index
    %719 = vector.load %arg22[%c0_210, %c0_211, %c0_212] : memref<2x2x16xf32, #tpu.memory_space<vmem>>, vector<1x2x16xf32>
    %720 = vector.shape_cast %719 : vector<1x2x16xf32> to vector<2x16xf32>
    %721 = vector.shape_cast %718 : vector<2x16xf32> to vector<1x2x16xf32>
    tpu.vector_store %arg22[%c0_210, %c0_211, %c0_212], %721 {strides = array<i32>} : memref<2x2x16xf32, #tpu.memory_space<vmem>>, vector<1x2x16xf32>,
    %c0_213 = arith.constant 0 : index
    %c0_214 = arith.constant 0 : index
    %722 = vector.load %arg25[%c0_213, %c0_214] : memref<2x16xf32, #tpu.memory_space<vmem>>, vector<2x16xf32>
    %c1_215 = arith.constant 1 : index
    %c0_216 = arith.constant 0 : index
    %c0_217 = arith.constant 0 : index
    %723 = vector.load %arg22[%c1_215, %c0_216, %c0_217] : memref<2x2x16xf32, #tpu.memory_space<vmem>>, vector<1x2x16xf32>
    %724 = vector.shape_cast %723 : vector<1x2x16xf32> to vector<2x16xf32>
    %725 = vector.shape_cast %722 : vector<2x16xf32> to vector<1x2x16xf32>
    tpu.vector_store %arg22[%c1_215, %c0_216, %c0_217], %725 {strides = array<i32>} : memref<2x2x16xf32, #tpu.memory_space<vmem>>, vector<1x2x16xf32>,
    %c0_218 = arith.constant 0 : index
    %c0_219 = arith.constant 0 : index
    %c0_220 = arith.constant 0 : index
    %726 = vector.load %arg26[%c0_218, %c0_219, %c0_220] : memref<8x2x16xf32, #tpu.memory_space<vmem>>, vector<8x2x16xf32>
    %727 = tpu.transpose %726, [1, 0, 2] : vector<8x2x16xf32> -> vector<2x8x16xf32>
    %728 = vector.shape_cast %727 : vector<2x8x16xf32> to vector<16x16xf32>
    %729 = arith.truncf %728 : vector<16x16xf32> to vector<16x16xbf16>
    %c0_221 = arith.constant 0 : index
    %c0_222 = arith.constant 0 : index
    %c0_223 = arith.constant 0 : index
    %730 = vector.load %arg4[%c0_221, %c0_222, %c0_223] : memref<2x12x16xbf16, #tpu.memory_space<vmem>>, vector<2x12x16xbf16>
    %731 = vector.shape_cast %730 : vector<2x12x16xbf16> to vector<24x16xbf16>
    %c0_224 = arith.constant 0 : index
    %c0_225 = arith.constant 0 : index
    %732 = vector.load %arg13[%c0_224, %c0_225] : memref<16x16xbf16, #tpu.memory_space<vmem>>, vector<16x16xbf16>
    %cst_226 = arith.constant dense<0.000000e+00> : vector<24x16xf32>
    %733 = tpu.matmul %731, %732, %cst_226 {dimension_numbers = #tpu.dot_dimension_numbers<[1], [0], [0], [1], [0, 0, 1, 1], [], []>} : vector<24x16xbf16>, vector<16x16xbf16>, vector<24x16xf32> -> vector<24x16xf32>
    %734 = vector.shape_cast %733 : vector<24x16xf32> to vector<2x12x16xf32>
    %c0_227 = arith.constant 0 : index
    %c0_228 = arith.constant 0 : index
    %735 = vector.load %arg14[%c0_227, %c0_228] : memref<16x16xbf16, #tpu.memory_space<vmem>>, vector<16x16xbf16>
    %cst_229 = arith.constant dense<0.000000e+00> : vector<16x16xf32>
    %736 = tpu.matmul %729, %735, %cst_229 {dimension_numbers = #tpu.dot_dimension_numbers<[1], [0], [0], [1], [0, 0, 1, 1], [], []>} : vector<16x16xbf16>, vector<16x16xbf16>, vector<16x16xf32> -> vector<16x16xf32>
    %737 = vector.shape_cast %736 : vector<16x16xf32> to vector<2x8x16xf32>
    %c0_230 = arith.constant 0 : index
    %c0_231 = arith.constant 0 : index
    %738 = vector.load %arg15[%c0_230, %c0_231] : memref<16x16xbf16, #tpu.memory_space<vmem>>, vector<16x16xbf16>
    %cst_232 = arith.constant dense<0.000000e+00> : vector<24x16xf32>
    %739 = tpu.matmul %731, %738, %cst_232 {dimension_numbers = #tpu.dot_dimension_numbers<[1], [0], [0], [1], [0, 0, 1, 1], [], []>} : vector<24x16xbf16>, vector<16x16xbf16>, vector<24x16xf32> -> vector<24x16xf32>
    %740 = vector.shape_cast %739 : vector<24x16xf32> to vector<2x12x16xf32>
    %741 = arith.truncf %737 : vector<2x8x16xf32> to vector<2x8x16xbf16>
    %742 = arith.truncf %734 : vector<2x12x16xf32> to vector<2x12x16xbf16>
    "tpu.trace_start"() <{level = 10 : i32, message = "bth,bsh->bts"}> : () -> ()
    %cst_233 = arith.constant dense<0.000000e+00> : vector<2x8x12xf32>
    %743 = tpu.matmul %741, %742, %cst_233 {dimension_numbers = #tpu.dot_dimension_numbers<[2], [2], [1], [1], [0, 0, 0, 1, 1, 1], [0], [0]>} : vector<2x8x16xbf16>, vector<2x12x16xbf16>, vector<2x8x12xf32> -> vector<2x8x12xf32>
    "tpu.trace_stop"() : () -> ()
    %cst_234 = arith.constant 2.500000e-01 : f32
    %744 = vector.broadcast %cst_234 : f32 to vector<2x8x12xf32>
    %745 = arith.mulf %743, %744 : vector<2x8x12xf32>
    %cst_235 = arith.constant dense<0xFF800000> : vector<2x8xf32>
    %746 = vector.multi_reduction <maximumf>, %745, %cst_235 [2] : vector<2x8x12xf32> to vector<2x8xf32>
    %747 = vector.shape_cast %746 : vector<2x8xf32> to vector<2x8x1xf32>
    %748 = vector.broadcast %747 : vector<2x8x1xf32> to vector<2x8x12xf32>
    %749 = arith.subf %745, %748 : vector<2x8x12xf32>
    %750 = math.exp %749 : vector<2x8x12xf32>
    %cst_236 = arith.constant dense<0.000000e+00> : vector<2x8xf32>
    %751 = vector.multi_reduction <add>, %750, %cst_236 [2] : vector<2x8x12xf32> to vector<2x8xf32>
    %752 = vector.shape_cast %751 : vector<2x8xf32> to vector<2x8x1xf32>
    %753 = vector.broadcast %752 : vector<2x8x1xf32> to vector<2x8x12xf32>
    %754 = arith.divf %750, %753 : vector<2x8x12xf32>
    %c0_237 = arith.constant 0 : index
    %c0_238 = arith.constant 0 : index
    %c0_239 = arith.constant 0 : index
    %755 = vector.load %arg23[%c0_237, %c0_238, %c0_239] : memref<2x8x12xf32, #tpu.memory_space<vmem>>, vector<2x8x12xf32>
    tpu.vector_store %arg23[%c0_237, %c0_238, %c0_239], %754 {strides = array<i32>} : memref<2x8x12xf32, #tpu.memory_space<vmem>>, vector<2x8x12xf32>,
    %756 = arith.truncf %754 : vector<2x8x12xf32> to vector<2x8x12xbf16>
    %757 = arith.truncf %740 : vector<2x12x16xf32> to vector<2x12x16xbf16>
    "tpu.trace_start"() <{level = 10 : i32, message = "bts,bsc->btc"}> : () -> ()
    %cst_240 = arith.constant dense<0.000000e+00> : vector<2x8x16xf32>
    %758 = tpu.matmul %756, %757, %cst_240 {dimension_numbers = #tpu.dot_dimension_numbers<[2], [1], [1], [2], [0, 0, 0, 1, 1, 2], [0], [0]>} : vector<2x8x12xbf16>, vector<2x12x16xbf16>, vector<2x8x16xf32> -> vector<2x8x16xf32>
    "tpu.trace_stop"() : () -> ()
    %759 = vector.shape_cast %758 : vector<2x8x16xf32> to vector<16x16xf32>
    %760 = arith.truncf %759 : vector<16x16xf32> to vector<16x16xbf16>
    %c0_241 = arith.constant 0 : index
    %c0_242 = arith.constant 0 : index
    %761 = vector.load %arg16[%c0_241, %c0_242] : memref<16x16xbf16, #tpu.memory_space<vmem>>, vector<16x16xbf16>
    %cst_243 = arith.constant dense<0.000000e+00> : vector<16x16xf32>
    %762 = tpu.matmul %760, %761, %cst_243 {dimension_numbers = #tpu.dot_dimension_numbers<[1], [0], [0], [1], [0, 0, 1, 1], [], []>} : vector<16x16xbf16>, vector<16x16xbf16>, vector<16x16xf32> -> vector<16x16xf32>
    %c0_244 = arith.constant 0 : index
    %c0_245 = arith.constant 0 : index
    %763 = vector.load %arg17[%c0_244, %c0_245] : memref<16x16xbf16, #tpu.memory_space<vmem>>, vector<16x16xbf16>
    %cst_246 = arith.constant dense<0.000000e+00> : vector<16x16xf32>
    %764 = tpu.matmul %729, %763, %cst_246 {dimension_numbers = #tpu.dot_dimension_numbers<[1], [0], [0], [1], [0, 0, 1, 1], [], []>} : vector<16x16xbf16>, vector<16x16xbf16>, vector<16x16xf32> -> vector<16x16xf32>
    %765 = arith.addf %762, %764 : vector<16x16xf32>
    %c0_247 = arith.constant 0 : index
    %c0_248 = arith.constant 0 : index
    %766 = vector.load %arg18[%c0_247, %c0_248] : memref<1x16xf32, #tpu.memory_space<vmem>>, vector<1x16xf32>
    %767 = vector.broadcast %766 : vector<1x16xf32> to vector<16x16xf32>
    %768 = arith.addf %765, %767 : vector<16x16xf32>
    %769 = math.tanh %768 : vector<16x16xf32>
    %770 = arith.truncf %769 : vector<16x16xf32> to vector<16x16xbf16>
    %c0_249 = arith.constant 0 : index
    %c0_250 = arith.constant 0 : index
    %771 = vector.load %arg19[%c0_249, %c0_250] : memref<16x32xbf16, #tpu.memory_space<vmem>>, vector<16x32xbf16>
    %cst_251 = arith.constant dense<0.000000e+00> : vector<16x32xf32>
    %772 = tpu.matmul %770, %771, %cst_251 {dimension_numbers = #tpu.dot_dimension_numbers<[1], [0], [0], [1], [0, 0, 1, 1], [], []>} : vector<16x16xbf16>, vector<16x32xbf16>, vector<16x32xf32> -> vector<16x32xf32>
    %c0_252 = arith.constant 0 : index
    %c0_253 = arith.constant 0 : index
    %773 = vector.load %arg20[%c0_252, %c0_253] : memref<1x32xf32, #tpu.memory_space<vmem>>, vector<1x32xf32>
    %774 = vector.broadcast %773 : vector<1x32xf32> to vector<16x32xf32>
    %775 = arith.addf %772, %774 : vector<16x32xf32>
    %cst_254 = arith.constant dense<0xFF800000> : vector<16xf32>
    %776 = vector.multi_reduction <maximumf>, %775, %cst_254 [1] : vector<16x32xf32> to vector<16xf32>
    %777 = vector.shape_cast %776 : vector<16xf32> to vector<16x1xf32>
    %778 = vector.broadcast %777 : vector<16x1xf32> to vector<16x32xf32>
    %779 = arith.subf %775, %778 : vector<16x32xf32>
    %780 = math.exp %779 : vector<16x32xf32>
    %cst_255 = arith.constant dense<0.000000e+00> : vector<16xf32>
    %781 = vector.multi_reduction <add>, %780, %cst_255 [1] : vector<16x32xf32> to vector<16xf32>
    %782 = vector.shape_cast %781 : vector<16xf32> to vector<16x1xf32>
    %783 = math.log %782 : vector<16x1xf32>
    %784 = arith.addf %783, %777 : vector<16x1xf32>
    %785 = vector.broadcast %784 : vector<16x1xf32> to vector<16x32xf32>
    %786 = arith.subf %775, %785 : vector<16x32xf32>
    %787 = vector.shape_cast %786 : vector<16x32xf32> to vector<2x8x32xf32>
    %c0_256 = arith.constant 0 : index
    %c0_257 = arith.constant 0 : index
    %c0_258 = arith.constant 0 : index
    %788 = vector.load %arg21[%c0_256, %c0_257, %c0_258] : memref<2x8x32xf32, #tpu.memory_space<vmem>>, vector<2x8x32xf32>
    tpu.vector_store %arg21[%c0_256, %c0_257, %c0_258], %787 {strides = array<i32>} : memref<2x8x32xf32, #tpu.memory_space<vmem>>, vector<2x8x32xf32>,
    return
  }
  func.func @transform_0(%arg0: i32) -> (i32, i32) {
    %c0_i32 = arith.constant 0 : i32
    %c0_i32_0 = arith.constant 0 : i32
    return %arg0, %c0_i32 : i32, i32
  }
  func.func @transform_1(%arg0: i32) -> (i32, i32, i32) {
    %c0_i32 = arith.constant 0 : i32
    %c0_i32_0 = arith.constant 0 : i32
    %c0_i32_1 = arith.constant 0 : i32
    return %c0_i32, %arg0, %c0_i32_0 : i32, i32, i32
  }
  func.func @transform_2(%arg0: i32) -> (i32, i32, i32) {
    %c0_i32 = arith.constant 0 : i32
    %c0_i32_0 = arith.constant 0 : i32
    %c0_i32_1 = arith.constant 0 : i32
    return %c0_i32, %arg0, %c0_i32_0 : i32, i32, i32
  }
  func.func @transform_3(%arg0: i32) -> (i32, i32, i32) {
    %c0_i32 = arith.constant 0 : i32
    %c0_i32_0 = arith.constant 0 : i32
    %c0_i32_1 = arith.constant 0 : i32
    return %arg0, %c0_i32, %c0_i32_0 : i32, i32, i32
  }
  func.func @transform_4(%arg0: i32) -> (i32, i32) {
    %c0_i32 = arith.constant 0 : i32
    %c0_i32_0 = arith.constant 0 : i32
    %c0_i32_1 = arith.constant 0 : i32
    return %c0_i32, %c0_i32_0 : i32, i32
  }
  func.func @transform_5(%arg0: i32) -> (i32, i32) {
    %c0_i32 = arith.constant 0 : i32
    %c0_i32_0 = arith.constant 0 : i32
    %c0_i32_1 = arith.constant 0 : i32
    return %c0_i32, %c0_i32_0 : i32, i32
  }
  func.func @transform_6(%arg0: i32) -> (i32, i32) {
    %c0_i32 = arith.constant 0 : i32
    %c0_i32_0 = arith.constant 0 : i32
    %c0_i32_1 = arith.constant 0 : i32
    return %c0_i32, %c0_i32_0 : i32, i32
  }
  func.func @transform_7(%arg0: i32) -> (i32, i32) {
    %c0_i32 = arith.constant 0 : i32
    %c0_i32_0 = arith.constant 0 : i32
    %c0_i32_1 = arith.constant 0 : i32
    return %c0_i32, %c0_i32_0 : i32, i32
  }
  func.func @transform_8(%arg0: i32) -> (i32, i32) {
    %c0_i32 = arith.constant 0 : i32
    %c0_i32_0 = arith.constant 0 : i32
    %c0_i32_1 = arith.constant 0 : i32
    return %c0_i32, %c0_i32_0 : i32, i32
  }
  func.func @transform_9(%arg0: i32) -> (i32, i32) {
    %c0_i32 = arith.constant 0 : i32
    %c0_i32_0 = arith.constant 0 : i32
    %c0_i32_1 = arith.constant 0 : i32
    return %c0_i32, %c0_i32_0 : i32, i32
  }
  func.func @transform_10(%arg0: i32) -> (i32, i32) {
    %c0_i32 = arith.constant 0 : i32
    %c0_i32_0 = arith.constant 0 : i32
    %c0_i32_1 = arith.constant 0 : i32
    return %c0_i32, %c0_i32_0 : i32, i32
  }
  func.func @transform_11(%arg0: i32) -> (i32, i32) {
    %c0_i32 = arith.constant 0 : i32
    %c0_i32_0 = arith.constant 0 : i32
    %c0_i32_1 = arith.constant 0 : i32
    return %c0_i32, %c0_i32_0 : i32, i32
  }
  func.func @transform_12(%arg0: i32) -> (i32, i32) {
    %c0_i32 = arith.constant 0 : i32
    %c0_i32_0 = arith.constant 0 : i32
    %c0_i32_1 = arith.constant 0 : i32
    return %c0_i32, %c0_i32_0 : i32, i32
  }
  func.func @transform_13(%arg0: i32) -> (i32, i32) {
    %c0_i32 = arith.constant 0 : i32
    %c0_i32_0 = arith.constant 0 : i32
    %c0_i32_1 = arith.constant 0 : i32
    return %c0_i32, %c0_i32_0 : i32, i32
  }
  func.func @transform_14(%arg0: i32) -> (i32, i32) {
    %c0_i32 = arith.constant 0 : i32
    %c0_i32_0 = arith.constant 0 : i32
    %c0_i32_1 = arith.constant 0 : i32
    return %c0_i32, %c0_i32_0 : i32, i32
  }
  func.func @transform_15(%arg0: i32) -> (i32, i32) {
    %c0_i32 = arith.constant 0 : i32
    %c0_i32_0 = arith.constant 0 : i32
    %c0_i32_1 = arith.constant 0 : i32
    return %c0_i32, %c0_i32_0 : i32, i32
  }
  func.func @transform_16(%arg0: i32) -> (i32, i32) {
    %c0_i32 = arith.constant 0 : i32
    %c0_i32_0 = arith.constant 0 : i32
    %c0_i32_1 = arith.constant 0 : i32
    return %c0_i32, %c0_i32_0 : i32, i32
  }
  func.func @transform_17(%arg0: i32) -> (i32, i32) {
    %c0_i32 = arith.constant 0 : i32
    %c0_i32_0 = arith.constant 0 : i32
    %c0_i32_1 = arith.constant 0 : i32
    return %c0_i32, %c0_i32_0 : i32, i32
  }
  func.func @transform_18(%arg0: i32) -> (i32, i32) {
    %c0_i32 = arith.constant 0 : i32
    %c0_i32_0 = arith.constant 0 : i32
    %c0_i32_1 = arith.constant 0 : i32
    return %c0_i32, %c0_i32_0 : i32, i32
  }
  func.func @transform_19(%arg0: i32) -> (i32, i32) {
    %c0_i32 = arith.constant 0 : i32
    %c0_i32_0 = arith.constant 0 : i32
    %c0_i32_1 = arith.constant 0 : i32
    return %c0_i32, %c0_i32_0 : i32, i32
  }
  func.func @transform_20(%arg0: i32) -> (i32, i32, i32) {
    %c0_i32 = arith.constant 0 : i32
    %c0_i32_0 = arith.constant 0 : i32
    %c0_i32_1 = arith.constant 0 : i32
    return %arg0, %c0_i32, %c0_i32_0 : i32, i32, i32
  }
  func.func @transform_21(%arg0: i32) -> (i32, i32, i32) {
    %c0_i32 = arith.constant 0 : i32
    %c0_i32_0 = arith.constant 0 : i32
    %c0_i32_1 = arith.constant 0 : i32
    return %c0_i32, %arg0, %c0_i32_0 : i32, i32, i32
  }
  func.func @transform_22(%arg0: i32) -> (i32, i32, i32) {
    %c0_i32 = arith.constant 0 : i32
    %c0_i32_0 = arith.constant 0 : i32
    %c0_i32_1 = arith.constant 0 : i32
    return %arg0, %c0_i32, %c0_i32_0 : i32, i32, i32
  }
}

</mosaic_0001>

<bundles_post_ra>
// kernel: decoder_forward.1
= control target key start
LH: loop header
LB: loop body
LE: loop exit
PB: predicated region body
PF: predicated region fallthrough
CT: control target
= control target key end

     0   :  { %s5220_s0 = inlined_call_operand.hbm [shape: s32[2,1], index: 0, kind: input, shape index: {}]   ;;  %s5221_s1 = inlined_call_operand.hbm [shape: bf16[8,2,16], index: 1, kind: input, shape index: {}]   ;;  %s5222_s2 = inlined_call_operand.hbm [shape: f32[2,2,16], index: 2, kind: input, shape index: {}]   ;;  %s5223_s3 = inlined_call_operand.hbm [shape: bf16[2,12,16], index: 3, kind: input, shape index: {}]   ;;  %s5224_s4 = inlined_call_operand.hbm [shape: bf16[16,48], index: 4, kind: input, shape index: {}]   ;;  %s5225_s5 = inlined_call_operand.hbm [shape: bf16[16,48], index: 5, kind: input, shape index: {}]   ;;  %s5226_s6 = inlined_call_operand.hbm [shape: f32[1,48], index: 6, kind: input, shape index: {}]   ;;  %s5227_s7 = inlined_call_operand.hbm [shape: f32[1,48], index: 7, kind: input, shape index: {}]   ;;  %s5228_s8 = inlined_call_operand.hbm [shape: bf16[16,48], index: 8, kind: input, shape index: {}]   ;;  %s5229_s9 = inlined_call_operand.hbm [shape: bf16[16,48], index: 9, kind: input, shape index: {}]   ;;  %s5230_s10 = inlined_call_operand.hbm [shape: f32[1,48], index: 10, kind: input, shape index: {}]   ;;  %s5231_s11 = inlined_call_operand.hbm [shape: f32[1,48], index: 11, kind: input, shape index: {}]   ;;  %s5232_s12 = inlined_call_operand.hbm [shape: bf16[16,16], index: 12, kind: input, shape index: {}]   ;;  %s5233_s13 = inlined_call_operand.hbm [shape: bf16[16,16], index: 13, kind: input, shape index: {}]   ;;  %s5234_s14 = inlined_call_operand.hbm [shape: bf16[16,16], index: 14, kind: input, shape index: {}]   ;;  %s5235_s15 = inlined_call_operand.hbm [shape: bf16[16,16], index: 15, kind: input, shape index: {}]   ;;  %s5236_s16 = inlined_call_operand.hbm [shape: bf16[16,16], index: 16, kind: input, shape index: {}]   ;;  %s5237_s17 = inlined_call_operand.hbm [shape: f32[1,16], index: 17, kind: input, shape index: {}]   ;;  %s5238_s18 = inlined_call_operand.hbm [shape: bf16[16,32], index: 18, kind: input, shape index: {}]   ;;  %s5239_s19 = inlined_call_operand.hbm [shape: f32[1,32], index: 19, kind: input, shape index: {}]   ;;  %s5240_s20 = inlined_call_operand.hbm [shape: f32[2,8,32], index: 20, kind: output, shape index: {0}]   ;;  %s5241_s21 = inlined_call_operand.hbm [shape: f32[2,2,16], index: 21, kind: output, shape index: {1}]   ;;  %s5242_s22 = inlined_call_operand.hbm [shape: f32[2,8,12], index: 22, kind: output, shape index: {2}]  }
   0x1   :  { %5255 = sst [smem:[#allocation55_spill]] %s5220_s0 }
   0x2   :  { %5256 = sst [smem:[#allocation56_spill]] %s5221_s1 }
   0x3   :  { %5257 = sst [smem:[#allocation57_spill]] %s5222_s2 }
   0x4   :  { %5258 = sst [smem:[#allocation58_spill]] %s5223_s3 }
   0x5   :  { %5259 = sst [smem:[#allocation59_spill]] %s5224_s4 }
   0x6   :  { %5260 = sst [smem:[#allocation60_spill]] %s5225_s5 }
   0x7   :  { %5261 = sst [smem:[#allocation61_spill]] %s5226_s6 }
   0x8   :  { %5262 = sst [smem:[#allocation62_spill]] %s5240_s20 }
   0x9   :  { %5263 = sst [smem:[#allocation63_spill]] %s5241_s21 }
   0xa   :  { %5264 = sst [smem:[#allocation64_spill]] %s5242_s22 }
   0xb   :  { %28 = vsyncpa [#allocation7], 0 }
   0xc   :  { %29 = vsyncpa [#allocation10], 0 }
   0xd   :  { %30 = vsyncpa [#allocation13], 0 }
   0xe   :  { %31 = vsyncpa [#allocation16], 0 }
   0xf   :  { %32 = vsyncpa [#allocation19], 0 }
  0x10   :  { %33 = vsyncpa [#allocation22], 0 }
  0x11   :  { %34 = vsyncpa [#allocation25], 0 }
  0x12   :  { %35 = vsyncpa [#allocation28], 0 }
  0x13   :  { %36 = vsyncpa [#allocation31], 0 }
  0x14   :  { %37 = vsyncpa [#allocation34], 0 }
  0x15   :  { %38 = vsyncpa [#allocation37], 0 }
  0x16   :  { %39 = vsyncpa [#allocation8], 0 }
  0x17   :  { %40 = vsyncpa [#allocation40], 0  ;;  %s4216_s3 = smov [#allocation9]   ;;  %s5265_s4 = sld [smem:[#allocation56_spill]] }
  0x18   :  { %s56_s28 = sshll.u32 %s4216_s3, 4  ;;  %s57_s28 = int_to_ptr.vmem [resolvable:$true] %s56_s28 }
  0x1d   :  { %s3684_s0 = scalar_lea.hbm %s5265_s4, 128 }
  0x1e   :  { %p3685_p0 = scmp.ne.s32.totalorder %s5265_s4, %s3684_s0  ;;  %p3688_p1 = scmp.lt.u32.totalorder %s3684_s0, %s5265_s4 }
  0x20   :  { %p3690_p2 = pnand %p3688_p1, %p3685_p0 }
  0x22   :  { %3693 = shalt.err (!%p3690_p2)
}
  0x23   :  { %s3694_s6 = scalar_lea.vmem %s57_s28, 128  ;;  %p3699_p4 = scmp.lt.s32.totalorder %s57_s28, %s57_s28 }
  0x24   :  { %p3695_p3 = scmp.ne.s32.totalorder %s57_s28, %s3694_s6  ;;  %p3700_p5 = scmp.lt.s32.totalorder %s3694_s6, %s3694_s6 }
  0x26   :  { %p3701_p6 = por %p3700_p5, %p3699_p4 }
  0x28   :  { %p3702_p7 = pnand %p3701_p6, %p3695_p3 }
  0x2a   :  { %3705 = shalt.err (!%p3702_p7)
}
  0x2b   :  { %s5252_s25 = smov 16   ;;  %s4218_s26 = smov 1  }
  0x2c   :  { %62 = dma.hbm_to_vmem [thread:$0]  %s5265_s4, 128, %s57_s28, [#allocation10], %s5252_s25, %s5252_s25, %s4218_s26  }
  0x2d   :  { %s4219_s3 = smov [#allocation12]   ;;  %s5266_s23 = sld [smem:[#allocation58_spill]] }
  0x2e   :  { %s80_s29 = sshll.u32 %s4219_s3, 4  ;;  %s81_s29 = int_to_ptr.vmem [resolvable:$true] %s80_s29 }
  0x33   :  { %s3706_s1 = scalar_lea.hbm %s5266_s23, 256 }
  0x34   :  { %p3707_p8 = scmp.ne.s32.totalorder %s5266_s23, %s3706_s1  ;;  %p3710_p9 = scmp.lt.u32.totalorder %s3706_s1, %s5266_s23 }
  0x36   :  { %p3712_p10 = pnand %p3710_p9, %p3707_p8 }
  0x38   :  { %3715 = shalt.err (!%p3712_p10)
}
  0x39   :  { %s3716_s22 = scalar_lea.vmem %s81_s29, 256  ;;  %p3721_p12 = scmp.lt.s32.totalorder %s81_s29, %s81_s29 }
  0x3a   :  { %p3717_p11 = scmp.ne.s32.totalorder %s81_s29, %s3716_s22  ;;  %p3722_p13 = scmp.lt.s32.totalorder %s3716_s22, %s3716_s22 }
  0x3c   :  { %p3723_p0 = por %p3722_p13, %p3721_p12 }
  0x3e   :  { %p3724_p1 = pnand %p3723_p0, %p3717_p11 }
  0x40   :  { %3727 = shalt.err (!%p3724_p1)
}
  0x41   :  { %s4220_s28 = smov 64   ;;  %s4221_s4 = smov 4  }
  0x42   :  { %86 = dma.hbm_to_vmem [thread:$0]  %s5266_s23, 256, %s81_s29, [#allocation13], %s4220_s28, %s4220_s28, %s4221_s4  }
  0x43   :  { %s4222_s20 = smov [#allocation15]   ;;  %s4223_s3 = smov [#allocation18]  }
  0x44   :  { %s104_s27 = sshll.u32 %s4222_s20, 4  ;;  %s127_s30 = sshll.u32 %s4223_s3, 4  ;;  %s105_s27 = int_to_ptr.vmem [resolvable:$true] %s104_s27  ;;  %s128_s30 = int_to_ptr.vmem [resolvable:$true] %s127_s30 }
  0x45   :  { %s5267_s1 = sld [smem:[#allocation60_spill]] }
  0x4b   :  { %s3728_s5 = scalar_lea.hbm %s5267_s1, 128 }
  0x4c   :  { %p3729_p2 = scmp.ne.s32.totalorder %s5267_s1, %s3728_s5  ;;  %p3732_p3 = scmp.lt.u32.totalorder %s3728_s5, %s5267_s1 }
  0x4e   :  { %p3734_p4 = pnand %p3732_p3, %p3729_p2 }
  0x50   :  { %3737 = shalt.err (!%p3734_p4)
}
  0x51   :  { %s3738_s29 = scalar_lea.vmem %s105_s27, 128  ;;  %p3743_p6 = scmp.lt.s32.totalorder %s105_s27, %s105_s27 }
  0x52   :  { %p3739_p5 = scmp.ne.s32.totalorder %s105_s27, %s3738_s29  ;;  %p3744_p7 = scmp.lt.s32.totalorder %s3738_s29, %s3738_s29 }
  0x54   :  { %p3745_p8 = por %p3744_p7, %p3743_p6 }
  0x56   :  { %p3746_p9 = pnand %p3745_p8, %p3739_p5 }
  0x58   :  { %3749 = shalt.err (!%p3746_p9)
}
  0x59   :  { %110 = dma.hbm_to_vmem [thread:$0]  %s5267_s1, 128, %s105_s27, [#allocation16], %s4220_s28, %s4220_s28, %s4221_s4  }
  0x5a   :  { %s3750_s21 = scalar_lea.hbm %s5227_s7, 16 }
  0x5b   :  { %p3751_p10 = scmp.ne.s32.totalorder %s5227_s7, %s3750_s21  ;;  %p3754_p11 = scmp.lt.u32.totalorder %s3750_s21, %s5227_s7 }
  0x5d   :  { %p3756_p12 = pnand %p3754_p11, %p3751_p10 }
  0x5f   :  { %3759 = shalt.err (!%p3756_p12)
}
  0x60   :  { %s3760_s5 = scalar_lea.vmem %s128_s30, 16  ;;  %s3764_s24 = scalar_lea.vmem %s128_s30, 32 }
  0x61   :  { %p3761_p13 = scmp.ne.s32.totalorder %s128_s30, %s3760_s5  ;;  %p3765_p0 = scmp.lt.s32.totalorder %s128_s30, %s128_s30 }
  0x62   :  { %p3766_p1 = scmp.lt.s32.totalorder %s3764_s24, %s3760_s5 }
  0x64   :  { %p3767_p2 = por %p3766_p1, %p3765_p0 }
  0x66   :  { %p3768_p3 = pnand %p3767_p2, %p3761_p13 }
  0x68   :  { %3771 = shalt.err (!%p3768_p3)
}
  0x69   :  { %130 = dma.hbm_to_vmem [thread:$0]  %s5227_s7, 16, %s128_s30, [#allocation19]  }
  0x6a   :  { %s4224_s6 = smov [#allocation21]   ;;  %s4225_s23 = smov [#allocation24]  }
  0x6b   :  { %s148_s29 = sshll.u32 %s4224_s6, 4  ;;  %s171_s26 = sshll.u32 %s4225_s23, 4  ;;  %s149_s29 = int_to_ptr.vmem [resolvable:$true] %s148_s29  ;;  %s172_s26 = int_to_ptr.vmem [resolvable:$true] %s171_s26 }
  0x6c   :  { %s3772_s21 = scalar_lea.hbm %s5229_s9, 128 }
  0x6d   :  { %p3773_p4 = scmp.ne.s32.totalorder %s5229_s9, %s3772_s21  ;;  %p3776_p5 = scmp.lt.u32.totalorder %s3772_s21, %s5229_s9 }
  0x6f   :  { %p3778_p6 = pnand %p3776_p5, %p3773_p4 }
  0x71   :  { %3781 = shalt.err (!%p3778_p6)
}
  0x72   :  { %s3782_s7 = scalar_lea.vmem %s149_s29, 128  ;;  %p3787_p8 = scmp.lt.s32.totalorder %s149_s29, %s149_s29 }
  0x73   :  { %p3783_p7 = scmp.ne.s32.totalorder %s149_s29, %s3782_s7  ;;  %p3788_p9 = scmp.lt.s32.totalorder %s3782_s7, %s3782_s7 }
  0x75   :  { %p3789_p10 = por %p3788_p9, %p3787_p8 }
  0x77   :  { %p3790_p11 = pnand %p3789_p10, %p3783_p7 }
  0x79   :  { %3793 = shalt.err (!%p3790_p11)
}
  0x7a   :  { %154 = dma.hbm_to_vmem [thread:$0]  %s5229_s9, 128, %s149_s29, [#allocation22], %s4220_s28, %s4220_s28, %s4221_s4  }
  0x7b   :  { %s3794_s1 = scalar_lea.hbm %s5231_s11, 16 }
  0x7c   :  { %p3795_p12 = scmp.ne.s32.totalorder %s5231_s11, %s3794_s1  ;;  %p3798_p13 = scmp.lt.u32.totalorder %s3794_s1, %s5231_s11 }
  0x7e   :  { %p3800_p0 = pnand %p3798_p13, %p3795_p12 }
  0x80   :  { %3803 = shalt.err (!%p3800_p0)
}
  0x81   :  { %s3804_s21 = scalar_lea.vmem %s172_s26, 16  ;;  %s3808_s25 = scalar_lea.vmem %s172_s26, 32 }
  0x82   :  { %p3805_p1 = scmp.ne.s32.totalorder %s172_s26, %s3804_s21  ;;  %p3809_p2 = scmp.lt.s32.totalorder %s172_s26, %s172_s26 }
  0x83   :  { %p3810_p3 = scmp.lt.s32.totalorder %s3808_s25, %s3804_s21 }
  0x85   :  { %p3811_p4 = por %p3810_p3, %p3809_p2 }
  0x87   :  { %p3812_p5 = pnand %p3811_p4, %p3805_p1 }
  0x89   :  { %3815 = shalt.err (!%p3812_p5)
}
  0x8a   :  { %174 = dma.hbm_to_vmem [thread:$0]  %s5231_s11, 16, %s172_s26, [#allocation25]  }
  0x8b   :  { %s4226_s3 = smov [#allocation27]   ;;  %s4227_s22 = smov [#allocation30]  }
  0x8c   :  { %s192_s0 = sshll.u32 %s4226_s3, 4  ;;  %s216_s7 = sshll.u32 %s4227_s22, 4  ;;  %s193_s0 = int_to_ptr.vmem [resolvable:$true] %s192_s0  ;;  %s4453_s7 = int_to_ptr.vmem [resolvable:$true] %s216_s7 }
  0x8d   :  { %s3816_s24 = scalar_lea.hbm %s5233_s13, 128 }
  0x8e   :  { %p3817_p6 = scmp.ne.s32.totalorder %s5233_s13, %s3816_s24  ;;  %p3820_p7 = scmp.lt.u32.totalorder %s3816_s24, %s5233_s13 }
  0x90   :  { %p3822_p8 = pnand %p3820_p7, %p3817_p6 }
  0x92   :  { %3825 = shalt.err (!%p3822_p8)
}
  0x93   :  { %s3826_s11 = scalar_lea.vmem %s193_s0, 128  ;;  %p3831_p10 = scmp.lt.s32.totalorder %s193_s0, %s193_s0 }
  0x94   :  { %p3827_p9 = scmp.ne.s32.totalorder %s193_s0, %s3826_s11  ;;  %p3832_p11 = scmp.lt.s32.totalorder %s3826_s11, %s3826_s11 }
  0x96   :  { %p3833_p12 = por %p3832_p11, %p3831_p10 }
  0x98   :  { %p3834_p13 = pnand %p3833_p12, %p3827_p9 }
  0x9a   :  { %3837 = shalt.err (!%p3834_p13)
}
  0x9b   :  { %198 = dma.hbm_to_vmem [thread:$0]  %s5233_s13, 128, %s193_s0, [#allocation28], %s4220_s28, %s4220_s28, %s4221_s4  }
  0x9c   :  { %s3838_s25 = scalar_lea.hbm %s5235_s15, 128 }
  0x9d   :  { %p3839_p0 = scmp.ne.s32.totalorder %s5235_s15, %s3838_s25  ;;  %p3842_p1 = scmp.lt.u32.totalorder %s3838_s25, %s5235_s15 }
  0x9f   :  { %p3844_p2 = pnand %p3842_p1, %p3839_p0 }
  0xa1   :  { %3847 = shalt.err (!%p3844_p2)
}
  0xa2   :  { %s3848_s30 = scalar_lea.vmem %s4453_s7, 128  ;;  %p3853_p4 = scmp.lt.s32.totalorder %s4453_s7, %s4453_s7 }
  0xa3   :  { %p3849_p3 = scmp.ne.s32.totalorder %s4453_s7, %s3848_s30  ;;  %p3854_p5 = scmp.lt.s32.totalorder %s3848_s30, %s3848_s30 }
  0xa5   :  { %p3855_p6 = por %p3854_p5, %p3853_p4 }
  0xa7   :  { %p3856_p7 = pnand %p3855_p6, %p3849_p3 }
  0xa9   :  { %3859 = shalt.err (!%p3856_p7)
}
  0xaa   :  { %222 = dma.hbm_to_vmem [thread:$0]  %s5235_s15, 128, %s4453_s7, [#allocation31], %s4220_s28, %s4220_s28, %s4221_s4  }
  0xab   :  { %s4228_s5 = smov [#allocation33]   ;;  %s4229_s27 = smov [#allocation6]  }
  0xac   :  { %s241_s24 = sshll.u32 %s4228_s5, 4  ;;  %s47_s1 = sshll.u32 %s4229_s27, 4  ;;  %s242_s24 = int_to_ptr.vmem [resolvable:$true] %s241_s24  ;;  %s48_s1 = int_to_ptr.vmem [resolvable:$true] %s47_s1 }
  0xad   :  { %s3860_s11 = scalar_lea.hbm %s5237_s17, 16 }
  0xae   :  { %p3861_p8 = scmp.ne.s32.totalorder %s5237_s17, %s3860_s11  ;;  %p3864_p9 = scmp.lt.u32.totalorder %s3860_s11, %s5237_s17 }
  0xb0   :  { %p3866_p10 = pnand %p3864_p9, %p3861_p8 }
  0xb2   :  { %3869 = shalt.err (!%p3866_p10)
}
  0xb3   :  { %s3870_s15 = scalar_lea.vmem %s242_s24, 16  ;;  %s3874_s7 = scalar_lea.vmem %s242_s24, 32 }
  0xb4   :  { %p3871_p11 = scmp.ne.s32.totalorder %s242_s24, %s3870_s15  ;;  %p3875_p12 = scmp.lt.s32.totalorder %s242_s24, %s242_s24 }
  0xb5   :  { %p3876_p13 = scmp.lt.s32.totalorder %s3874_s7, %s3870_s15 }
  0xb7   :  { %p3877_p0 = por %p3876_p13, %p3875_p12 }
  0xb9   :  { %p3878_p1 = pnand %p3877_p0, %p3871_p11 }
  0xbb   :  { %3881 = shalt.err (!%p3878_p1)
}
  0xbc   :  { %244 = dma.hbm_to_vmem [thread:$0]  %s5237_s17, 16, %s242_s24, [#allocation34]  }
  0xbd   :  { %s5268_s22 = sld [smem:[#allocation55_spill]] }
  0xc3   :  { %s3882_s30 = scalar_lea.hbm %s5268_s22, 32 }
  0xc4   :  { %p3883_p2 = scmp.ne.s32.totalorder %s5268_s22, %s3882_s30  ;;  %p3886_p3 = scmp.lt.u32.totalorder %s3882_s30, %s5268_s22 }
  0xc6   :  { %p3888_p4 = pnand %p3886_p3, %p3883_p2 }
  0xc8   :  { %3891 = shalt.err (!%p3888_p4)
}
  0xc9   :  { %s3892_s6 = scalar_lea.vmem %s48_s1, 32  ;;  %p3897_p6 = scmp.lt.s32.totalorder %s48_s1, %s48_s1 }
  0xca   :  { %p3893_p5 = scmp.ne.s32.totalorder %s48_s1, %s3892_s6  ;;  %p3898_p7 = scmp.lt.s32.totalorder %s3892_s6, %s3892_s6 }
  0xcc   :  { %p3899_p8 = por %p3898_p7, %p3897_p6 }
  0xce   :  { %p3900_p9 = pnand %p3899_p8, %p3893_p5 }
  0xd0   :  { %3903 = shalt.err (!%p3900_p9)
}
  0xd1   :  { %50 = dma.hbm_to_vmem [thread:$0]  %s5268_s22, 32, %s48_s1, [#allocation7]  }
  0xd2   :  { %s4230_s23 = smov [#allocation11]   ;;  %s5269_s20 = sld [smem:[#allocation57_spill]] }
  0xd3   :  { %s68_s11 = sshll.u32 %s4230_s23, 4  ;;  %s69_s11 = int_to_ptr.vmem [resolvable:$true] %s68_s11 }
  0xd8   :  { %s3904_s21 = scalar_lea.hbm %s5269_s20, 64 }
  0xd9   :  { %p3905_p10 = scmp.ne.s32.totalorder %s5269_s20, %s3904_s21  ;;  %p3908_p11 = scmp.lt.u32.totalorder %s3904_s21, %s5269_s20 }
  0xdb   :  { %p3910_p12 = pnand %p3908_p11, %p3905_p10 }
  0xdd   :  { %3913 = shalt.err (!%p3910_p12)
}
  0xde   :  { %s3914_s29 = scalar_lea.vmem %s69_s11, 64  ;;  %p3919_p0 = scmp.lt.s32.totalorder %s69_s11, %s69_s11 }
  0xdf   :  { %p3915_p13 = scmp.ne.s32.totalorder %s69_s11, %s3914_s29  ;;  %p3920_p1 = scmp.lt.s32.totalorder %s3914_s29, %s3914_s29 }
  0xe1   :  { %p3921_p2 = por %p3920_p1, %p3919_p0 }
  0xe3   :  { %p3922_p3 = pnand %p3921_p2, %p3915_p13 }
  0xe5   :  { %3925 = shalt.err (!%p3922_p3)
}
  0xe6   :  { %s4231_s1 = smov 32   ;;  %s4232_s3 = smov 2  }
  0xe7   :  { %74 = dma.hbm_to_vmem [thread:$0]  %s5269_s20, 64, %s69_s11, [#allocation10], %s4231_s1, %s4231_s1, %s4232_s3  }
  0xe8   :  { %s4233_s13 = smov [#allocation14]   ;;  %s4234_s5 = smov [#allocation17]  }
  0xe9   :  { %s92_s0 = sshll.u32 %s4233_s13, 4  ;;  %s117_s27 = sshll.u32 %s4234_s5, 4  ;;  %s93_s0 = int_to_ptr.vmem [resolvable:$true] %s92_s0  ;;  %s118_s27 = int_to_ptr.vmem [resolvable:$true] %s117_s27 }
  0xea   :  { %s5270_s24 = sld [smem:[#allocation59_spill]] }
  0xf0   :  { %s3926_s23 = scalar_lea.hbm %s5270_s24, 128 }
  0xf1   :  { %p3927_p4 = scmp.ne.s32.totalorder %s5270_s24, %s3926_s23  ;;  %p3930_p5 = scmp.lt.u32.totalorder %s3926_s23, %s5270_s24 }
  0xf3   :  { %p3932_p6 = pnand %p3930_p5, %p3927_p4 }
  0xf5   :  { %3935 = shalt.err (!%p3932_p6)
}
  0xf6   :  { %s3936_s11 = scalar_lea.vmem %s93_s0, 128  ;;  %p3941_p8 = scmp.lt.s32.totalorder %s93_s0, %s93_s0 }
  0xf7   :  { %p3937_p7 = scmp.ne.s32.totalorder %s93_s0, %s3936_s11  ;;  %p3942_p9 = scmp.lt.s32.totalorder %s3936_s11, %s3936_s11 }
  0xf9   :  { %p3943_p10 = por %p3942_p9, %p3941_p8 }
  0xfb   :  { %p3944_p11 = pnand %p3943_p10, %p3937_p7 }
  0xfd   :  { %3947 = shalt.err (!%p3944_p11)
}
  0xfe   :  { %98 = dma.hbm_to_vmem [thread:$0]  %s5270_s24, 128, %s93_s0, [#allocation13], %s4220_s28, %s4220_s28, %s4221_s4  }
  0xff   :  { %s5271_s29 = sld [smem:[#allocation61_spill]] }
 0x105   :  { %s3948_s22 = scalar_lea.hbm %s5271_s29, 16 }
 0x106   :  { %p3949_p12 = scmp.ne.s32.totalorder %s5271_s29, %s3948_s22  ;;  %p3952_p13 = scmp.lt.u32.totalorder %s3948_s22, %s5271_s29 }
 0x108   :  { %p3954_p0 = pnand %p3952_p13, %p3949_p12 }
 0x10a   :  { %3957 = shalt.err (!%p3954_p0)
}
 0x10b   :  { %s3958_s17 = scalar_lea.vmem %s118_s27, 16  ;;  %s3962_s23 = scalar_lea.vmem %s118_s27, 32 }
 0x10c   :  { %p3959_p1 = scmp.ne.s32.totalorder %s118_s27, %s3958_s17  ;;  %p3963_p2 = scmp.lt.s32.totalorder %s118_s27, %s118_s27 }
 0x10d   :  { %p3964_p3 = scmp.lt.s32.totalorder %s3962_s23, %s3958_s17 }
 0x10f   :  { %p3965_p4 = por %p3964_p3, %p3963_p2 }
 0x111   :  { %p3966_p5 = pnand %p3965_p4, %p3959_p1 }
 0x113   :  { %3969 = shalt.err (!%p3966_p5)
}
 0x114   :  { %120 = dma.hbm_to_vmem [thread:$0]  %s5271_s29, 16, %s118_s27, [#allocation16]  }
 0x115   :  { %s4235_s26 = smov [#allocation20]   ;;  %s4236_s21 = smov [#allocation23]  }
 0x116   :  { %s136_s2 = sshll.u32 %s4235_s26, 4  ;;  %s161_s15 = sshll.u32 %s4236_s21, 4  ;;  %s137_s2 = int_to_ptr.vmem [resolvable:$true] %s136_s2  ;;  %s162_s15 = int_to_ptr.vmem [resolvable:$true] %s161_s15 }
 0x117   :  { %s3970_s7 = scalar_lea.hbm %s5228_s8, 128 }
 0x118   :  { %p3971_p6 = scmp.ne.s32.totalorder %s5228_s8, %s3970_s7  ;;  %p3974_p7 = scmp.lt.u32.totalorder %s3970_s7, %s5228_s8 }
 0x11a   :  { %p3976_p8 = pnand %p3974_p7, %p3971_p6 }
 0x11c   :  { %3979 = shalt.err (!%p3976_p8)
}
 0x11d   :  { %s3980_s27 = scalar_lea.vmem %s137_s2, 128  ;;  %p3985_p10 = scmp.lt.s32.totalorder %s137_s2, %s137_s2 }
 0x11e   :  { %p3981_p9 = scmp.ne.s32.totalorder %s137_s2, %s3980_s27  ;;  %p3986_p11 = scmp.lt.s32.totalorder %s3980_s27, %s3980_s27 }
 0x120   :  { %p3987_p12 = por %p3986_p11, %p3985_p10 }
 0x122   :  { %p3988_p13 = pnand %p3987_p12, %p3981_p9 }
 0x124   :  { %3991 = shalt.err (!%p3988_p13)
}
 0x125   :  { %142 = dma.hbm_to_vmem [thread:$0]  %s5228_s8, 128, %s137_s2, [#allocation19], %s4220_s28, %s4220_s28, %s4221_s4  }
 0x126   :  { %s3992_s17 = scalar_lea.hbm %s5230_s10, 16 }
 0x127   :  { %p3993_p0 = scmp.ne.s32.totalorder %s5230_s10, %s3992_s17  ;;  %p3996_p1 = scmp.lt.u32.totalorder %s3992_s17, %s5230_s10 }
 0x129   :  { %p3998_p2 = pnand %p3996_p1, %p3993_p0 }
 0x12b   :  { %4001 = shalt.err (!%p3998_p2)
}
 0x12c   :  { %s4002_s21 = scalar_lea.vmem %s162_s15, 16  ;;  %s4006_s11 = scalar_lea.vmem %s162_s15, 32 }
 0x12d   :  { %p4003_p3 = scmp.ne.s32.totalorder %s162_s15, %s4002_s21  ;;  %p4007_p4 = scmp.lt.s32.totalorder %s162_s15, %s162_s15 }
 0x12e   :  { %p4008_p5 = scmp.lt.s32.totalorder %s4006_s11, %s4002_s21 }
 0x130   :  { %p4009_p6 = por %p4008_p5, %p4007_p4 }
 0x132   :  { %p4010_p7 = pnand %p4009_p6, %p4003_p3 }
 0x134   :  { %4013 = shalt.err (!%p4010_p7)
}
 0x135   :  { %164 = dma.hbm_to_vmem [thread:$0]  %s5230_s10, 16, %s162_s15, [#allocation22]  }
 0x136   :  { %s4237_s20 = smov [#allocation26]   ;;  %s4238_s25 = smov [#allocation29]  }
 0x137   :  { %s180_s7 = sshll.u32 %s4237_s20, 4  ;;  %s204_s9 = sshll.u32 %s4238_s25, 4  ;;  %s181_s7 = int_to_ptr.vmem [resolvable:$true] %s180_s7  ;;  %s205_s9 = int_to_ptr.vmem [resolvable:$true] %s204_s9 }
 0x138   :  { %s4014_s27 = scalar_lea.hbm %s5232_s12, 128 }
 0x139   :  { %p4015_p8 = scmp.ne.s32.totalorder %s5232_s12, %s4014_s27  ;;  %p4018_p9 = scmp.lt.u32.totalorder %s4014_s27, %s5232_s12 }
 0x13b   :  { %p4020_p10 = pnand %p4018_p9, %p4015_p8 }
 0x13d   :  { %4023 = shalt.err (!%p4020_p10)
}
 0x13e   :  { %s4024_s10 = scalar_lea.vmem %s181_s7, 128  ;;  %p4029_p12 = scmp.lt.s32.totalorder %s181_s7, %s181_s7 }
 0x13f   :  { %p4025_p11 = scmp.ne.s32.totalorder %s181_s7, %s4024_s10  ;;  %p4030_p13 = scmp.lt.s32.totalorder %s4024_s10, %s4024_s10 }
 0x141   :  { %p4031_p0 = por %p4030_p13, %p4029_p12 }
 0x143   :  { %p4032_p1 = pnand %p4031_p0, %p4025_p11 }
 0x145   :  { %4035 = shalt.err (!%p4032_p1)
}
 0x146   :  { %186 = dma.hbm_to_vmem [thread:$0]  %s5232_s12, 128, %s181_s7, [#allocation25], %s4220_s28, %s4220_s28, %s4221_s4  }
 0x147   :  { %s4036_s24 = scalar_lea.hbm %s5234_s14, 128 }
 0x148   :  { %p4037_p2 = scmp.ne.s32.totalorder %s5234_s14, %s4036_s24  ;;  %p4040_p3 = scmp.lt.u32.totalorder %s4036_s24, %s5234_s14 }
 0x14a   :  { %p4042_p4 = pnand %p4040_p3, %p4037_p2 }
 0x14c   :  { %4045 = shalt.err (!%p4042_p4)
}
 0x14d   :  { %s4046_s2 = scalar_lea.vmem %s205_s9, 128  ;;  %p4051_p6 = scmp.lt.s32.totalorder %s205_s9, %s205_s9 }
 0x14e   :  { %p4047_p5 = scmp.ne.s32.totalorder %s205_s9, %s4046_s2  ;;  %p4052_p7 = scmp.lt.s32.totalorder %s4046_s2, %s4046_s2 }
 0x150   :  { %p4053_p8 = por %p4052_p7, %p4051_p6 }
 0x152   :  { %p4054_p9 = pnand %p4053_p8, %p4047_p5 }
 0x154   :  { %4057 = shalt.err (!%p4054_p9)
}
 0x155   :  { %210 = dma.hbm_to_vmem [thread:$0]  %s5234_s14, 128, %s205_s9, [#allocation28], %s4220_s28, %s4220_s28, %s4221_s4  }
 0x156   :  { %s4239_s7 = smov [#allocation32]   ;;  %s4240_s22 = smov [#allocation35]  }
 0x157   :  { %s228_s25 = sshll.u32 %s4239_s7, 4  ;;  %s250_s30 = sshll.u32 %s4240_s22, 4  ;;  %s229_s25 = int_to_ptr.vmem [resolvable:$true] %s228_s25  ;;  %s251_s30 = int_to_ptr.vmem [resolvable:$true] %s250_s30 }
 0x158   :  { %s4058_s13 = scalar_lea.hbm %s5236_s16, 128 }
 0x159   :  { %p4059_p10 = scmp.ne.s32.totalorder %s5236_s16, %s4058_s13  ;;  %p4062_p11 = scmp.lt.u32.totalorder %s4058_s13, %s5236_s16 }
 0x15b   :  { %p4064_p12 = pnand %p4062_p11, %p4059_p10 }
 0x15d   :  { %4067 = shalt.err (!%p4064_p12)
}
 0x15e   :  { %s4068_s14 = scalar_lea.vmem %s229_s25, 128  ;;  %p4073_p0 = scmp.lt.s32.totalorder %s229_s25, %s229_s25 }
 0x15f   :  { %p4069_p13 = scmp.ne.s32.totalorder %s229_s25, %s4068_s14  ;;  %p4074_p1 = scmp.lt.s32.totalorder %s4068_s14, %s4068_s14 }
 0x161   :  { %p4075_p2 = por %p4074_p1, %p4073_p0 }
 0x163   :  { %p4076_p3 = pnand %p4075_p2, %p4069_p13 }
 0x165   :  { %4079 = shalt.err (!%p4076_p3)
}
 0x166   :  { %234 = dma.hbm_to_vmem [thread:$0]  %s5236_s16, 128, %s229_s25, [#allocation31], %s4220_s28, %s4220_s28, %s4221_s4  }
 0x167   :  { %s4080_s24 = scalar_lea.hbm %s5238_s18, 128 }
 0x168   :  { %p4081_p4 = scmp.ne.s32.totalorder %s5238_s18, %s4080_s24  ;;  %p4084_p5 = scmp.lt.u32.totalorder %s4080_s24, %s5238_s18 }
 0x16a   :  { %p4086_p6 = pnand %p4084_p5, %p4081_p4 }
 0x16c   :  { %4089 = shalt.err (!%p4086_p6)
}
 0x16d   :  { %s4090_s2 = scalar_lea.vmem %s251_s30, 128  ;;  %p4095_p8 = scmp.lt.s32.totalorder %s251_s30, %s251_s30 }
 0x16e   :  { %p4091_p7 = scmp.ne.s32.totalorder %s251_s30, %s4090_s2  ;;  %p4096_p9 = scmp.lt.s32.totalorder %s4090_s2, %s4090_s2 }
 0x170   :  { %p4097_p10 = por %p4096_p9, %p4095_p8 }
 0x172   :  { %p4098_p11 = pnand %p4097_p10, %p4091_p7 }
 0x174   :  { %4101 = shalt.err (!%p4098_p11)
}
 0x175   :  { %256 = dma.hbm_to_vmem [thread:$0]  %s5238_s18, 128, %s251_s30, [#allocation34], %s4220_s28, %s4220_s28, %s4221_s4  }
 0x176   :  { %s4241_s20 = smov [#allocation36]   ;;  %s4102_s27 = scalar_lea.hbm %s5239_s19, 16 }
 0x177   :  { %s263_s7 = sshll.u32 %s4241_s20, 4  ;;  %p4103_p12 = scmp.ne.s32.totalorder %s5239_s19, %s4102_s27  ;;  %s264_s7 = int_to_ptr.vmem [resolvable:$true] %s263_s7 }
 0x178   :  { %p4106_p13 = scmp.lt.u32.totalorder %s4102_s27, %s5239_s19 }
 0x17a   :  { %p4108_p0 = pnand %p4106_p13, %p4103_p12 }
 0x17c   :  { %4111 = shalt.err (!%p4108_p0)
}
 0x17d   :  { %s4112_s10 = scalar_lea.vmem %s264_s7, 16  ;;  %s4116_s18 = scalar_lea.vmem %s264_s7, 32 }
 0x17e   :  { %p4113_p1 = scmp.ne.s32.totalorder %s264_s7, %s4112_s10  ;;  %p4117_p2 = scmp.lt.s32.totalorder %s264_s7, %s264_s7 }
 0x17f   :  { %p4118_p3 = scmp.lt.s32.totalorder %s4116_s18, %s4112_s10 }
 0x181   :  { %p4119_p4 = por %p4118_p3, %p4117_p2 }
 0x183   :  { %p4120_p5 = pnand %p4119_p4, %p4113_p1 }
 0x185   :  { %4123 = shalt.err (!%p4120_p5)
}
 0x186   :  { %266 = dma.hbm_to_vmem [thread:$0]  %s5239_s19, 16, %s264_s7, [#allocation37]  }
 0x187   :  { %4190 = dma.done.wait [#allocation7], 32  }
 0x188   :  { %4191 = vsyncadd [#allocation7], 4294967264 }
 0x189   :  { %4192 = dma.done.wait [#allocation10], 192  }
 0x18a   :  { %4193 = vsyncadd [#allocation10], 4294967104 }
 0x18b   :  { %4194 = dma.done.wait [#allocation13], 384  }
 0x18c   :  { %4195 = vsyncadd [#allocation13], 4294966912 }
 0x18d   :  { %4196 = dma.done.wait [#allocation16], 144  }
 0x18e   :  { %4197 = vsyncadd [#allocation16], 4294967152 }
 0x18f   :  { %4198 = dma.done.wait [#allocation19], 144  }
 0x190   :  { %4199 = vsyncadd [#allocation19], 4294967152 }
 0x191   :  { %4200 = dma.done.wait [#allocation22], 144  }
 0x192   :  { %4201 = vsyncadd [#allocation22], 4294967152 }
 0x193   :  { %4202 = dma.done.wait [#allocation25], 144  }
 0x194   :  { %4203 = vsyncadd [#allocation25], 4294967152 }
 0x195   :  { %4204 = dma.done.wait [#allocation28], 256  }
 0x196   :  { %4205 = vsyncadd [#allocation28], 4294967040 }
 0x197   :  { %4206 = dma.done.wait [#allocation31], 256  }
 0x198   :  { %4207 = vsyncadd [#allocation31], 4294967040 }
 0x199   :  { %4208 = dma.done.wait [#allocation34], 144  }
 0x19a   :  { %4209 = vsyncadd [#allocation34], 4294967152 }
 0x19b   :  { %4210 = dma.done.wait [#allocation37], 16  }
 0x19c   :  { %4211 = vsyncadd [#allocation37], 4294967280  ;;  %v361_v0 = vlaneseq  ;;  %v4242_v1 = vmov 0.0   ;;  %v4243_v2 = vmov 1966171168   ;;  %vm4244_vm0 = vmmov 0  }
 0x19d   :  { %3292 = vmatprep.subr.bf16.mxu0 %v4242_v1  ;;  %3298 = vmatprep.subr.bf16.mxu1 %v4242_v1  ;;  %v359_v3 = vunpack.c.l.s4 %v4243_v2  ;;  %v3543_v6 = vld [vmem:[#allocation14] sm:$0xff]   ;;  %v4663_v7 = vld [vmem:[#allocation15] sm:$0xff]   ;;  %vm517_vm1 = vcmask 123904   ;;  %vm409_vm2 = vcmask 130048   ;;  %v4245_v33 = vmov 1983009808  }
 0x19e   :  { %3294 = vmatprep.mubr.msk.bf16.mxu0 %vm4244_vm0, %v4242_v1  ;;  %3300 = vmatprep.mubr.msk.bf16.mxu1 %vm4244_vm0, %v4242_v1  ;;  %v4661_v5 = vshrl.u32 %v361_v0, 7  ;;  %v329_v9 = vld [vmem:[#allocation9] sm:$0x1]  ;;  %v330_v10 = vld [vmem:[#allocation9 + $0x1] sm:$0x1]  ;;  %v458_v34 = vunpack.c.l.s4 %v4245_v33  ;;  %v4246_v37 = vmov 0  }
 0x19f   :  { %v360_v4 = vunpack.c.0.s8 %v359_v3  ;;  %3293 = vmatpush3.bf16.msra.mxu0 %v3543_v6  ;;  %v331_v11 = vld [vmem:[#allocation9 + $0x2] sm:$0x1]  ;;  %3299 = vmatpush3.bf16.msra.mxu1 %v4663_v7  ;;  %v332_v12 = vld [vmem:[#allocation9 + $0x3] sm:$0x1]  ;;  %v333_v13 = vld [vmem:[#allocation9 + $0x4] sm:$0x1]  ;;  %v354_v15 = vcombine.low %v329_v9, %v330_v10 }
 0x1a0   :  { %v334_v14 = vld [vmem:[#allocation9 + $0x5] sm:$0x1]  ;;  %3304 = vmatprep.subr.bf16.mxu0 %v4242_v1  ;;  %v335_v16 = vld [vmem:[#allocation9 + $0x6] sm:$0x1]  ;;  %v336_v17 = vld [vmem:[#allocation9 + $0x7] sm:$0x1]  ;;  %v355_v18 = vcombine.low %v331_v11, %v332_v12  ;;  %3310 = vmatprep.subr.bf16.mxu1 %v4242_v1  ;;  %v459_v35 = vunpack.c.0.s8 %v458_v34 }
 0x1a1   :  { %v363_v8 = vsub.s32 %v360_v4, %v4661_v5  ;;  %v356_v19 = vcombine.low %v333_v13, %v334_v14  ;;  %v516_v20 = vld [vmem:[#allocation11] sm:$0x3]  ;;  %v357_v21 = vcombine.low %v335_v16, %v336_v17  ;;  %v4676_v36 = vld [vmem:[#allocation6] sm:$0x3]  ;;  %3541 = vset.pattern.permute.xlu1 %v4246_v37  ;;  %3542 = vset.pattern.permute.xlu0 %v4246_v37  ;;  %v3147_v38 = vld [vmem:[#allocation17] ss:$0 sm:$0xff] }
 0x1a2   :  { %518 = vst.msk [vmem:[#allocation2] sm:$0x3] %vm517_vm1, %v516_v20  ;;  %vm522_vm3 = vcmp.gt.s32.totalorder %v4676_v36, 0  ;;  %v4681_v39 = vld [vmem:[#allocation18] ss:$0 sm:$0xff]  ;;  %v4685_v41 = vsub.s32 %v459_v35, %v4661_v5  ;;  %vm498_vm4 = vcmask 386048  }
 0x1a3   :  { %v364_v22 = vrot.slane %v354_v15, %v363_v8  ;;  %v371_v23 = vrot.slane %v355_v18, %v363_v8  ;;  %v378_v24 = vrot.slane %v356_v19, %v363_v8  ;;  %v385_v25 = vrot.slane %v357_v21, %v363_v8  ;;  %s4247_s19 = smov 96   ;;  %s5272_s30 = smov 16   ;;  %v4703_v12 = vld [vmem:[#allocation21] sm:$0xff]   ;;  %v520_v13 = vld [vmem:[#allocation11 + $0x2] sm:$0x3]  ;;  %v4705_v14 = vld [vmem:[#allocation20] sm:$0xff]  }
 0x1a4   :  { %v612_v40 = vsel %vm522_vm3, 1, %v4246_v37  ;;  %521 = vst.msk [vmem:[#allocation3] sm:$0x3] %vm517_vm1, %v520_v13  ;;  %s4248_s15 = smov 112   ;;  %vm780_vm6 = vcmp.gt.s32.totalorder %v4676_v36, 1  ;;  %vm1004_vm8 = vcmp.gt.s32.totalorder %v4676_v36, 2 }
 0x1a5   :  { %v386_v26 = vcombine.low %v364_v22, %v371_v23  ;;  %v387_v27 = vcombine.low %v378_v24, %v385_v25  ;;  %614 = vperm.xlu1 %3541, %v612_v40   ;;  %v4744_v40 = vld [vmem:[#allocation23] ss:$0 sm:$0xff]  ;;  %vm1228_vm10 = vcmp.gt.s32.totalorder %v4676_v36, 3  ;;  %vm1452_vm12 = vcmp.gt.s32.totalorder %v4676_v36, 4  ;;  %s4250_s14 = smov [#allocation39]   ;;  %s4251_s17 = smov [#allocation41]  }
 0x1a6   :  { %s3106_s9 = sshll.u32 %s4250_s14, 4  ;;  %s3118_s23 = sshll.u32 %s4251_s17, 4  ;;  %s3107_s9 = int_to_ptr.vmem [resolvable:$true] %s3106_s9  ;;  %s5166_s23 = int_to_ptr.vmem [resolvable:$true] %s3118_s23 }
 0x1a7   :  { %v394_v28 = vrot.slane %v386_v26, %v363_v8  ;;  %v401_v29 = vrot.slane %v387_v27, %v363_v8  ;;  %v4729_v27 = vld [vmem:[#allocation24] ss:$0 sm:$0xff]  ;;  %s4252_s0 = smov [#allocation38]   ;;  %s4124_s26 = scalar_lea.vmem %s3107_s9, 64 }
 0x1a8   :  { %s5169_s24 = sshll.u32 %s4252_s0, 4  ;;  %p4125_p6 = scmp.ne.s32.totalorder %s3107_s9, %s4124_s26  ;;  %s3095_s24 = int_to_ptr.vmem [resolvable:$true] %s5169_s24 }
 0x1a9   :  { %v523_v30 = vld [vmem:[#allocation2] sm:$0x3]  ;;  %v402_v31 = vcombine.low %v394_v28, %v401_v29  ;;  %p4129_p7 = scmp.lt.s32.totalorder %s3107_s9, %s3107_s9  ;;  %p4130_p8 = scmp.lt.s32.totalorder %s4124_s26, %s4124_s26 }
 0x1aa   :  { %v526_v32 = vpack.c.bf16 %v523_v30, %v523_v30 }
 0x1ab   :  { %3295 = vmatmul.mubr.msk.bf16.vlgmr.msra.gmra.mrb[0].mxu0 %vm409_vm2, %v402_v31  ;;  %v4713_v16 = vld [vmem:[#allocation3] sm:$0x3]  ;;  %p4131_p9 = por %p4130_p8, %p4129_p7 }
 0x1ac   :  { %3301 = vmatmul.mubr.msk.bf16.vlgmr.msra.gmra.mrb[0].mxu1 %vm409_vm2, %v526_v32  ;;  %3306 = vmatprep.mubr.msk.bf16.mxu0 %vm4244_vm0, %v4242_v1  ;;  %v677_v17 = vpack.c.bf16 %v4713_v16, %v4713_v16 }
 0x1ad   :  { %3312 = vmatprep.mubr.msk.bf16.mxu1 %vm4244_vm0, %v4242_v1  ;;  %3311 = vmatpush3.bf16.msra.mxu1 %v4703_v12  ;;  %p4132_p10 = pnand %p4131_p9, %p4125_p6 }
 0x1ae   :  { %3305 = vmatpush3.bf16.msra.mxu0 %v4705_v14  ;;  %3322 = vmatprep.subr.bf16.mxu1 %v4242_v1 }
 0x1af   :  { %3316 = vmatprep.subr.bf16.mxu0 %v4242_v1 }
 0x1b4   :  { %3313 = vmatmul.mubr.msk.bf16.vlgmr.msra.gmra.mrb[4].mxu1 %vm409_vm2, %v677_v17 }
 0x1b5   :  { %3323 = vmatpush3.bf16.msra.mxu1 %v4705_v14  ;;  %3324 = vmatprep.mubr.msk.bf16.mxu1 %vm4244_vm0, %v4242_v1 }
 0x1b6   :  { %3334 = vmatprep.subr.bf16.mxu1 %v4242_v1 }
 0x224   :  { %v4722_v18 = vpop.permute.xlu1 %614 }
 0x225   :  { %vm616_vm5 = vcmp.eq.s32.totalorder %v4722_v18, 1 }
 0x27e   :  { %v447_v42 = vpop.f32.mrb[0].mxu0 }
 0x27f   :  { %v576_v43 = vpop.f32.mrb[0].mxu1  ;;  %v448_v44 = vadd.f32 %v3147_v38, %v447_v42  ;;  %v3296_v47 = vpop.f32.mrb[1].mxu0 }
 0x280   :  { %v577_v45 = vadd.f32 %v4681_v39, %v576_v43  ;;  %v3302_v46 = vpop.f32.mrb[1].mxu1  ;;  %v450_v49 = vpop.f32.mrb[2].mxu0 }
 0x281   :  { %v579_v48 = vpop.f32.mrb[2].mxu1  ;;  %v456_v50 = vcombine.high %v448_v44, %v448_v44  ;;  %v463_v51 = vrot.slane %v448_v44, %v4685_v41  ;;  %v451_v53 = vadd.f32 %v3147_v38, %v450_v49  ;;  %v3297_v54 = vpop.f32.mrb[3].mxu0 }
 0x282   :  { %590 = vrot.lane.b32.xlu0 %v577_v45, %s4247_s19  ;;  %v3303_v52 = vpop.f32.mrb[3].mxu1 }
 0x283   :  { %v470_v55 = vrot.slane %v456_v50, %v4685_v41  ;;  %v471_v56 = vcombine.high %v463_v51, %v463_v51  ;;  %499 = vst.msk [vmem:[#allocation5] sm:$0x3] %vm498_vm4, %v463_v51  ;;  %v473_v57 = vcombine.high %v451_v53, %v451_v53  ;;  %v480_v58 = vrot.slane %v451_v53, %v4685_v41 }
 0x285   :  { %v472_v59 = vcombine.high %v470_v55, %v470_v55  ;;  %500 = vst.msk [vmem:[#allocation5 + $0x2] sm:$0x3] %vm498_vm4, %v471_v56  ;;  %501 = vst.msk [vmem:[#allocation5 + $0x4] sm:$0x3] %vm498_vm4, %v470_v55  ;;  %v487_v60 = vrot.slane %v473_v57, %v4685_v41  ;;  %v488_v61 = vcombine.high %v480_v58, %v480_v58 }
 0x286   :  { %503 = vst.msk [vmem:[#allocation5 + $0x8] sm:$0x3] %vm498_vm4, %v480_v58 }
 0x287   :  { %502 = vst.msk [vmem:[#allocation5 + $0x6] sm:$0x3] %vm498_vm4, %v472_v59  ;;  %v489_v62 = vcombine.high %v487_v60, %v487_v60  ;;  %504 = vst.msk [vmem:[#allocation5 + $0xa] sm:$0x3] %vm498_vm4, %v488_v61  ;;  %v727_v28 = vpop.f32.mrb[4].mxu1 }
 0x288   :  { %505 = vst.msk [vmem:[#allocation5 + $0xc] sm:$0x3] %vm498_vm4, %v487_v60  ;;  %v728_v29 = vadd.f32 %v4729_v27, %v727_v28 }
 0x289   :  { %506 = vst.msk [vmem:[#allocation5 + $0xe] sm:$0x3] %vm498_vm4, %v489_v62 }
 0x28a   :  { %v525_v63 = vld [vmem:[#allocation5] sm:$0x3] }
 0x28b   :  { %v582_v0 = vadd.f32 %v577_v45, %v525_v63 }
 0x28c   :  { %v784_v59 = vld [vmem:[#allocation5 + $0x2] sm:$0x3] }
 0x28d   :  { %v3153_v2 = vmul.f32 -1.442695, %v582_v0 }
 0x28f   :  { %3557 = vpow2.f32 %v3153_v2 }
 0x299   :  { %v3558_v3 = vpop.eup %3557 }
 0x29a   :  { %v586_v4 = vadd.f32 1.0, %v3558_v3 }
 0x29c   :  { %3559 = vrcp.f32 %v586_v4 }
 0x2a6   :  { %v3560_v6 = vpop.eup %3559 }
 0x2a7   :  { %v600_v20 = vsub.f32 1.0, %v3560_v6 }
 0x2f4   :  { %v591_v8 = vpop.permute.xlu0 %590 }
 0x2f5   :  { %v593_v9 = vmul.f32 %v3560_v6, %v591_v8 }
 0x2f7   :  { %595 = vrot.lane.b32.xlu0 %v593_v9, %s4231_s1  ;;  %v859_v9 = vsel %vm780_vm6, 1, %v4246_v37 }
 0x2fb   :  { %607 = vrot.lane.b32.xlu0 %v523_v30, %s5272_s30  ;;  %v3314_v30 = vpop.f32.mrb[5].mxu1 }
 0x2fc   :  { %v730_v31 = vpop.f32.mrb[6].mxu1 }
 0x2fd   :  { %v3315_v32 = vpop.f32.mrb[7].mxu1 }
 0x369   :  { %v596_v10 = vpop.permute.xlu0 %595 }
 0x36a   :  { %v598_v11 = vadd.f32 %v596_v10, %v525_v63 }
 0x36c   :  { %3561 = vtanh.f32 %v598_v11 }
 0x36d   :  { %v608_v19 = vpop.permute.xlu0 %607 }
 0x36e   :  { %v610_v22 = vmul.f32 %v3560_v6, %v608_v19 }
 0x376   :  { %v3562_v15 = vpop.eup %3561 }
 0x377   :  { %602 = vrot.lane.b32.xlu1 %v3562_v15, %s4248_s15 }
 0x3e9   :  { %v603_v21 = vpop.permute.xlu1 %602 }
 0x3ea   :  { %v605_v23 = vmul.f32 %v603_v21, %v600_v20 }
 0x3ec   :  { %v611_v24 = vadd.f32 %v610_v22, %v605_v23 }
 0x3ee   :  { %v617_v25 = vsel %vm616_vm5, %v611_v24, %v608_v19 }
 0x3ef   :  { %765 = vrot.lane.b32.xlu1 %v617_v25, %s4248_s15  ;;  %v618_v26 = vpack.c.bf16 %v617_v25, %v617_v25 }
 0x3f1   :  { %626 = vrot.lane.b32.xlu0 %v618_v26, %s4248_s15 }
 0x3f3   :  { %741 = vrot.lane.b32.xlu1 %v728_v29, %s4247_s19 }
 0x461   :  { %v766_v33 = vpop.permute.xlu1 %765 }
 0x462   :  { %768 = vst.msk [vmem:[#allocation2] sm:$0x3] %vm517_vm1, %v766_v33 }
 0x463   :  { %v627_v34 = vpop.permute.xlu0 %626 }
 0x464   :  { %3307 = vmatmul.mubr.msk.bf16.vlgmr.msra.gmra.mrb[4].mxu0 %vm409_vm2, %v627_v34 }
 0x465   :  { %3317 = vmatpush3.bf16.msra.mxu0 %v4663_v7  ;;  %3318 = vmatprep.mubr.msk.bf16.mxu0 %vm4244_vm0, %v4242_v1  ;;  %v742_v56 = vpop.permute.xlu1 %741 }
 0x466   :  { %3328 = vmatprep.subr.bf16.mxu0 %v4242_v1 }
 0x469   :  { %v781_v35 = vld [vmem:[#allocation2] sm:$0x3] }
 0x46a   :  { %v785_v38 = vpack.c.bf16 %v781_v35, %v781_v35 }
 0x46c   :  { %3319 = vmatmul.mubr.msk.bf16.vlgmr.msra.gmra.mrb[8].mxu0 %vm409_vm2, %v785_v38 }
 0x46d   :  { %3329 = vmatpush3.bf16.msra.mxu0 %v4703_v12  ;;  %3330 = vmatprep.mubr.msk.bf16.mxu0 %vm4244_vm0, %v4242_v1 }
 0x46e   :  { %3340 = vmatprep.subr.bf16.mxu0 %v4242_v1 }
 0x537   :  { %v671_v42 = vpop.f32.mrb[4].mxu0 }
 0x538   :  { %v672_v43 = vadd.f32 %v4744_v40, %v671_v42  ;;  %v3308_v44 = vpop.f32.mrb[5].mxu0 }
 0x539   :  { %v674_v45 = vpop.f32.mrb[6].mxu0 }
 0x53a   :  { %v733_v46 = vadd.f32 %v728_v29, %v672_v43  ;;  %v3309_v47 = vpop.f32.mrb[7].mxu0 }
 0x53c   :  { %v3160_v48 = vmul.f32 -1.442695, %v733_v46 }
 0x53e   :  { %3563 = vpow2.f32 %v3160_v48 }
 0x53f   :  { %v823_v49 = vpop.f32.mrb[8].mxu0 }
 0x540   :  { %v824_v50 = vadd.f32 %v4681_v39, %v823_v49  ;;  %v3320_v51 = vpop.f32.mrb[9].mxu0 }
 0x541   :  { %v826_v52 = vpop.f32.mrb[10].mxu0 }
 0x542   :  { %837 = vrot.lane.b32.xlu0 %v824_v50, %s4247_s19  ;;  %v3321_v53 = vpop.f32.mrb[11].mxu0  ;;  %v829_v60 = vadd.f32 %v824_v50, %v784_v59 }
 0x544   :  { %v3162_v61 = vmul.f32 -1.442695, %v829_v60 }
 0x548   :  { %v3564_v54 = vpop.eup %3563 }
 0x549   :  { %v737_v55 = vadd.f32 1.0, %v3564_v54 }
 0x54b   :  { %3565 = vrcp.f32 %v737_v55 }
 0x54c   :  { %3567 = vpow2.f32 %v3162_v61 }
 0x555   :  { %v3566_v57 = vpop.eup %3565 }
 0x556   :  { %v744_v58 = vmul.f32 %v3566_v57, %v742_v56  ;;  %v3568_v62 = vpop.eup %3567 }
 0x557   :  { %v833_v63 = vadd.f32 1.0, %v3568_v62 }
 0x558   :  { %746 = vrot.lane.b32.xlu1 %v744_v58, %s4231_s1 }
 0x559   :  { %3569 = vrcp.f32 %v833_v63 }
 0x563   :  { %v3570_v0 = vpop.eup %3569 }
 0x564   :  { %v847_v25 = vsub.f32 1.0, %v3570_v0 }
 0x5b4   :  { %v838_v2 = vpop.permute.xlu0 %837 }
 0x5b5   :  { %v840_v3 = vmul.f32 %v3570_v0, %v838_v2 }
 0x5b7   :  { %842 = vrot.lane.b32.xlu0 %v840_v3, %s4231_s1 }
 0x5bb   :  { %758 = vrot.lane.b32.xlu0 %v4713_v16, %s5272_s30  ;;  %v751_v16 = vsub.f32 1.0, %v3566_v57 }
 0x5ca   :  { %v747_v4 = vpop.permute.xlu1 %746 }
 0x5cb   :  { %v749_v6 = vadd.f32 %v747_v4, %v672_v43  ;;  %v1008_v4 = vld [vmem:[#allocation5 + $0x4] sm:$0x3] }
 0x5cd   :  { %3571 = vtanh.f32 %v749_v6 }
 0x5d7   :  { %v3572_v8 = vpop.eup %3571 }
 0x5d8   :  { %753 = vrot.lane.b32.xlu1 %v3572_v8, %s4248_s15 }
 0x5dc   :  { %861 = vperm.xlu1 %3541, %v859_v9  }
 0x5e0   :  { %854 = vrot.lane.b32.xlu1 %v781_v35, %s5272_s30 }
 0x629   :  { %v843_v10 = vpop.permute.xlu0 %842 }
 0x62a   :  { %v845_v11 = vadd.f32 %v843_v10, %v784_v59 }
 0x62c   :  { %3573 = vtanh.f32 %v845_v11 }
 0x62d   :  { %v759_v15 = vpop.permute.xlu0 %758 }
 0x62e   :  { %v761_v19 = vmul.f32 %v3566_v57, %v759_v15 }
 0x636   :  { %v3574_v13 = vpop.eup %3573 }
 0x637   :  { %849 = vrot.lane.b32.xlu0 %v3574_v13, %s4248_s15 }
 0x64a   :  { %v754_v17 = vpop.permute.xlu1 %753 }
 0x64b   :  { %v756_v20 = vmul.f32 %v754_v17, %v751_v16 }
 0x64d   :  { %v4758_v21 = vadd.f32 %v761_v19, %v756_v20  ;;  %v1083_v20 = vsel %vm1004_vm8, 1, %v4246_v37 }
 0x64f   :  { %v763_v22 = vsel %vm616_vm5, %v4758_v21, %v759_v15 }
 0x650   :  { %770 = vrot.lane.b32.xlu0 %v763_v22, %s4248_s15 }
 0x65b   :  { %v4764_v23 = vpop.permute.xlu1 %861 }
 0x65c   :  { %vm863_vm7 = vcmp.eq.s32.totalorder %v4764_v23, 1 }
 0x65f   :  { %v855_v24 = vpop.permute.xlu1 %854 }
 0x660   :  { %v857_v28 = vmul.f32 %v3570_v0, %v855_v24 }
 0x6a9   :  { %v850_v26 = vpop.permute.xlu0 %849 }
 0x6aa   :  { %v852_v29 = vmul.f32 %v850_v26, %v847_v25 }
 0x6ac   :  { %v858_v30 = vadd.f32 %v857_v28, %v852_v29 }
 0x6ae   :  { %v864_v31 = vsel %vm863_vm7, %v858_v30, %v855_v24 }
 0x6af   :  { %988 = vrot.lane.b32.xlu1 %v864_v31, %s4248_s15  ;;  %v865_v32 = vpack.c.bf16 %v864_v31, %v864_v31 }
 0x6b1   :  { %867 = vrot.lane.b32.xlu0 %v865_v32, %s4248_s15 }
 0x6c2   :  { %v771_v33 = vpop.permute.xlu0 %770 }
 0x6c3   :  { %773 = vst.msk [vmem:[#allocation3] sm:$0x3] %vm517_vm1, %v771_v33 }
 0x6ca   :  { %v782_v34 = vld [vmem:[#allocation3] sm:$0x3] }
 0x6cb   :  { %v912_v35 = vpack.c.bf16 %v782_v34, %v782_v34 }
 0x6cd   :  { %3331 = vmatmul.mubr.msk.bf16.vlgmr.msra.gmra.mrb[12].mxu0 %vm409_vm2, %v912_v35 }
 0x6ce   :  { %3341 = vmatpush3.bf16.msra.mxu0 %v4705_v14  ;;  %3342 = vmatprep.mubr.msk.bf16.mxu0 %vm4244_vm0, %v4242_v1 }
 0x6cf   :  { %3352 = vmatprep.subr.bf16.mxu0 %v4242_v1 }
 0x721   :  { %v989_v38 = vpop.permute.xlu1 %988 }
 0x722   :  { %991 = vst.msk [vmem:[#allocation2] sm:$0x3] %vm517_vm1, %v989_v38 }
 0x723   :  { %v868_v42 = vpop.permute.xlu0 %867 }
 0x724   :  { %3325 = vmatmul.mubr.msk.bf16.vlgmr.msra.gmra.mrb[8].mxu1 %vm409_vm2, %v868_v42 }
 0x725   :  { %3335 = vmatpush3.bf16.msra.mxu1 %v4663_v7  ;;  %3336 = vmatprep.mubr.msk.bf16.mxu1 %vm4244_vm0, %v4242_v1 }
 0x726   :  { %3346 = vmatprep.subr.bf16.mxu1 %v4242_v1 }
 0x729   :  { %v1005_v43 = vld [vmem:[#allocation2] sm:$0x3] }
 0x72a   :  { %v1009_v44 = vpack.c.bf16 %v1005_v43, %v1005_v43 }
 0x72c   :  { %3337 = vmatmul.mubr.msk.bf16.vlgmr.msra.gmra.mrb[12].mxu1 %vm409_vm2, %v1009_v44 }
 0x72d   :  { %3347 = vmatpush3.bf16.msra.mxu1 %v4703_v12  ;;  %3348 = vmatprep.mubr.msk.bf16.mxu1 %vm4244_vm0, %v4242_v1 }
 0x72e   :  { %3358 = vmatprep.subr.bf16.mxu1 %v4242_v1 }
 0x7a0   :  { %v950_v45 = vpop.f32.mrb[12].mxu0 }
 0x7a1   :  { %v951_v46 = vadd.f32 %v4729_v27, %v950_v45  ;;  %v3332_v47 = vpop.f32.mrb[13].mxu0 }
 0x7a2   :  { %v953_v48 = vpop.f32.mrb[14].mxu0 }
 0x7a3   :  { %964 = vrot.lane.b32.xlu1 %v951_v46, %s4247_s19  ;;  %v3333_v49 = vpop.f32.mrb[15].mxu0 }
 0x7f7   :  { %v906_v50 = vpop.f32.mrb[8].mxu1 }
 0x7f8   :  { %v907_v51 = vadd.f32 %v4744_v40, %v906_v50  ;;  %v3326_v52 = vpop.f32.mrb[9].mxu1 }
 0x7f9   :  { %v909_v53 = vpop.f32.mrb[10].mxu1 }
 0x7fa   :  { %v956_v54 = vadd.f32 %v951_v46, %v907_v51  ;;  %v3327_v55 = vpop.f32.mrb[11].mxu1 }
 0x7fc   :  { %v3165_v56 = vmul.f32 -1.442695, %v956_v54 }
 0x7fe   :  { %3575 = vpow2.f32 %v3165_v56 }
 0x7ff   :  { %v1047_v57 = vpop.f32.mrb[12].mxu1 }
 0x800   :  { %v1048_v58 = vadd.f32 %v4681_v39, %v1047_v57  ;;  %v3338_v59 = vpop.f32.mrb[13].mxu1 }
 0x801   :  { %v1050_v60 = vpop.f32.mrb[14].mxu1 }
 0x802   :  { %1061 = vrot.lane.b32.xlu0 %v1048_v58, %s4247_s19  ;;  %v3339_v61 = vpop.f32.mrb[15].mxu1  ;;  %v1053_v6 = vadd.f32 %v1048_v58, %v1008_v4 }
 0x804   :  { %v3167_v8 = vmul.f32 -1.442695, %v1053_v6 }
 0x808   :  { %v3576_v62 = vpop.eup %3575 }
 0x809   :  { %v960_v63 = vadd.f32 1.0, %v3576_v62 }
 0x80b   :  { %3577 = vrcp.f32 %v960_v63 }
 0x80c   :  { %3579 = vpow2.f32 %v3167_v8 }
 0x815   :  { %v3578_v0 = vpop.eup %3577  ;;  %v965_v2 = vpop.permute.xlu1 %964 }
 0x816   :  { %v967_v3 = vmul.f32 %v3578_v0, %v965_v2  ;;  %v3580_v9 = vpop.eup %3579  ;;  %v974_v28 = vsub.f32 1.0, %v3578_v0 }
 0x817   :  { %v1057_v10 = vadd.f32 1.0, %v3580_v9 }
 0x818   :  { %969 = vrot.lane.b32.xlu1 %v967_v3, %s4231_s1 }
 0x819   :  { %3581 = vrcp.f32 %v1057_v10 }
 0x823   :  { %v3582_v11 = vpop.eup %3581 }
 0x824   :  { %v1071_v38 = vsub.f32 1.0, %v3582_v11 }
 0x874   :  { %v1062_v13 = vpop.permute.xlu0 %1061 }
 0x875   :  { %v1064_v15 = vmul.f32 %v3582_v11, %v1062_v13 }
 0x877   :  { %1066 = vrot.lane.b32.xlu0 %v1064_v15, %s4231_s1 }
 0x87b   :  { %981 = vrot.lane.b32.xlu0 %v782_v34, %s5272_s30 }
 0x88a   :  { %v970_v16 = vpop.permute.xlu1 %969 }
 0x88b   :  { %v972_v17 = vadd.f32 %v970_v16, %v907_v51 }
 0x88d   :  { %3583 = vtanh.f32 %v972_v17 }
 0x897   :  { %v3584_v19 = vpop.eup %3583 }
 0x898   :  { %976 = vrot.lane.b32.xlu1 %v3584_v19, %s4248_s15  ;;  %v1232_v19 = vld [vmem:[#allocation5 + $0x6] sm:$0x3] }
 0x89c   :  { %1085 = vperm.xlu1 %3541, %v1083_v20  }
 0x8a0   :  { %1078 = vrot.lane.b32.xlu1 %v1005_v43, %s5272_s30 }
 0x8e9   :  { %v1067_v22 = vpop.permute.xlu0 %1066 }
 0x8ea   :  { %v1069_v24 = vadd.f32 %v1067_v22, %v1008_v4 }
 0x8ec   :  { %3585 = vtanh.f32 %v1069_v24 }
 0x8ed   :  { %v982_v26 = vpop.permute.xlu0 %981 }
 0x8ee   :  { %v984_v30 = vmul.f32 %v3578_v0, %v982_v26 }
 0x8f6   :  { %v3586_v25 = vpop.eup %3585 }
 0x8f7   :  { %1073 = vrot.lane.b32.xlu0 %v3586_v25, %s4248_s15 }
 0x90a   :  { %v977_v29 = vpop.permute.xlu1 %976 }
 0x90b   :  { %v979_v31 = vmul.f32 %v977_v29, %v974_v28 }
 0x90d   :  { %v4801_v32 = vadd.f32 %v984_v30, %v979_v31 }
 0x90f   :  { %v986_v33 = vsel %vm863_vm7, %v4801_v32, %v982_v26 }
 0x910   :  { %993 = vrot.lane.b32.xlu0 %v986_v33, %s4248_s15 }
 0x91b   :  { %v4807_v34 = vpop.permute.xlu1 %1085 }
 0x91c   :  { %vm1087_vm9 = vcmp.eq.s32.totalorder %v4807_v34, 1 }
 0x91f   :  { %v1079_v35 = vpop.permute.xlu1 %1078 }
 0x920   :  { %v1081_v43 = vmul.f32 %v3582_v11, %v1079_v35 }
 0x969   :  { %v1074_v42 = vpop.permute.xlu0 %1073 }
 0x96a   :  { %v1076_v44 = vmul.f32 %v1074_v42, %v1071_v38 }
 0x96c   :  { %v1082_v45 = vadd.f32 %v1081_v43, %v1076_v44 }
 0x96e   :  { %v1088_v46 = vsel %vm1087_vm9, %v1082_v45, %v1079_v35  ;;  %v1307_v35 = vsel %vm1228_vm10, 1, %v4246_v37 }
 0x96f   :  { %1212 = vrot.lane.b32.xlu1 %v1088_v46, %s4248_s15  ;;  %v1089_v47 = vpack.c.bf16 %v1088_v46, %v1088_v46 }
 0x971   :  { %1091 = vrot.lane.b32.xlu0 %v1089_v47, %s4248_s15 }
 0x982   :  { %v994_v48 = vpop.permute.xlu0 %993 }
 0x983   :  { %996 = vst.msk [vmem:[#allocation3] sm:$0x3] %vm517_vm1, %v994_v48 }
 0x98a   :  { %v1006_v49 = vld [vmem:[#allocation3] sm:$0x3] }
 0x98b   :  { %v1136_v50 = vpack.c.bf16 %v1006_v49, %v1006_v49 }
 0x98d   :  { %3349 = vmatmul.mubr.msk.bf16.vlgmr.msra.gmra.mrb[16].mxu1 %vm409_vm2, %v1136_v50 }
 0x98e   :  { %3359 = vmatpush3.bf16.msra.mxu1 %v4705_v14  ;;  %3360 = vmatprep.mubr.msk.bf16.mxu1 %vm4244_vm0, %v4242_v1 }
 0x98f   :  { %3370 = vmatprep.subr.bf16.mxu1 %v4242_v1 }
 0x9e1   :  { %v1213_v51 = vpop.permute.xlu1 %1212 }
 0x9e2   :  { %1215 = vst.msk [vmem:[#allocation2] sm:$0x3] %vm517_vm1, %v1213_v51 }
 0x9e3   :  { %v1092_v52 = vpop.permute.xlu0 %1091 }
 0x9e4   :  { %3343 = vmatmul.mubr.msk.bf16.vlgmr.msra.gmra.mrb[16].mxu0 %vm409_vm2, %v1092_v52 }
 0x9e5   :  { %3353 = vmatpush3.bf16.msra.mxu0 %v4663_v7  ;;  %3354 = vmatprep.mubr.msk.bf16.mxu0 %vm4244_vm0, %v4242_v1 }
 0x9e6   :  { %3364 = vmatprep.subr.bf16.mxu0 %v4242_v1 }
 0x9e9   :  { %v1229_v53 = vld [vmem:[#allocation2] sm:$0x3] }
 0x9ea   :  { %v1233_v54 = vpack.c.bf16 %v1229_v53, %v1229_v53 }
 0x9ec   :  { %3355 = vmatmul.mubr.msk.bf16.vlgmr.msra.gmra.mrb[20].mxu0 %vm409_vm2, %v1233_v54 }
 0x9ed   :  { %3365 = vmatpush3.bf16.msra.mxu0 %v4703_v12  ;;  %3366 = vmatprep.mubr.msk.bf16.mxu0 %vm4244_vm0, %v4242_v1 }
 0x9ee   :  { %3376 = vmatprep.subr.bf16.mxu0 %v4242_v1 }
 0xa60   :  { %v1174_v55 = vpop.f32.mrb[16].mxu1 }
 0xa61   :  { %v1175_v56 = vadd.f32 %v4729_v27, %v1174_v55  ;;  %v3350_v57 = vpop.f32.mrb[17].mxu1 }
 0xa62   :  { %v1177_v58 = vpop.f32.mrb[18].mxu1 }
 0xa63   :  { %v3351_v59 = vpop.f32.mrb[19].mxu1  ;;  %1188 = vrot.lane.b32.xlu1 %v1175_v56, %s4247_s19 }
 0xab7   :  { %v1130_v60 = vpop.f32.mrb[16].mxu0 }
 0xab8   :  { %v1131_v61 = vadd.f32 %v4744_v40, %v1130_v60  ;;  %v3344_v62 = vpop.f32.mrb[17].mxu0 }
 0xab9   :  { %v1133_v63 = vpop.f32.mrb[18].mxu0 }
 0xaba   :  { %v1180_v0 = vadd.f32 %v1175_v56, %v1131_v61  ;;  %v3345_v2 = vpop.f32.mrb[19].mxu0 }
 0xabc   :  { %v3170_v3 = vmul.f32 -1.442695, %v1180_v0 }
 0xabe   :  { %3587 = vpow2.f32 %v3170_v3 }
 0xabf   :  { %v1271_v4 = vpop.f32.mrb[20].mxu0 }
 0xac0   :  { %v1272_v6 = vadd.f32 %v4681_v39, %v1271_v4  ;;  %v3356_v8 = vpop.f32.mrb[21].mxu0 }
 0xac1   :  { %v1274_v9 = vpop.f32.mrb[22].mxu0 }
 0xac2   :  { %1285 = vrot.lane.b32.xlu0 %v1272_v6, %s4247_s19  ;;  %v3357_v10 = vpop.f32.mrb[23].mxu0  ;;  %v1277_v20 = vadd.f32 %v1272_v6, %v1232_v19 }
 0xac4   :  { %v3172_v22 = vmul.f32 -1.442695, %v1277_v20 }
 0xac8   :  { %v3588_v11 = vpop.eup %3587 }
 0xac9   :  { %v1184_v13 = vadd.f32 1.0, %v3588_v11 }
 0xacb   :  { %3589 = vrcp.f32 %v1184_v13 }
 0xacc   :  { %3591 = vpow2.f32 %v3172_v22 }
 0xad5   :  { %v3590_v15 = vpop.eup %3589  ;;  %v1189_v16 = vpop.permute.xlu1 %1188 }
 0xad6   :  { %v1191_v17 = vmul.f32 %v3590_v15, %v1189_v16  ;;  %v3592_v24 = vpop.eup %3591  ;;  %v1198_v45 = vsub.f32 1.0, %v3590_v15 }
 0xad7   :  { %v1281_v25 = vadd.f32 1.0, %v3592_v24 }
 0xad8   :  { %1193 = vrot.lane.b32.xlu1 %v1191_v17, %s4231_s1 }
 0xad9   :  { %3593 = vrcp.f32 %v1281_v25 }
 0xae3   :  { %v3594_v26 = vpop.eup %3593 }
 0xb34   :  { %v1286_v28 = vpop.permute.xlu0 %1285 }
 0xb35   :  { %v1288_v29 = vmul.f32 %v3594_v26, %v1286_v28 }
 0xb37   :  { %1290 = vrot.lane.b32.xlu0 %v1288_v29, %s4231_s1 }
 0xb3b   :  { %1205 = vrot.lane.b32.xlu0 %v1006_v49, %s5272_s30 }
 0xb4a   :  { %v1194_v30 = vpop.permute.xlu1 %1193 }
 0xb4b   :  { %v1196_v31 = vadd.f32 %v1194_v30, %v1131_v61 }
 0xb4d   :  { %3595 = vtanh.f32 %v1196_v31 }
 0xb57   :  { %v3596_v33 = vpop.eup %3595 }
 0xb58   :  { %1200 = vrot.lane.b32.xlu1 %v3596_v33, %s4248_s15 }
 0xb5c   :  { %1309 = vperm.xlu1 %3541, %v1307_v35   ;;  %v1456_v35 = vld [vmem:[#allocation5 + $0x8] sm:$0x3] }
 0xb60   :  { %1302 = vrot.lane.b32.xlu1 %v1229_v53, %s5272_s30  ;;  %v1295_v53 = vsub.f32 1.0, %v3594_v26 }
 0xba9   :  { %v1291_v38 = vpop.permute.xlu0 %1290 }
 0xbaa   :  { %v1293_v42 = vadd.f32 %v1291_v38, %v1232_v19 }
 0xbac   :  { %3597 = vtanh.f32 %v1293_v42 }
 0xbad   :  { %v1206_v44 = vpop.permute.xlu0 %1205 }
 0xbae   :  { %v1208_v47 = vmul.f32 %v3590_v15, %v1206_v44 }
 0xbb6   :  { %v3598_v43 = vpop.eup %3597 }
 0xbb7   :  { %1297 = vrot.lane.b32.xlu0 %v3598_v43, %s4248_s15 }
 0xbca   :  { %v1201_v46 = vpop.permute.xlu1 %1200 }
 0xbcb   :  { %v1203_v48 = vmul.f32 %v1201_v46, %v1198_v45 }
 0xbcd   :  { %v4844_v49 = vadd.f32 %v1208_v47, %v1203_v48 }
 0xbcf   :  { %v1210_v50 = vsel %vm1087_vm9, %v4844_v49, %v1206_v44 }
 0xbd0   :  { %1217 = vrot.lane.b32.xlu0 %v1210_v50, %s4248_s15 }
 0xbdb   :  { %v4850_v51 = vpop.permute.xlu1 %1309 }
 0xbdc   :  { %vm1311_vm11 = vcmp.eq.s32.totalorder %v4850_v51, 1 }
 0xbdf   :  { %v1303_v52 = vpop.permute.xlu1 %1302 }
 0xbe0   :  { %v1305_v55 = vmul.f32 %v3594_v26, %v1303_v52 }
 0xc29   :  { %v1298_v54 = vpop.permute.xlu0 %1297 }
 0xc2a   :  { %v1300_v56 = vmul.f32 %v1298_v54, %v1295_v53  ;;  %v1531_v53 = vsel %vm1452_vm12, 1, %v4246_v37 }
 0xc2c   :  { %v1306_v57 = vadd.f32 %v1305_v55, %v1300_v56 }
 0xc2e   :  { %v1312_v58 = vsel %vm1311_vm11, %v1306_v57, %v1303_v52 }
 0xc2f   :  { %1436 = vrot.lane.b32.xlu1 %v1312_v58, %s4248_s15  ;;  %v1313_v59 = vpack.c.bf16 %v1312_v58, %v1312_v58 }
 0xc31   :  { %1315 = vrot.lane.b32.xlu0 %v1313_v59, %s4248_s15 }
 0xc42   :  { %v1218_v60 = vpop.permute.xlu0 %1217 }
 0xc43   :  { %1220 = vst.msk [vmem:[#allocation3] sm:$0x3] %vm517_vm1, %v1218_v60 }
 0xc4a   :  { %v1230_v61 = vld [vmem:[#allocation3] sm:$0x3] }
 0xc4b   :  { %v1360_v62 = vpack.c.bf16 %v1230_v61, %v1230_v61 }
 0xc4d   :  { %3367 = vmatmul.mubr.msk.bf16.vlgmr.msra.gmra.mrb[24].mxu0 %vm409_vm2, %v1360_v62 }
 0xc4e   :  { %3377 = vmatpush3.bf16.msra.mxu0 %v4705_v14  ;;  %3378 = vmatprep.mubr.msk.bf16.mxu0 %vm4244_vm0, %v4242_v1 }
 0xc4f   :  { %3388 = vmatprep.subr.bf16.mxu0 %v4242_v1 }
 0xca1   :  { %v1437_v63 = vpop.permute.xlu1 %1436 }
 0xca2   :  { %1439 = vst.msk [vmem:[#allocation2] sm:$0x3] %vm517_vm1, %v1437_v63 }
 0xca3   :  { %v1316_v0 = vpop.permute.xlu0 %1315 }
 0xca4   :  { %3361 = vmatmul.mubr.msk.bf16.vlgmr.msra.gmra.mrb[20].mxu1 %vm409_vm2, %v1316_v0 }
 0xca5   :  { %3371 = vmatpush3.bf16.msra.mxu1 %v4663_v7  ;;  %3372 = vmatprep.mubr.msk.bf16.mxu1 %vm4244_vm0, %v4242_v1 }
 0xca6   :  { %3382 = vmatprep.subr.bf16.mxu1 %v4242_v1 }
 0xca9   :  { %v1453_v2 = vld [vmem:[#allocation2] sm:$0x3] }
 0xcaa   :  { %v1457_v3 = vpack.c.bf16 %v1453_v2, %v1453_v2 }
 0xcac   :  { %3373 = vmatmul.mubr.msk.bf16.vlgmr.msra.gmra.mrb[24].mxu1 %vm409_vm2, %v1457_v3 }
 0xcad   :  { %3383 = vmatpush3.bf16.msra.mxu1 %v4703_v12  ;;  %3384 = vmatprep.mubr.msk.bf16.mxu1 %vm4244_vm0, %v4242_v1 }
 0xcae   :  { %3394 = vmatprep.subr.bf16.mxu1 %v4242_v1 }
 0xd20   :  { %v1398_v4 = vpop.f32.mrb[24].mxu0 }
 0xd21   :  { %v1399_v6 = vadd.f32 %v4729_v27, %v1398_v4  ;;  %v3368_v7 = vpop.f32.mrb[25].mxu0 }
 0xd22   :  { %v1401_v8 = vpop.f32.mrb[26].mxu0 }
 0xd23   :  { %1412 = vrot.lane.b32.xlu1 %v1399_v6, %s4247_s19  ;;  %v3369_v9 = vpop.f32.mrb[27].mxu0 }
 0xd77   :  { %v1354_v10 = vpop.f32.mrb[20].mxu1 }
 0xd78   :  { %v1355_v11 = vadd.f32 %v4744_v40, %v1354_v10  ;;  %v3362_v13 = vpop.f32.mrb[21].mxu1 }
 0xd79   :  { %v1357_v15 = vpop.f32.mrb[22].mxu1 }
 0xd7a   :  { %v1404_v16 = vadd.f32 %v1399_v6, %v1355_v11  ;;  %v3363_v17 = vpop.f32.mrb[23].mxu1 }
 0xd7b   :  { %v4908_v17 = vld [vmem:[#allocation15] sm:$0xff]  }
 0xd7c   :  { %v3175_v19 = vmul.f32 -1.442695, %v1404_v16 }
 0xd7e   :  { %3599 = vpow2.f32 %v3175_v19 }
 0xd7f   :  { %v1495_v20 = vpop.f32.mrb[24].mxu1 }
 0xd80   :  { %v1496_v22 = vadd.f32 %v4681_v39, %v1495_v20  ;;  %v3374_v24 = vpop.f32.mrb[25].mxu1 }
 0xd81   :  { %v1498_v25 = vpop.f32.mrb[26].mxu1 }
 0xd82   :  { %1509 = vrot.lane.b32.xlu0 %v1496_v22, %s4247_s19  ;;  %v3375_v26 = vpop.f32.mrb[27].mxu1  ;;  %v1501_v38 = vadd.f32 %v1496_v22, %v1456_v35 }
 0xd84   :  { %v3177_v42 = vmul.f32 -1.442695, %v1501_v38 }
 0xd88   :  { %v3600_v28 = vpop.eup %3599 }
 0xd89   :  { %v1408_v29 = vadd.f32 1.0, %v3600_v28 }
 0xd8b   :  { %3601 = vrcp.f32 %v1408_v29 }
 0xd8c   :  { %3603 = vpow2.f32 %v3177_v42 }
 0xd95   :  { %v3602_v30 = vpop.eup %3601  ;;  %v1413_v31 = vpop.permute.xlu1 %1412 }
 0xd96   :  { %v1415_v33 = vmul.f32 %v3602_v30, %v1413_v31  ;;  %v3604_v43 = vpop.eup %3603  ;;  %v1422_v58 = vsub.f32 1.0, %v3602_v30 }
 0xd97   :  { %v1505_v44 = vadd.f32 1.0, %v3604_v43 }
 0xd98   :  { %1417 = vrot.lane.b32.xlu1 %v1415_v33, %s4231_s1 }
 0xd99   :  { %3605 = vrcp.f32 %v1505_v44 }
 0xda3   :  { %v3606_v45 = vpop.eup %3605 }
 0xdf4   :  { %v1510_v46 = vpop.permute.xlu0 %1509 }
 0xdf5   :  { %v1512_v47 = vmul.f32 %v3606_v45, %v1510_v46 }
 0xdf7   :  { %1514 = vrot.lane.b32.xlu0 %v1512_v47, %s4231_s1 }
 0xdfb   :  { %1429 = vrot.lane.b32.xlu0 %v1230_v61, %s5272_s30 }
 0xe0a   :  { %v1418_v48 = vpop.permute.xlu1 %1417 }
 0xe0b   :  { %v1420_v50 = vadd.f32 %v1418_v48, %v1355_v11 }
 0xe0d   :  { %3607 = vtanh.f32 %v1420_v50 }
 0xe17   :  { %v3608_v52 = vpop.eup %3607 }
 0xe18   :  { %1424 = vrot.lane.b32.xlu1 %v3608_v52, %s4248_s15 }
 0xe1c   :  { %1533 = vperm.xlu1 %3541, %v1531_v53  }
 0xe20   :  { %1526 = vrot.lane.b32.xlu1 %v1453_v2, %s5272_s30  ;;  %v1519_v2 = vsub.f32 1.0, %v3606_v45 }
 0xe69   :  { %v1515_v54 = vpop.permute.xlu0 %1514 }
 0xe6a   :  { %v1517_v55 = vadd.f32 %v1515_v54, %v1456_v35 }
 0xe6c   :  { %3609 = vtanh.f32 %v1517_v55  ;;  %v1680_v55 = vld [vmem:[#allocation5 + $0xa] sm:$0x3] }
 0xe6d   :  { %v1430_v57 = vpop.permute.xlu0 %1429 }
 0xe6e   :  { %v1432_v60 = vmul.f32 %v3602_v30, %v1430_v57 }
 0xe76   :  { %v3610_v56 = vpop.eup %3609 }
 0xe77   :  { %1521 = vrot.lane.b32.xlu0 %v3610_v56, %s4248_s15 }
 0xe8a   :  { %v1425_v59 = vpop.permute.xlu1 %1424 }
 0xe8b   :  { %v1427_v61 = vmul.f32 %v1425_v59, %v1422_v58 }
 0xe8d   :  { %v4887_v36 = vadd.f32 %v1432_v60, %v1427_v61 }
 0xe8f   :  { %v1434_v62 = vsel %vm1311_vm11, %v4887_v36, %v1430_v57 }
 0xe90   :  { %1441 = vrot.lane.b32.xlu0 %v1434_v62, %s4248_s15 }
 0xe9b   :  { %v4893_v63 = vpop.permute.xlu1 %1533 }
 0xe9c   :  { %vm1535_vm13 = vcmp.eq.s32.totalorder %v4893_v63, 1 }
 0xe9f   :  { %v1527_v0 = vpop.permute.xlu1 %1526 }
 0xea0   :  { %v1529_v4 = vmul.f32 %v3606_v45, %v1527_v0 }
 0xee9   :  { %v1522_v3 = vpop.permute.xlu0 %1521 }
 0xeea   :  { %v1524_v6 = vmul.f32 %v1522_v3, %v1519_v2  ;;  %v4927_v2 = vld [vmem:[#allocation6] sm:$0x3] }
 0xeeb   :  { %vm1676_vm14 = vcmp.gt.s32.totalorder %v4927_v2, 5  ;;  %vm1900_vm3 = vcmp.gt.s32.totalorder %v4927_v2, 6  ;;  %vm2124_vm6 = vcmp.gt.s32.totalorder %v4927_v2, 7 }
 0xeec   :  { %v1530_v7 = vadd.f32 %v1529_v4, %v1524_v6  ;;  %v1755_v4 = vsel %vm1676_vm14, 1, %v4246_v37 }
 0xeee   :  { %v1536_v8 = vsel %vm1535_vm13, %v1530_v7, %v1527_v0 }
 0xeef   :  { %1660 = vrot.lane.b32.xlu1 %v1536_v8, %s4248_s15  ;;  %v1537_v9 = vpack.c.bf16 %v1536_v8, %v1536_v8 }
 0xef1   :  { %1539 = vrot.lane.b32.xlu0 %v1537_v9, %s4248_s15 }
 0xf02   :  { %v1442_v10 = vpop.permute.xlu0 %1441 }
 0xf03   :  { %1444 = vst.msk [vmem:[#allocation3] sm:$0x3] %vm517_vm1, %v1442_v10 }
 0xf0a   :  { %v1454_v11 = vld [vmem:[#allocation3] sm:$0x3] }
 0xf0b   :  { %v1584_v13 = vpack.c.bf16 %v1454_v11, %v1454_v11 }
 0xf0d   :  { %3385 = vmatmul.mubr.msk.bf16.vlgmr.msra.gmra.mrb[28].mxu1 %vm409_vm2, %v1584_v13 }
 0xf0e   :  { %3395 = vmatpush3.bf16.msra.mxu1 %v4705_v14  ;;  %3396 = vmatprep.mubr.msk.bf16.mxu1 %vm4244_vm0, %v4242_v1 }
 0xf0f   :  { %3406 = vmatprep.subr.bf16.mxu1 %v4242_v1 }
 0xf61   :  { %v1661_v15 = vpop.permute.xlu1 %1660 }
 0xf62   :  { %1663 = vst.msk [vmem:[#allocation2] sm:$0x3] %vm517_vm1, %v1661_v15 }
 0xf63   :  { %v1540_v16 = vpop.permute.xlu0 %1539 }
 0xf64   :  { %3379 = vmatmul.mubr.msk.bf16.vlgmr.msra.gmra.mrb[28].mxu0 %vm409_vm2, %v1540_v16 }
 0xf65   :  { %3389 = vmatpush3.bf16.msra.mxu0 %v4908_v17  ;;  %3390 = vmatprep.mubr.msk.bf16.mxu0 %vm4244_vm0, %v4242_v1 }
 0xf66   :  { %3400 = vmatprep.subr.bf16.mxu0 %v4242_v1 }
 0xf69   :  { %v1677_v19 = vld [vmem:[#allocation2] sm:$0x3] }
 0xf6a   :  { %v1681_v20 = vpack.c.bf16 %v1677_v19, %v1677_v19 }
 0xf6c   :  { %3391 = vmatmul.mubr.msk.bf16.vlgmr.msra.gmra.mrb[32].mxu0 %vm409_vm2, %v1681_v20 }
 0xf6d   :  { %3401 = vmatpush3.bf16.msra.mxu0 %v4703_v12  ;;  %3402 = vmatprep.mubr.msk.bf16.mxu0 %vm4244_vm0, %v4242_v1 }
 0xf6e   :  { %3412 = vmatprep.subr.bf16.mxu0 %v4242_v1 }
 0xfe0   :  { %v1622_v22 = vpop.f32.mrb[28].mxu1 }
 0xfe1   :  { %v1623_v24 = vadd.f32 %v4729_v27, %v1622_v22  ;;  %v3386_v25 = vpop.f32.mrb[29].mxu1 }
 0xfe2   :  { %v1625_v26 = vpop.f32.mrb[30].mxu1 }
 0xfe3   :  { %v3387_v28 = vpop.f32.mrb[31].mxu1  ;;  %1636 = vrot.lane.b32.xlu1 %v1623_v24, %s4247_s19 }
0x1037   :  { %v1578_v29 = vpop.f32.mrb[28].mxu0 }
0x1038   :  { %v1579_v30 = vadd.f32 %v4744_v40, %v1578_v29  ;;  %v3380_v31 = vpop.f32.mrb[29].mxu0 }
0x1039   :  { %v1581_v33 = vpop.f32.mrb[30].mxu0 }
0x103a   :  { %v1628_v35 = vadd.f32 %v1623_v24, %v1579_v30  ;;  %v3381_v38 = vpop.f32.mrb[31].mxu0 }
0x103c   :  { %v3180_v42 = vmul.f32 -1.442695, %v1628_v35 }
0x103e   :  { %3611 = vpow2.f32 %v3180_v42 }
0x103f   :  { %v1719_v43 = vpop.f32.mrb[32].mxu0 }
0x1040   :  { %v1720_v44 = vadd.f32 %v4681_v39, %v1719_v43  ;;  %v3392_v45 = vpop.f32.mrb[33].mxu0 }
0x1041   :  { %v1722_v46 = vpop.f32.mrb[34].mxu0 }
0x1042   :  { %1733 = vrot.lane.b32.xlu0 %v1720_v44, %s4247_s19  ;;  %v3393_v47 = vpop.f32.mrb[35].mxu0  ;;  %v1725_v56 = vadd.f32 %v1720_v44, %v1680_v55 }
0x1044   :  { %v3182_v57 = vmul.f32 -1.442695, %v1725_v56 }
0x1048   :  { %v3612_v48 = vpop.eup %3611 }
0x1049   :  { %v1632_v50 = vadd.f32 1.0, %v3612_v48 }
0x104b   :  { %3613 = vrcp.f32 %v1632_v50 }
0x104c   :  { %3615 = vpow2.f32 %v3182_v57 }
0x1055   :  { %v3614_v52 = vpop.eup %3613  ;;  %v1637_v53 = vpop.permute.xlu1 %1636 }
0x1056   :  { %v1639_v54 = vmul.f32 %v3614_v52, %v1637_v53  ;;  %v3616_v58 = vpop.eup %3615  ;;  %v1646_v10 = vsub.f32 1.0, %v3614_v52 }
0x1057   :  { %v1729_v59 = vadd.f32 1.0, %v3616_v58 }
0x1058   :  { %1641 = vrot.lane.b32.xlu1 %v1639_v54, %s4231_s1 }
0x1059   :  { %3617 = vrcp.f32 %v1729_v59  ;;  %v4967_v59 = vld [vmem:[#allocation18] ss:$0 sm:$0xff] }
0x1063   :  { %v3618_v39 = vpop.eup %3617 }
0x1064   :  { %v1743_v24 = vsub.f32 1.0, %v3618_v39 }
0x10b4   :  { %v1734_v60 = vpop.permute.xlu0 %1733 }
0x10b5   :  { %v1736_v61 = vmul.f32 %v3618_v39, %v1734_v60 }
0x10b7   :  { %1738 = vrot.lane.b32.xlu0 %v1736_v61, %s4231_s1 }
0x10bb   :  { %1653 = vrot.lane.b32.xlu0 %v1454_v11, %s5272_s30 }
0x10ca   :  { %v1642_v62 = vpop.permute.xlu1 %1641 }
0x10cb   :  { %v1644_v0 = vadd.f32 %v1642_v62, %v1579_v30 }
0x10cd   :  { %3619 = vtanh.f32 %v1644_v0 }
0x10d7   :  { %v3620_v3 = vpop.eup %3619 }
0x10d8   :  { %1648 = vrot.lane.b32.xlu1 %v3620_v3, %s4248_s15 }
0x10dc   :  { %1757 = vperm.xlu1 %3541, %v1755_v4  }
0x10e0   :  { %1750 = vrot.lane.b32.xlu1 %v1677_v19, %s5272_s30 }
0x1129   :  { %v1739_v6 = vpop.permute.xlu0 %1738 }
0x112a   :  { %v1741_v7 = vadd.f32 %v1739_v6, %v1680_v55  ;;  %v1904_v6 = vld [vmem:[#allocation5 + $0xc] sm:$0x3] }
0x112c   :  { %3621 = vtanh.f32 %v1741_v7 }
0x112d   :  { %v1654_v9 = vpop.permute.xlu0 %1653 }
0x112e   :  { %v1656_v13 = vmul.f32 %v3614_v52, %v1654_v9 }
0x1136   :  { %v3622_v8 = vpop.eup %3621 }
0x1137   :  { %1745 = vrot.lane.b32.xlu0 %v3622_v8, %s4248_s15 }
0x114a   :  { %v1649_v11 = vpop.permute.xlu1 %1648 }
0x114b   :  { %v1651_v15 = vmul.f32 %v1649_v11, %v1646_v10 }
0x114d   :  { %v4934_v16 = vadd.f32 %v1656_v13, %v1651_v15 }
0x114f   :  { %v1658_v20 = vsel %vm1535_vm13, %v4934_v16, %v1654_v9 }
0x1150   :  { %1665 = vrot.lane.b32.xlu0 %v1658_v20, %s4248_s15 }
0x115b   :  { %v4940_v19 = vpop.permute.xlu1 %1757 }
0x115c   :  { %vm1759_vm15 = vcmp.eq.s32.totalorder %v4940_v19, 1  ;;  %v3547_v19 = vld [vmem:[#allocation26] sm:$0xff]  }
0x115f   :  { %v1751_v22 = vpop.permute.xlu1 %1750 }
0x1160   :  { %v1753_v26 = vmul.f32 %v3618_v39, %v1751_v22 }
0x11a9   :  { %v1746_v25 = vpop.permute.xlu0 %1745 }
0x11aa   :  { %v1748_v28 = vmul.f32 %v1746_v25, %v1743_v24  ;;  %v1979_v25 = vsel %vm1900_vm3, 1, %v4246_v37 }
0x11ac   :  { %v1754_v29 = vadd.f32 %v1753_v26, %v1748_v28 }
0x11ae   :  { %v1760_v30 = vsel %vm1759_vm15, %v1754_v29, %v1751_v22 }
0x11af   :  { %1884 = vrot.lane.b32.xlu1 %v1760_v30, %s4248_s15  ;;  %v1761_v31 = vpack.c.bf16 %v1760_v30, %v1760_v30 }
0x11b1   :  { %1763 = vrot.lane.b32.xlu0 %v1761_v31, %s4248_s15 }
0x11c2   :  { %v1666_v33 = vpop.permute.xlu0 %1665 }
0x11c3   :  { %1668 = vst.msk [vmem:[#allocation3] sm:$0x3] %vm517_vm1, %v1666_v33 }
0x11ca   :  { %v1678_v35 = vld [vmem:[#allocation3] sm:$0x3] }
0x11cb   :  { %v1808_v38 = vpack.c.bf16 %v1678_v35, %v1678_v35 }
0x11cd   :  { %3403 = vmatmul.mubr.msk.bf16.vlgmr.msra.gmra.mrb[36].mxu0 %vm409_vm2, %v1808_v38 }
0x11ce   :  { %3413 = vmatpush3.bf16.msra.mxu0 %v4705_v14  ;;  %3414 = vmatprep.mubr.msk.bf16.mxu0 %vm4244_vm0, %v4242_v1 }
0x11cf   :  { %3424 = vmatprep.subr.bf16.mxu0 %v4242_v1 }
0x1221   :  { %v1885_v42 = vpop.permute.xlu1 %1884 }
0x1222   :  { %1887 = vst.msk [vmem:[#allocation2] sm:$0x3] %vm517_vm1, %v1885_v42 }
0x1223   :  { %v1764_v43 = vpop.permute.xlu0 %1763 }
0x1224   :  { %3397 = vmatmul.mubr.msk.bf16.vlgmr.msra.gmra.mrb[32].mxu1 %vm409_vm2, %v1764_v43 }
0x1225   :  { %3407 = vmatpush3.bf16.msra.mxu1 %v4908_v17  ;;  %3408 = vmatprep.mubr.msk.bf16.mxu1 %vm4244_vm0, %v4242_v1 }
0x1226   :  { %3418 = vmatprep.subr.bf16.mxu1 %v4242_v1 }
0x1229   :  { %v1901_v44 = vld [vmem:[#allocation2] sm:$0x3] }
0x122a   :  { %v1905_v14 = vpack.c.bf16 %v1901_v44, %v1901_v44 }
0x122c   :  { %3409 = vmatmul.mubr.msk.bf16.vlgmr.msra.gmra.mrb[36].mxu1 %vm409_vm2, %v1905_v14 }
0x122d   :  { %3419 = vmatpush3.bf16.msra.mxu1 %v4703_v12  ;;  %3420 = vmatprep.mubr.msk.bf16.mxu1 %vm4244_vm0, %v4242_v1 }
0x122e   :  { %3430 = vmatprep.subr.bf16.mxu1 %v4242_v1 }
0x12a0   :  { %v1846_v45 = vpop.f32.mrb[36].mxu0 }
0x12a1   :  { %v1847_v46 = vadd.f32 %v4729_v27, %v1846_v45  ;;  %v3404_v47 = vpop.f32.mrb[37].mxu0 }
0x12a2   :  { %v1849_v48 = vpop.f32.mrb[38].mxu0 }
0x12a3   :  { %1860 = vrot.lane.b32.xlu1 %v1847_v46, %s4247_s19  ;;  %v3405_v50 = vpop.f32.mrb[39].mxu0 }
0x12f7   :  { %v1802_v52 = vpop.f32.mrb[32].mxu1 }
0x12f8   :  { %v1803_v53 = vadd.f32 %v4744_v40, %v1802_v52  ;;  %v3398_v54 = vpop.f32.mrb[33].mxu1 }
0x12f9   :  { %v1805_v55 = vpop.f32.mrb[34].mxu1 }
0x12fa   :  { %v1852_v56 = vadd.f32 %v1847_v46, %v1803_v53  ;;  %v3399_v12 = vpop.f32.mrb[35].mxu1 }
0x12fb   :  { %v3676_v12 = vld [vmem:[#allocation20] sm:$0xff]  }
0x12fc   :  { %v3185_v57 = vmul.f32 -1.442695, %v1852_v56 }
0x12fe   :  { %3623 = vpow2.f32 %v3185_v57 }
0x12ff   :  { %v1943_v58 = vpop.f32.mrb[36].mxu1 }
0x1300   :  { %v1944_v39 = vadd.f32 %v4967_v59, %v1943_v58  ;;  %v3410_v27 = vpop.f32.mrb[37].mxu1 }
0x1301   :  { %v1946_v60 = vpop.f32.mrb[38].mxu1 }
0x1302   :  { %1957 = vrot.lane.b32.xlu0 %v1944_v39, %s4247_s19  ;;  %v3411_v61 = vpop.f32.mrb[39].mxu1  ;;  %v1949_v7 = vadd.f32 %v1944_v39, %v1904_v6  ;;  %v3677_v60 = vld [vmem:[#allocation21] sm:$0xff]  }
0x1304   :  { %v3187_v8 = vmul.f32 -1.442695, %v1949_v7 }
0x1308   :  { %v3624_v62 = vpop.eup %3623 }
0x1309   :  { %v1856_v0 = vadd.f32 1.0, %v3624_v62  ;;  %v5006_v62 = vld [vmem:[#allocation24] ss:$0 sm:$0xff] }
0x130b   :  { %3625 = vrcp.f32 %v1856_v0 }
0x130c   :  { %3627 = vpow2.f32 %v3187_v8 }
0x1315   :  { %v3626_v40 = vpop.eup %3625  ;;  %v1861_v3 = vpop.permute.xlu1 %1860 }
0x1316   :  { %v1863_v4 = vmul.f32 %v3626_v40, %v1861_v3  ;;  %v3628_v9 = vpop.eup %3627  ;;  %v1870_v31 = vsub.f32 1.0, %v3626_v40 }
0x1317   :  { %v1953_v10 = vadd.f32 1.0, %v3628_v9 }
0x1318   :  { %1865 = vrot.lane.b32.xlu1 %v1863_v4, %s4231_s1 }
0x1319   :  { %3629 = vrcp.f32 %v1953_v10 }
0x1323   :  { %v3630_v11 = vpop.eup %3629 }
0x1324   :  { %v1967_v45 = vsub.f32 1.0, %v3630_v11 }
0x1374   :  { %v1958_v13 = vpop.permute.xlu0 %1957 }
0x1375   :  { %v1960_v15 = vmul.f32 %v3630_v11, %v1958_v13 }
0x1377   :  { %1962 = vrot.lane.b32.xlu0 %v1960_v15, %s4231_s1 }
0x137b   :  { %1877 = vrot.lane.b32.xlu0 %v1678_v35, %s5272_s30 }
0x138a   :  { %v1866_v20 = vpop.permute.xlu1 %1865 }
0x138b   :  { %v1868_v22 = vadd.f32 %v1866_v20, %v1803_v53 }
0x138d   :  { %3631 = vtanh.f32 %v1868_v22 }
0x1397   :  { %v3632_v24 = vpop.eup %3631 }
0x1398   :  { %1872 = vrot.lane.b32.xlu1 %v3632_v24, %s4248_s15 }
0x139c   :  { %1981 = vperm.xlu1 %3541, %v1979_v25  }
0x13a0   :  { %1974 = vrot.lane.b32.xlu1 %v1901_v44, %s5272_s30 }
0x13e9   :  { %v1963_v26 = vpop.permute.xlu0 %1962 }
0x13ea   :  { %v1965_v28 = vadd.f32 %v1963_v26, %v1904_v6  ;;  %v5010_v6 = vld [vmem:[#allocation23] ss:$0 sm:$0xff] }
0x13ec   :  { %3633 = vtanh.f32 %v1965_v28 }
0x13ed   :  { %v1878_v30 = vpop.permute.xlu0 %1877 }
0x13ee   :  { %v1880_v35 = vmul.f32 %v3626_v40, %v1878_v30 }
0x13f6   :  { %v3634_v29 = vpop.eup %3633 }
0x13f7   :  { %1969 = vrot.lane.b32.xlu0 %v3634_v29, %s4248_s15 }
0x140a   :  { %v1873_v33 = vpop.permute.xlu1 %1872 }
0x140b   :  { %v1875_v38 = vmul.f32 %v1873_v33, %v1870_v31  ;;  %v2128_v33 = vld [vmem:[#allocation5 + $0xe] sm:$0x3] }
0x140d   :  { %v4979_v42 = vadd.f32 %v1880_v35, %v1875_v38 }
0x140f   :  { %v1882_v43 = vsel %vm1759_vm15, %v4979_v42, %v1878_v30 }
0x1410   :  { %1889 = vrot.lane.b32.xlu0 %v1882_v43, %s4248_s15 }
0x141b   :  { %v4985_v44 = vpop.permute.xlu1 %1981 }
0x141c   :  { %vm1983_vm4 = vcmp.eq.s32.totalorder %v4985_v44, 1  ;;  %v3548_v44 = vld [vmem:[#allocation27] sm:$0xff]  }
0x141f   :  { %v1975_v14 = vpop.permute.xlu1 %1974 }
0x1420   :  { %v1977_v47 = vmul.f32 %v3630_v11, %v1975_v14 }
0x1469   :  { %v1970_v46 = vpop.permute.xlu0 %1969 }
0x146a   :  { %v1972_v48 = vmul.f32 %v1970_v46, %v1967_v45 }
0x146c   :  { %v1978_v50 = vadd.f32 %v1977_v47, %v1972_v48 }
0x146e   :  { %v1984_v52 = vsel %vm1983_vm4, %v1978_v50, %v1975_v14 }
0x146f   :  { %2108 = vrot.lane.b32.xlu1 %v1984_v52, %s4248_s15  ;;  %v1985_v53 = vpack.c.bf16 %v1984_v52, %v1984_v52  ;;  %v2203_v52 = vsel %vm2124_vm6, 1, %v4246_v37 }
0x1471   :  { %1987 = vrot.lane.b32.xlu0 %v1985_v53, %s4248_s15 }
0x1482   :  { %v1890_v54 = vpop.permute.xlu0 %1889 }
0x1483   :  { %1892 = vst.msk [vmem:[#allocation3] sm:$0x3] %vm517_vm1, %v1890_v54 }
0x148a   :  { %v1902_v55 = vld [vmem:[#allocation3] sm:$0x3] }
0x148b   :  { %v2032_v56 = vpack.c.bf16 %v1902_v55, %v1902_v55 }
0x148d   :  { %3421 = vmatmul.mubr.msk.bf16.vlgmr.msra.gmra.mrb[40].mxu1 %vm409_vm2, %v2032_v56 }
0x148e   :  { %3431 = vmatpush3.bf16.msra.mxu1 %v3676_v12  ;;  %3432 = vmatprep.mubr.msk.bf16.mxu1 %vm4244_vm0, %v4242_v1 }
0x148f   :  { %3442 = vmatprep.subr.bf16.mxu1 %v3547_v19 }
0x14e1   :  { %v2109_v57 = vpop.permute.xlu1 %2108 }
0x14e2   :  { %2111 = vst.msk [vmem:[#allocation2] sm:$0x3] %vm517_vm1, %v2109_v57 }
0x14e3   :  { %v1988_v58 = vpop.permute.xlu0 %1987 }
0x14e4   :  { %3415 = vmatmul.mubr.msk.bf16.vlgmr.msra.gmra.mrb[40].mxu0 %vm409_vm2, %v1988_v58 }
0x14e5   :  { %3425 = vmatpush3.bf16.msra.mxu0 %v4908_v17  ;;  %3426 = vmatprep.mubr.msk.bf16.mxu0 %vm4244_vm0, %v4242_v1 }
0x14e6   :  { %3436 = vmatprep.subr.bf16.mxu0 %v4242_v1 }
0x14e9   :  { %v2125_v39 = vld [vmem:[#allocation2] sm:$0x3] }
0x14ea   :  { %v2129_v27 = vpack.c.bf16 %v2125_v39, %v2125_v39 }
0x14ec   :  { %3427 = vmatmul.mubr.msk.bf16.vlgmr.msra.gmra.mrb[44].mxu0 %vm409_vm2, %v2129_v27 }
0x14ed   :  { %3437 = vmatpush3.bf16.msra.mxu0 %v3677_v60  ;;  %3438 = vmatprep.mubr.msk.bf16.mxu0 %vm4244_vm0, %v4242_v1 }
0x14ee   :  { %3448 = vmatprep.subr.bf16.mxu0 %v4242_v1 }
0x1560   :  { %v2070_v61 = vpop.f32.mrb[40].mxu1 }
0x1561   :  { %v2071_v17 = vadd.f32 %v5006_v62, %v2070_v61  ;;  %v3422_v0 = vpop.f32.mrb[41].mxu1 }
0x1562   :  { %v2073_v40 = vpop.f32.mrb[42].mxu1 }
0x1563   :  { %v3423_v3 = vpop.f32.mrb[43].mxu1  ;;  %2084 = vrot.lane.b32.xlu1 %v2071_v17, %s4247_s19 }
0x15b7   :  { %v2026_v4 = vpop.f32.mrb[40].mxu0 }
0x15b8   :  { %v2027_v7 = vadd.f32 %v5010_v6, %v2026_v4  ;;  %v3416_v8 = vpop.f32.mrb[41].mxu0 }
0x15b9   :  { %v2029_v9 = vpop.f32.mrb[42].mxu0 }
0x15ba   :  { %v2076_v10 = vadd.f32 %v2071_v17, %v2027_v7  ;;  %v3417_v11 = vpop.f32.mrb[43].mxu0 }
0x15bc   :  { %v3190_v13 = vmul.f32 -1.442695, %v2076_v10 }
0x15be   :  { %3635 = vpow2.f32 %v3190_v13 }
0x15bf   :  { %v2167_v15 = vpop.f32.mrb[44].mxu0 }
0x15c0   :  { %v2168_v20 = vadd.f32 %v4967_v59, %v2167_v15  ;;  %v3428_v22 = vpop.f32.mrb[45].mxu0 }
0x15c1   :  { %v2170_v24 = vpop.f32.mrb[46].mxu0 }
0x15c2   :  { %2181 = vrot.lane.b32.xlu0 %v2168_v20, %s4247_s19  ;;  %v3429_v25 = vpop.f32.mrb[47].mxu0  ;;  %v2173_v35 = vadd.f32 %v2168_v20, %v2128_v33 }
0x15c4   :  { %v3192_v38 = vmul.f32 -1.442695, %v2173_v35 }
0x15c8   :  { %v3636_v26 = vpop.eup %3635 }
0x15c9   :  { %v2080_v28 = vadd.f32 1.0, %v3636_v26 }
0x15cb   :  { %3637 = vrcp.f32 %v2080_v28 }
0x15cc   :  { %3639 = vpow2.f32 %v3192_v38 }
0x15d5   :  { %v3638_v29 = vpop.eup %3637  ;;  %v2085_v30 = vpop.permute.xlu1 %2084 }
0x15d6   :  { %v2087_v31 = vmul.f32 %v3638_v29, %v2085_v30  ;;  %v3640_v43 = vpop.eup %3639  ;;  %v2094_v12 = vsub.f32 1.0, %v3638_v29 }
0x15d7   :  { %v2177_v14 = vadd.f32 1.0, %v3640_v43 }
0x15d8   :  { %2089 = vrot.lane.b32.xlu1 %v2087_v31, %s4231_s1 }
0x15d9   :  { %3641 = vrcp.f32 %v2177_v14 }
0x15e3   :  { %v3642_v59 = vpop.eup %3641 }
0x15e4   :  { %v2191_v61 = vsub.f32 1.0, %v3642_v59 }
0x1634   :  { %v2182_v45 = vpop.permute.xlu0 %2181 }
0x1635   :  { %v2184_v46 = vmul.f32 %v3642_v59, %v2182_v45  ;;  %v1893_v45 = vsel %vm1759_vm15, %v4979_v42, 0.0  ;;  %v1221_v42 = vsel %vm1087_vm9, %v4844_v49, 0.0 }
0x1637   :  { %2186 = vrot.lane.b32.xlu0 %v2184_v46, %s4231_s1 }
0x163b   :  { %2101 = vrot.lane.b32.xlu0 %v1902_v55, %s5272_s30 }
0x164a   :  { %v2090_v47 = vpop.permute.xlu1 %2089 }
0x164b   :  { %v2092_v48 = vadd.f32 %v2090_v47, %v2027_v7 }
0x164d   :  { %3643 = vtanh.f32 %v2092_v48 }
0x1657   :  { %v3644_v50 = vpop.eup %3643 }
0x1658   :  { %2096 = vrot.lane.b32.xlu1 %v3644_v50, %s4248_s15 }
0x165c   :  { %2205 = vperm.xlu1 %3541, %v2203_v52   ;;  %v1669_v52 = vsel %vm1535_vm13, %v4934_v16, 0.0 }
0x1660   :  { %2198 = vrot.lane.b32.xlu1 %v2125_v39, %s5272_s30 }
0x16a9   :  { %v2187_v53 = vpop.permute.xlu0 %2186 }
0x16aa   :  { %v2189_v54 = vadd.f32 %v2187_v53, %v2128_v33 }
0x16ac   :  { %3645 = vtanh.f32 %v2189_v54  ;;  %v3197_v54 = vld.sshfl [vmem:[#allocation12 + $0x4] sm:$0x3 pattern:$0x76325410] }
0x16ad   :  { %v2102_v55 = vpop.permute.xlu0 %2101 }
0x16ae   :  { %v2104_v58 = vmul.f32 %v3638_v29, %v2102_v55 }
0x16b6   :  { %v3646_v56 = vpop.eup %3645 }
0x16b7   :  { %2193 = vrot.lane.b32.xlu0 %v3646_v56, %s4248_s15  ;;  %v3198_v56 = vld.sshfl [vmem:[#allocation12 + $0x8] sm:$0x33 pattern:$0x76325410] }
0x16b8   :  { %v2442_v49 = vcombine.high %v3198_v56, %v3198_v56 }
0x16ca   :  { %v2097_v57 = vpop.permute.xlu1 %2096 }
0x16cb   :  { %v2099_v27 = vmul.f32 %v2097_v57, %v2094_v12  ;;  %v3199_v57 = vld.sshfl [vmem:[#allocation12 + $0xc] sm:$0x3 pattern:$0x76325410] }
0x16cc   :  { %v2469_v16 = vcombine.low %v2442_v49, %v3199_v57 }
0x16cd   :  { %v5023_v2 = vadd.f32 %v2104_v58, %v2099_v27 }
0x16ce   :  { %v2476_v27 = vrot.slane %v2469_v16, %v4685_v41 }
0x16cf   :  { %v2106_v37 = vsel %vm1983_vm4, %v5023_v2, %v2102_v55  ;;  %v2117_v18 = vsel %vm1983_vm4, %v5023_v2, 0.0  ;;  %v2453_v55 = vcombine.low %v3197_v54, %v3198_v56 }
0x16d0   :  { %2113 = vrot.lane.b32.xlu0 %v2106_v37, %s4248_s15 }
0x16d1   :  { %v2467_v63 = vrot.slane %v2453_v55, %v4685_v41 }
0x16db   :  { %v5029_v39 = vpop.permute.xlu1 %2205 }
0x16dc   :  { %vm2207_vm8 = vcmp.eq.s32.totalorder %v5029_v39, 1 }
0x16df   :  { %v2199_v60 = vpop.permute.xlu1 %2198 }
0x16e0   :  { %v2201_v0 = vmul.f32 %v3642_v59, %v2199_v60  ;;  %v1445_v59 = vsel %vm1311_vm11, %v4887_v36, 0.0  ;;  %v774_v36 = vsel %vm616_vm5, %v4758_v21, 0.0  ;;  %v3196_v21 = vld.sshfl [vmem:[#allocation12] sm:$0x33 pattern:$0x76325410] }
0x16e1   :  { %v2427_v53 = vcombine.high %v3196_v21, %v3196_v21  ;;  %vm2797_vm5 = vcmask 1045504  }
0x16e3   :  { %v2452_v34 = vcombine.low %v3196_v21, %v2427_v53 }
0x16e5   :  { %v2460_v12 = vrot.slane %v2452_v34, %v4685_v41 }
0x16e7   :  { %v2468_v58 = vcombine.low %v2460_v12, %v2467_v63 }
0x1729   :  { %v2194_v17 = vpop.permute.xlu0 %2193 }
0x172a   :  { %v2196_v40 = vmul.f32 %v2194_v17, %v2191_v61 }
0x172c   :  { %v2202_v3 = vadd.f32 %v2201_v0, %v2196_v40 }
0x172e   :  { %v5034_v4 = vsel %vm2207_vm8, %v2202_v3, %v2199_v60 }
0x172f   :  { %v2209_v7 = vpack.c.bf16 %v5034_v4, %v5034_v4 }
0x1731   :  { %2211 = vrot.lane.b32.xlu1 %v2209_v7, %s4248_s15 }
0x1742   :  { %v2114_v8 = vpop.permute.xlu0 %2113 }
0x1743   :  { %2116 = vst.msk [vmem:[#allocation3] sm:$0x3] %vm517_vm1, %v2114_v8  ;;  %v3553_v8 = vld [vmem:[#allocation29] sm:$0xff]  }
0x174a   :  { %v2126_v9 = vld [vmem:[#allocation3] sm:$0x3] }
0x174b   :  { %v2256_v10 = vpack.c.bf16 %v2126_v9, %v2126_v9 }
0x174d   :  { %3439 = vmatmul.mubr.msk.bf16.vlgmr.msra.gmra.mrb[48].mxu0 %vm409_vm2, %v2256_v10 }
0x174e   :  { %3450 = vmatprep.mubr.msk.bf16.mxu0 %vm4244_vm0, %v4242_v1  ;;  %3449 = vmatpush3.bf16.msra.mxu0 %v3548_v44 }
0x174f   :  { %3460 = vmatprep.subr.bf16.mxu0 %v4242_v1 }
0x17a3   :  { %v2212_v11 = vpop.permute.xlu1 %2211 }
0x17a4   :  { %3433 = vmatmul.mubr.msk.bf16.vlgmr.msra.gmra.mrb[44].mxu1 %vm409_vm2, %v2212_v11  ;;  %v4249_v11 = vmov 1934713408  }
0x17a5   :  { %3443 = vmatpush3.bf16.msra.mxu1 %v3547_v19  ;;  %3444 = vmatprep.mubr.msk.bf16.mxu1 %vm409_vm2, %v2468_v58 }
0x17a6   :  { %3454 = vmatprep.subr.bf16.mxu1 %v3553_v8 }
0x17ac   :  { %3445 = vmatmul.mubr.msk.bf16.vlgmr.msra.gmra.mrb[48].mxu1 %vm409_vm2, %v2476_v27 }
0x17ad   :  { %3456 = vmatprep.mubr.msk.bf16.mxu1 %vm409_vm2, %v2468_v58  ;;  %3455 = vmatpush3.bf16.msra.mxu1 %v3553_v8 }
0x17ae   :  { %3466 = vmatprep.subr.bf16.mxu1 %v4242_v1 }
0x17b4   :  { %3457 = vmatmul.mubr.msk.bf16.vlgmr.msra.gmra.mrb[52].mxu1 %vm409_vm2, %v2476_v27 }
0x17b5   :  { %3468 = vmatprep.mubr.msk.bf16.mxu1 %vm4244_vm0, %v4242_v1 }
0x1820   :  { %v2294_v13 = vpop.f32.mrb[48].mxu0 }
0x1821   :  { %v2295_v15 = vadd.f32 %v5006_v62, %v2294_v13  ;;  %v3440_v20 = vpop.f32.mrb[49].mxu0  ;;  %v2395_v13 = vunpack.c.l.s4 %v4249_v11 }
0x1822   :  { %v2297_v22 = vpop.f32.mrb[50].mxu0 }
0x1823   :  { %2308 = vrot.lane.b32.xlu0 %v2295_v15, %s4247_s19  ;;  %v3441_v24 = vpop.f32.mrb[51].mxu0  ;;  %v2396_v22 = vunpack.c.0.s8 %v2395_v13 }
0x1877   :  { %v2250_v25 = vpop.f32.mrb[44].mxu1 }
0x1878   :  { %v2251_v26 = vadd.f32 %v5010_v6, %v2250_v25  ;;  %v3434_v28 = vpop.f32.mrb[45].mxu1  ;;  %v997_v6 = vsel %vm863_vm7, %v4801_v32, 0.0  ;;  %vm2761_vm7 = vcmask 97280  }
0x1879   :  { %v2253_v29 = vpop.f32.mrb[46].mxu1 }
0x187a   :  { %v2300_v30 = vadd.f32 %v2295_v15, %v2251_v26  ;;  %v3435_v31 = vpop.f32.mrb[47].mxu1 }
0x187c   :  { %v3195_v33 = vmul.f32 -1.442695, %v2300_v30 }
0x187e   :  { %3647 = vpow2.f32 %v3195_v33 }
0x1888   :  { %v3648_v35 = vpop.eup %3647 }
0x1889   :  { %v2304_v38 = vadd.f32 1.0, %v3648_v35 }
0x188b   :  { %3649 = vrcp.f32 %v2304_v38  ;;  %v3446_v38 = vpop.f32.mrb[48].mxu1 }
0x1895   :  { %v3650_v43 = vpop.eup %3649  ;;  %v2309_v14 = vpop.permute.xlu0 %2308 }
0x1896   :  { %v2311_v62 = vmul.f32 %v3650_v43, %v2309_v14  ;;  %v2318_v2 = vsub.f32 1.0, %v3650_v43 }
0x1898   :  { %2313 = vrot.lane.b32.xlu1 %v2311_v62, %s4231_s1 }
0x189c   :  { %2325 = vrot.lane.b32.xlu1 %v2126_v9, %s5272_s30 }
0x18a0   :  { %999 = vrot.lane.b32.xlu1 %v997_v6, %s4248_s15 }
0x18a4   :  { %1447 = vrot.lane.b32.xlu1 %v1445_v59, %s4248_s15  ;;  %v2542_v59 = vcombine.high %v3446_v38, %v3446_v38 }
0x18a8   :  { %1895 = vrot.lane.b32.xlu1 %v1893_v45, %s4248_s15 }
0x190a   :  { %v2314_v46 = vpop.permute.xlu1 %2313 }
0x190b   :  { %v2316_v47 = vadd.f32 %v2314_v46, %v2251_v26  ;;  %v2399_v26 = vsub.s32 %v2396_v22, %v4661_v5 }
0x190d   :  { %3651 = vtanh.f32 %v2316_v47 }
0x190e   :  { %v5061_v48 = vpop.permute.xlu1 %2325 }
0x190f   :  { %v2328_v60 = vmul.f32 %v3650_v43, %v5061_v48  ;;  %v2523_v43 = vpop.f32.mrb[49].mxu1 }
0x1910   :  { %v2540_v14 = vcombine.high %v2523_v43, %v2523_v43  ;;  %v3447_v62 = vpop.f32.mrb[50].mxu1 }
0x1911   :  { %v2526_v6 = vpop.f32.mrb[51].mxu1 }
0x1912   :  { %v1000_v23 = vpop.permute.xlu1 %999  ;;  %v2661_v5 = vcombine.low %v2523_v43, %v2540_v14  ;;  %v2541_v45 = vcombine.high %v2526_v6, %v2526_v6 }
0x1913   :  { %1003 = vst.msk [vmem:[#allocation4 + $0x2] sm:$0x3] %vm517_vm1, %v1000_v23 }
0x1914   :  { %v2662_v46 = vcombine.low %v2541_v45, %v3446_v38  ;;  %v2665_v47 = vpack.c.bf16 %v2526_v6, %v2661_v5  ;;  %v3554_v38 = vld [vmem:[#allocation32] sm:$0xff]   ;;  %v3555_v6 = vld [vmem:[#allocation30] sm:$0xff]  }
0x1916   :  { %v1448_v32 = vpop.permute.xlu1 %1447  ;;  %v2671_v23 = vsel %vm409_vm2, %v2665_v47, 0 }
0x1917   :  { %v3652_v50 = vpop.eup %3651  ;;  %1451 = vst.msk [vmem:[#allocation4 + $0x6] sm:$0x3] %vm517_vm1, %v1448_v32  ;;  %v2666_v32 = vpack.c.bf16 %v2542_v59, %v2662_v46 }
0x1918   :  { %2320 = vrot.lane.b32.xlu0 %v3652_v50, %s4248_s15 }
0x1919   :  { %v2717_v50 = vsel %vm409_vm2, %v2666_v32, 0 }
0x191a   :  { %v1896_v51 = vpop.permute.xlu1 %1895  ;;  %3467 = vmatpush3.bf16.xpose.msra.mxu1 %v2717_v50 }
0x191b   :  { %1899 = vst.msk [vmem:[#allocation4 + $0xa] sm:$0x3] %vm517_vm1, %v1896_v51  ;;  %3478 = vmatprep.subr.bf16.mxu1 %v4242_v1  ;;  %v3458_v51 = vpop.f32.mrb[52].mxu1 }
0x191c   :  { %776 = vrot.lane.b32.xlu0 %v774_v36, %s4248_s15  ;;  %v2638_v36 = vpop.f32.mrb[53].mxu1  ;;  %v2657_v63 = vcombine.high %v3458_v51, %v3458_v51 }
0x191d   :  { %v2655_v19 = vcombine.high %v2638_v36, %v2638_v36 }
0x191e   :  { %v3681_v15 = vld.sshfl [vmem:[#allocation4 + $0x2] sm:$0xf pattern:$0x76325410] }
0x1920   :  { %1223 = vrot.lane.b32.xlu0 %v1221_v42, %s4248_s15  ;;  %v3459_v42 = vpop.f32.mrb[54].mxu1 }
0x1924   :  { %1671 = vrot.lane.b32.xlu0 %v1669_v52, %s4248_s15  ;;  %v2641_v52 = vpop.f32.mrb[55].mxu1 }
0x1925   :  { %v2656_v21 = vcombine.high %v2641_v52, %v2641_v52 }
0x1927   :  { %v2789_v53 = vcombine.low %v2656_v21, %v3458_v51  ;;  %v3556_v21 = vld [vmem:[#allocation35] sm:$0xff]  }
0x1928   :  { %2119 = vrot.lane.b32.xlu0 %v2117_v18, %s4248_s15  ;;  %v2788_v18 = vcombine.low %v2638_v36, %v2655_v19 }
0x1929   :  { %v2793_v58 = vpack.c.bf16 %v2657_v63, %v2789_v53  ;;  %v3216_v53 = vld [vmem:[#allocation33] ss:$0 sm:$0xff] }
0x192a   :  { %v2792_v54 = vpack.c.bf16 %v2641_v52, %v2788_v18 }
0x192b   :  { %v2845_v27 = vsel %vm2797_vm5, %v2793_v58, 0  ;;  %v3217_v58 = vld [vmem:[#allocation36] ss:$0 sm:$0xff] }
0x192c   :  { %v2799_v16 = vsel %vm2797_vm5, %v2792_v54, 0 }
0x198a   :  { %v2321_v37 = vpop.permute.xlu0 %2320 }
0x198b   :  { %v2323_v61 = vmul.f32 %v2321_v37, %v2318_v2 }
0x198d   :  { %v5091_v17 = vadd.f32 %v2328_v60, %v2323_v61 }
0x198e   :  { %v777_v0 = vpop.permute.xlu0 %776 }
0x198f   :  { %779 = vst.msk [vmem:[#allocation4] sm:$0x3] %vm517_vm1, %v777_v0  ;;  %v2341_v41 = vsel %vm2207_vm8, %v5091_v17, 0.0 }
0x1990   :  { %2343 = vrot.lane.b32.xlu1 %v2341_v41, %s4248_s15 }
0x1992   :  { %v1224_v40 = vpop.permute.xlu0 %1223 }
0x1993   :  { %1227 = vst.msk [vmem:[#allocation4 + $0x4] sm:$0x3] %vm517_vm1, %v1224_v40 }
0x1996   :  { %v1672_v3 = vpop.permute.xlu0 %1671 }
0x1997   :  { %1675 = vst.msk [vmem:[#allocation4 + $0x8] sm:$0x3] %vm517_vm1, %v1672_v3 }
0x199a   :  { %v2120_v7 = vpop.permute.xlu0 %2119  ;;  %v3680_v10 = vld.sshfl [vmem:[#allocation4] sm:$0xf pattern:$0x76325410] }
0x199b   :  { %2123 = vst.msk [vmem:[#allocation4 + $0xc] sm:$0x3] %vm517_vm1, %v2120_v7  ;;  %v2393_v25 = vcombine.low %v3680_v10, %v3681_v15 }
0x199d   :  { %v2400_v29 = vrot.slane %v2393_v25, %v2399_v26 }
0x19a2   :  { %v3682_v20 = vld.sshfl [vmem:[#allocation4 + $0x8] sm:$0xf pattern:$0x76325410] }
0x1a02   :  { %v2344_v9 = vpop.permute.xlu1 %2343 }
0x1a03   :  { %2347 = vst.msk [vmem:[#allocation4 + $0xe] sm:$0x3] %vm517_vm1, %v2344_v9 }
0x1a0a   :  { %v3683_v24 = vld.sshfl [vmem:[#allocation4 + $0xa] sm:$0xf pattern:$0x76325410] }
0x1a0b   :  { %v2401_v28 = vcombine.low %v3682_v20, %v3683_v24 }
0x1a0d   :  { %v2408_v30 = vrot.slane %v2401_v28, %v2399_v26 }
0x1a0f   :  { %v2409_v31 = vcombine.low %v2400_v29, %v2408_v30  ;;  %v2410_v33 = vcombine.high %v2400_v29, %v2408_v30 }
0x1a11   :  { %v5107_v35 = vpack.c.bf16 %v2410_v33, %v2409_v31 }
0x1a13   :  { %3451 = vmatmul.mubr.msk.bf16.vlgmr.msra.gmra.mrb[52].mxu0 %vm409_vm2, %v5107_v35 }
0x1a14   :  { %3462 = vmatprep.mubr.msk.bf16.mxu0 %vm4244_vm0, %v4242_v1  ;;  %3461 = vmatpush3.bf16.xpose.msra.mxu0 %v2671_v23 }
0x1a15   :  { %3472 = vmatprep.subr.bf16.mxu0 %v4242_v1 }
0x1ae6   :  { %v2589_v56 = vpop.f32.mrb[52].mxu0 }
0x1ae7   :  { %v2659_v34 = vpack.c.bf16 %v2589_v56, %v2589_v56  ;;  %v3452_v49 = vpop.f32.mrb[53].mxu0 }
0x1ae8   :  { %v2592_v55 = vpop.f32.mrb[54].mxu0 }
0x1ae9   :  { %v2660_v12 = vpack.c.bf16 %v2592_v55, %v2592_v55  ;;  %v3453_v57 = vpop.f32.mrb[55].mxu0  ;;  %3463 = vmatmul.mubr.msk.bf16.vlgmr.msra.gmra.mrb[56].mxu0 %vm409_vm2, %v2659_v34 }
0x1aea   :  { %3474 = vmatprep.mubr.msk.bf16.mxu0 %vm4244_vm0, %v4242_v1  ;;  %3473 = vmatpush3.bf16.msra.mxu0 %v2799_v16 }
0x1aeb   :  { %3469 = vmatmul.mubr.msk.bf16.vlgmr.msra.gmra.mrb[56].mxu1 %vm409_vm2, %v2660_v12  ;;  %3484 = vmatprep.subr.bf16.mxu0 %v4242_v1 }
0x1aec   :  { %3480 = vmatprep.mubr.msk.bf16.mxu1 %vm4244_vm0, %v4242_v1  ;;  %3479 = vmatpush3.bf16.msra.mxu1 %v2845_v27 }
0x1aed   :  { %3490 = vmatprep.subr.bf16.mxu1 %v4242_v1 }
0x1bbc   :  { %v2707_v44 = vpop.f32.mrb[56].mxu0 }
0x1bbd   :  { %v2759_v2 = vmul.f32 0.25, %v2707_v44  ;;  %v3464_v37 = vpop.f32.mrb[57].mxu0 }
0x1bbe   :  { %v2710_v60 = vpop.f32.mrb[58].mxu0  ;;  %v2753_v61 = vpop.f32.mrb[56].mxu1 }
0x1bbf   :  { %v2760_v0 = vmul.f32 0.25, %v2753_v61  ;;  %v3465_v41 = vpop.f32.mrb[59].mxu0  ;;  %v3470_v40 = vpop.f32.mrb[57].mxu1  ;;  %v2762_v3 = vsel %vm2761_vm7, %v2759_v2, -inf }
0x1bc0   :  { %v2756_v7 = vpop.f32.mrb[58].mxu1  ;;  %2763 = vmax.xlane.f32.xlu0 %v2762_v3 }
0x1bc1   :  { %v3471_v8 = vpop.f32.mrb[59].mxu1  ;;  %v2765_v9 = vsel %vm2761_vm7, %v2760_v0, -inf }
0x1bc2   :  { %2766 = vmax.xlane.f32.xlu1 %v2765_v9 }
0x1c4d   :  { %v2764_v10 = vpop.xlane.xlu0 %2763 }
0x1c4e   :  { %v2768_v11 = vsub.f32 %v2759_v2, %v2764_v10 }
0x1c4f   :  { %v2767_v13 = vpop.xlane.xlu1 %2766 }
0x1c50   :  { %v2770_v15 = vmul.f32 1.442695, %v2768_v11  ;;  %v2769_v20 = vsub.f32 %v2760_v0, %v2767_v13 }
0x1c52   :  { %3653 = vpow2.f32 %v2770_v15  ;;  %v2772_v22 = vmul.f32 1.442695, %v2769_v20 }
0x1c54   :  { %3655 = vpow2.f32 %v2772_v22  ;;  %v2330_v22 = vsel %vm2207_vm8, %v5091_v17, %v5061_v48 }
0x1c5c   :  { %v3654_v24 = vpop.eup %3653 }
0x1c5d   :  { %v2774_v25 = vsel %vm2761_vm7, %v3654_v24, 0.0 }
0x1c5e   :  { %v3656_v26 = vpop.eup %3655  ;;  %2775 = vadd.xlane.f32.xlu0 %v2774_v25 }
0x1c5f   :  { %v2777_v28 = vsel %vm2761_vm7, %v3656_v26, 0.0 }
0x1c62   :  { %2778 = vadd.xlane.f32.xlu0 %v2777_v28 }
0x1ceb   :  { %v2776_v29 = vpop.xlane.xlu0 %2775 }
0x1cec   :  { %3657 = vrcp.f32 %v2776_v29 }
0x1cef   :  { %v2779_v30 = vpop.xlane.xlu0 %2778 }
0x1cf0   :  { %3659 = vrcp.f32 %v2779_v30 }
0x1cf6   :  { %v3658_v31 = vpop.eup %3657 }
0x1cf7   :  { %v2781_v33 = vmul.f32 %v3658_v31, %v3654_v24 }
0x1cf9   :  { %2784 = vst.msk [vmem:[#allocation41] sm:$0xff] %vm2761_vm7, %v2781_v33  ;;  %v2786_v43 = vpack.c.bf16 %v2781_v33, %v2781_v33 }
0x1cfa   :  { %v3660_v14 = vpop.eup %3659 }
0x1cfb   :  { %v2783_v62 = vmul.f32 %v3660_v14, %v3656_v26  ;;  %3475 = vmatmul.mubr.msk.bf16.vlgmr.msra.gmra.mrb[60].mxu0 %vm2761_vm7, %v2786_v43 }
0x1cfc   :  { %3485 = vmatpush3.bf16.msra.mxu0 %v3554_v38  ;;  %3486 = vmatprep.mubr.msk.bf16.mxu0 %vm4244_vm0, %v4242_v1 }
0x1cfd   :  { %2785 = vst.msk [vmem:[#allocation41 + $0x8] sm:$0xff] %vm2761_vm7, %v2783_v62  ;;  %v2787_v59 = vpack.c.bf16 %v2783_v62, %v2783_v62  ;;  %3496 = vmatprep.subr.bf16.mxu0 %v4242_v1 }
0x1cff   :  { %3481 = vmatmul.mubr.msk.bf16.vlgmr.msra.gmra.mrb[60].mxu1 %vm2761_vm7, %v2787_v59 }
0x1d00   :  { %3491 = vmatpush3.bf16.msra.mxu1 %v3555_v6  ;;  %3492 = vmatprep.mubr.msk.bf16.mxu1 %vm4244_vm0, %v4242_v1 }
0x1d03   :  { %3487 = vmatmul.mubr.msk.bf16.vlgmr.msra.gmra.mrb[64].mxu0 %vm409_vm2, %v5107_v35 }
0x1d04   :  { %3498 = vmatprep.mubr.msk.bf16.mxu0 %vm4244_vm0, %v4242_v1  ;;  %3497 = vmatpush3.bf16.msra.mxu0 %v3556_v21  ;;  %vm3060_vm0 = vcmask 261120  }
0x1dce   :  { %v2835_v5 = vpop.f32.mrb[60].mxu0 }
0x1dcf   :  { %v3476_v45 = vpop.f32.mrb[61].mxu0 }
0x1dd0   :  { %v2838_v46 = vpop.f32.mrb[62].mxu0 }
0x1dd1   :  { %v3477_v47 = vpop.f32.mrb[63].mxu0 }
0x1dd2   :  { %v2881_v23 = vpop.f32.mrb[60].mxu1 }
0x1dd3   :  { %v2887_v32 = vpack.c.bf16 %v2881_v23, %v2835_v5  ;;  %v3482_v50 = vpop.f32.mrb[61].mxu1 }
0x1dd4   :  { %v2884_v51 = vpop.f32.mrb[62].mxu1 }
0x1dd5   :  { %v3483_v36 = vpop.f32.mrb[63].mxu1  ;;  %3493 = vmatmul.mubr.msk.bf16.vlgmr.msra.gmra.mrb[64].mxu1 %vm409_vm2, %v2887_v32 }
0x1dd6   :  { %v2932_v19 = vpop.f32.mrb[64].mxu0 }
0x1dd7   :  { %v3488_v42 = vpop.f32.mrb[65].mxu0 }
0x1dd8   :  { %v2935_v52 = vpop.f32.mrb[66].mxu0 }
0x1dd9   :  { %v3489_v18 = vpop.f32.mrb[67].mxu0 }
0x1ea8   :  { %v2982_v35 = vpop.f32.mrb[64].mxu1 }
0x1ea9   :  { %v2983_v1 = vadd.f32 %v2982_v35, %v2932_v19  ;;  %v3494_v54 = vpop.f32.mrb[65].mxu1 }
0x1eaa   :  { %v2985_v56 = vpop.f32.mrb[66].mxu1 }
0x1eab   :  { %v2996_v34 = vadd.f32 %v3216_v53, %v2983_v1  ;;  %v2986_v49 = vadd.f32 %v2985_v56, %v2935_v52  ;;  %v3495_v55 = vpop.f32.mrb[67].mxu1 }
0x1ead   :  { %v2997_v12 = vadd.f32 %v3216_v53, %v2986_v49  ;;  %3661 = vtanh.f32 %v2996_v34 }
0x1eaf   :  { %3663 = vtanh.f32 %v2997_v12 }
0x1eb7   :  { %v3662_v57 = vpop.eup %3661 }
0x1eb9   :  { %v3664_v63 = vpop.eup %3663 }
0x1eba   :  { %v3000_v16 = vpack.c.bf16 %v3664_v63, %v3662_v57 }
0x1ebc   :  { %3499 = vmatmul.mubr.msk.bf16.vlgmr.msra.gmra.mrb[68].mxu0 %vm409_vm2, %v3000_v16 }
0x1f8f   :  { %v3053_v27 = vpop.f32.mrb[68].mxu0 }
0x1f90   :  { %v5144_v44 = vadd.f32 %v3217_v58, %v3053_v27  ;;  %v3500_v2 = vpop.f32.mrb[69].mxu0 }
0x1f91   :  { %v3056_v37 = vpop.f32.mrb[70].mxu0 }
0x1f92   :  { %v5146_v60 = vadd.f32 %v3217_v58, %v3056_v37  ;;  %v3501_v61 = vpop.f32.mrb[71].mxu0  ;;  %v3061_v0 = vsel %vm3060_vm0, %v5144_v44, -inf }
0x1f93   :  { %3062 = vmax.xlane.f32.xlu1 %v3061_v0 }
0x1f94   :  { %v3064_v41 = vsel %vm3060_vm0, %v5146_v60, -inf }
0x1f95   :  { %3065 = vmax.xlane.f32.xlu0 %v3064_v41 }
0x2020   :  { %v3063_v40 = vpop.xlane.xlu1 %3062 }
0x2021   :  { %v3067_v3 = vsub.f32 %v5144_v44, %v3063_v40 }
0x2022   :  { %v3066_v7 = vpop.xlane.xlu0 %3065 }
0x2023   :  { %v3069_v8 = vmul.f32 1.442695, %v3067_v3  ;;  %v3068_v9 = vsub.f32 %v5146_v60, %v3066_v7 }
0x2025   :  { %3665 = vpow2.f32 %v3069_v8  ;;  %v3071_v10 = vmul.f32 1.442695, %v3068_v9 }
0x2027   :  { %3667 = vpow2.f32 %v3071_v10 }
0x202f   :  { %v3666_v11 = vpop.eup %3665 }
0x2030   :  { %v3073_v13 = vsel %vm3060_vm0, %v3666_v11, 0.0 }
0x2031   :  { %v3668_v15 = vpop.eup %3667  ;;  %3074 = vadd.xlane.f32.xlu1 %v3073_v13 }
0x2032   :  { %v3076_v20 = vsel %vm3060_vm0, %v3668_v15, 0.0 }
0x2033   :  { %3077 = vadd.xlane.f32.xlu0 %v3076_v20 }
0x2042   :  { %2332 = vrot.lane.b32.xlu1 %v5034_v4, %s4248_s15 }
0x2049   :  { %2337 = vrot.lane.b32.xlu0 %v2330_v22, %s4248_s15 }
0x20be   :  { %v3075_v24 = vpop.xlane.xlu1 %3074 }
0x20bf   :  { %3669 = vlog2.f32 %v3075_v24 }
0x20c0   :  { %v3078_v25 = vpop.xlane.xlu0 %3077 }
0x20c1   :  { %3671 = vlog2.f32 %v3078_v25 }
0x20c2   :  { %v2333_v26 = vpop.permute.xlu1 %2332 }
0x20c3   :  { %2335 = vst.msk [vmem:[#allocation2] sm:$0x3] %vm517_vm1, %v2333_v26 }
0x20c4   :  { %v2338_v28 = vpop.permute.xlu0 %2337 }
0x20c5   :  { %2340 = vst.msk [vmem:[#allocation3] sm:$0x3] %vm517_vm1, %v2338_v28 }
0x20c9   :  { %v3670_v4 = vpop.eup %3669 }
0x20ca   :  { %v3080_v29 = vmul.f32 0.6931472, %v3670_v4  ;;  %v2348_v39 = vld [vmem:[#allocation2] sm:$0x3] }
0x20cb   :  { %v3672_v48 = vpop.eup %3671  ;;  %2349 = vst.msk [vmem:[#allocation39] sm:$0x3] %vm517_vm1, %v2348_v39 }
0x20cc   :  { %v3083_v17 = vadd.f32 %v3080_v29, %v3063_v40  ;;  %v3082_v30 = vmul.f32 0.6931472, %v3672_v48  ;;  %v2350_v31 = vld [vmem:[#allocation3] sm:$0x3] }
0x20cd   :  { %2352 = vst.msk [vmem:[#allocation39 + $0x2] sm:$0x3] %vm517_vm1, %v2350_v31 }
0x20ce   :  { %v3085_v33 = vsub.f32 %v5144_v44, %v3083_v17  ;;  %v3084_v38 = vadd.f32 %v3082_v30, %v3066_v7 }
0x20cf   :  { %4135 = shalt.err (!%p4132_p10)
}
0x20d0   :  { %s5273_s8 = sld [smem:[#allocation63_spill]] }
0x20d6   :  { %s4136_s2 = scalar_lea.hbm %s5273_s8, 64 }
0x20d7   :  { %p4137_p11 = scmp.ne.s32.totalorder %s5273_s8, %s4136_s2  ;;  %p4140_p12 = scmp.lt.u32.totalorder %s4136_s2, %s5273_s8 }
0x20d9   :  { %p4142_p13 = pnand %p4140_p12, %p4137_p11 }
0x20db   :  { %4145 = shalt.err (!%p4142_p13)
}
0x20dc   :  { %3112 = dma.vmem_to_hbm [thread:$0]  %s3107_s9, 64, %s5273_s8, [#allocation40], %s4231_s1, %s4231_s1, %s4232_s3  }
0x20dd   :  { %s4146_s27 = scalar_lea.vmem %s5166_s23, 256  ;;  %p4151_p1 = scmp.lt.s32.totalorder %s5166_s23, %s5166_s23 }
0x20de   :  { %p4147_p0 = scmp.ne.s32.totalorder %s5166_s23, %s4146_s27  ;;  %p4152_p2 = scmp.lt.s32.totalorder %s4146_s27, %s4146_s27 }
0x20e0   :  { %p4153_p3 = por %p4152_p2, %p4151_p1 }
0x20e2   :  { %p4154_p4 = pnand %p4153_p3, %p4147_p0 }
0x20e4   :  { %4157 = shalt.err (!%p4154_p4)
}
0x20e5   :  { %s5274_s5 = sld [smem:[#allocation64_spill]] }
0x20eb   :  { %s4158_s6 = scalar_lea.hbm %s5274_s5, 256 }
0x20ec   :  { %p4159_p5 = scmp.ne.s32.totalorder %s5274_s5, %s4158_s6  ;;  %p4162_p6 = scmp.lt.u32.totalorder %s4158_s6, %s5274_s5 }
0x20ee   :  { %p4164_p7 = pnand %p4162_p6, %p4159_p5 }
0x20f0   :  { %4167 = shalt.err (!%p4164_p7)
}
0x20f1   :  { %s4253_s1 = smov 128   ;;  %s4254_s3 = smov 8   ;;  %3087 = vst.msk [vmem:[#allocation38] sm:$0xff] %vm3060_vm0, %v3085_v33  ;;  %v3086_v43 = vsub.f32 %v5146_v60, %v3084_v38 }
0x20f2   :  { %3124 = dma.vmem_to_hbm [thread:$0]  %s5166_s23, 256, %s5274_s5, [#allocation40], %s4253_s1, %s4253_s1, %s4254_s3  }
0x20f3   :  { %3088 = vst.msk [vmem:[#allocation38 + $0x8] sm:$0xff] %vm3060_vm0, %v3086_v43  ;;  %s4168_s15 = scalar_lea.vmem %s3095_s24, 256  ;;  %p4173_p9 = scmp.lt.s32.totalorder %s3095_s24, %s3095_s24 }
0x20f4   :  { %p4169_p8 = scmp.ne.s32.totalorder %s3095_s24, %s4168_s15  ;;  %p4174_p10 = scmp.lt.s32.totalorder %s4168_s15, %s4168_s15 }
0x20f6   :  { %p4175_p11 = por %p4174_p10, %p4173_p9 }
0x20f8   :  { %p4176_p12 = pnand %p4175_p11, %p4169_p8 }
0x20fa   :  { %4179 = shalt.err (!%p4176_p12)
}
0x20fb   :  { %s5275_s17 = sld [smem:[#allocation62_spill]] }
0x2101   :  { %s4180_s0 = scalar_lea.hbm %s5275_s17, 256 }
0x2102   :  { %p4181_p13 = scmp.ne.s32.totalorder %s5275_s17, %s4180_s0  ;;  %p4184_p0 = scmp.lt.u32.totalorder %s4180_s0, %s5275_s17 }
0x2104   :  { %p4186_p1 = pnand %p4184_p0, %p4181_p13 }
0x2106   :  { %4189 = shalt.err (!%p4186_p1)
}
0x2107   :  { %3100 = dma.vmem_to_hbm [thread:$0]  %s3095_s24, 256, %s5275_s17, [#allocation8], %s4253_s1, %s4253_s1, %s4254_s3  }
0x2108   :  { %4212 = dma.done.wait [#allocation8], 256  }
0x2109   :  { %4213 = vsyncadd [#allocation8], 4294967040 }
0x210a   :  { %4214 = dma.done.wait [#allocation40], 320  }
0x210b   :  { %4215 = vsyncadd [#allocation40], 4294966976 }
0x210c   :  { %3134 = vsyncpa [#allocation7], 1 }
0x210d   :  { %3135 = vsyncpa [#allocation10], 1 }
0x210e   :  { %3136 = vsyncpa [#allocation13], 1 }
0x210f   :  { %3137 = vsyncpa [#allocation16], 1 }
0x2110   :  { %3138 = vsyncpa [#allocation19], 1 }
0x2111   :  { %3139 = vsyncpa [#allocation22], 1 }
0x2112   :  { %3140 = vsyncpa [#allocation25], 1 }
0x2113   :  { %3141 = vsyncpa [#allocation28], 1 }
0x2114   :  { %3142 = vsyncpa [#allocation31], 1 }
0x2115   :  { %3143 = vsyncpa [#allocation34], 1 }
0x2116   :  { %3144 = vsyncpa [#allocation37], 1 }
0x2117   :  { %3145 = vsyncpa [#allocation8], 1 }
0x2118   :  { %3146 = vsyncpa [#allocation40], 1 }

</bundles_post_ra>
